<compile_context>
chip_gen: v5e
topology: v5e:2x2
jax: 0.10.0
libtpu: 0.0.40
codegen_flags: <defaults>
</compile_context>

<pallas_src>
import functools

import numpy as np
import jax
import jax.numpy as jnp
from jax import lax
from jax.experimental import pallas as pl
from jax.experimental.pallas import tpu as pltpu


def _tap_offsets(k, dilation, pad):
    """(di, dj) source offsets of each tap, row-major over the k x k kernel."""
    return [(ki * dilation - pad, kj * dilation - pad)
            for ki in range(k) for kj in range(k)]


def _lkfe_kernel(xid_ref, xk_ref, w0m_ref, b0_ref, wspm_ref, bsp_ref,
                 wid_ref, wa1_ref, wa2_ref, bout_ref, out_ref,
                 *, bt, shifts0, shifts_sp):

    def dw_conv(v, wm_ref, b_ref, shifts):
        # v: (C, HW). wm_ref[t] is the tap-t weight column pre-multiplied by
        # the zero-padding validity mask (so wrap-around / OOB sources
        # contribute exactly 0). Per tap: one XLU lane-rotate + one VPU mul
        # + one VPU add. Weights are read per tap from VMEM (keeps vregs low).
        acc = None
        for t, s in enumerate(shifts):
            rolled = v if s == 0 else pltpu.roll(v, s, 1)
            term = rolled * wm_ref[t]
            acc = term if acc is None else acc + term
        return acc + b_ref[...]

    for b in range(bt):
        x_id = xid_ref[b].astype(jnp.float32)    # (d3, HW)
        x_k = xk_ref[b].astype(jnp.float32)      # (ck, HW)

        attn1 = dw_conv(x_k, w0m_ref, b0_ref, shifts0)         # conv0
        attn2 = dw_conv(attn1, wspm_ref, bsp_ref, shifts_sp)   # conv_spatial

        # conv1, conv2, identity branch, concat and channel_shuffle(groups=2)
        # fused as three small MXU matmuls with pre-permuted (shuffled) weight
        # rows:  out = P @ [x_id ; w1@attn1 + b1 ; w2@attn2 + b2].
        # f32 + HIGHEST keeps the identity pass-through (weights 0/1) exact.
        out = (jnp.dot(wid_ref[...], x_id,
                       precision=lax.Precision.HIGHEST,
                       preferred_element_type=jnp.float32)
               + jnp.dot(wa1_ref[...], attn1,
                         precision=lax.Precision.HIGHEST,
                         preferred_element_type=jnp.float32)
               + jnp.dot(wa2_ref[...], attn2,
                         precision=lax.Precision.HIGHEST,
                         preferred_element_type=jnp.float32)
               + bout_ref[...])
        out_ref[b] = out.astype(out_ref.dtype)   # single lane-dense store


def lkfe_pallas(x_nchw, kparams, batch_tile=None):
    """x_nchw: (B, dim, H, W) float32. Returns (B, dim, H, W)."""
    w0m, b0, wspm, bsp, wid, wa1, wa2, bout = kparams
    B, dim, H, W = x_nchw.shape
    assert dim % 6 == 0, "LKFE requires dim divisible by 6"
    d3 = dim // 3
    ck = 2 * dim // 3
    HW = H * W

    if batch_tile is None:
        # Default: 2 parallel grid steps when possible (both v7x TCs busy);
        # on v5e/v6e the extra tiny step costs ~0.35 us and is negligible.
        batch_tile = B // 2 if (B % 2 == 0 and B >= 2) else 1
    assert B % batch_tile == 0, "batch_tile must divide B"
    nb = B // batch_tile

    x_flat = x_nchw.reshape(B, dim, HW)          # layout-preserving reshape
    x_id = x_flat[:, :d3]                        # host-side split (no in-kernel
    x_k = x_flat[:, d3:]                         #  unaligned sublane slices)

    # Static lane-roll amounts per tap: source flat index = p + di*W + dj,
    # so shifted[:, p] = v[:, (p + s) % HW]  ->  roll shift = (-s) % HW.
    shifts0 = tuple((-(di * W + dj)) % HW for di, dj in _tap_offsets(5, 1, 2))
    shifts_sp = tuple((-(di * W + dj)) % HW for di, dj in _tap_offsets(7, 3, 9))

    kernel = functools.partial(_lkfe_kernel, bt=batch_tile,
                               shifts0=shifts0, shifts_sp=shifts_sp)

    out_flat = pl.pallas_call(
        kernel,
        out_shape=jax.ShapeDtypeStruct((B, dim, HW), x_nchw.dtype),
        grid_spec=pltpu.PrefetchScalarGridSpec(
            num_scalar_prefetch=0,
            grid=(nb,),
            in_specs=[
                pl.BlockSpec((batch_tile, d3, HW), lambda i: (i, 0, 0)),  # x_id
                pl.BlockSpec((batch_tile, ck, HW), lambda i: (i, 0, 0)),  # x_k
                # Constant index_map -> weights stay resident across steps.
                pl.BlockSpec((25, ck, HW), lambda i: (0, 0, 0)),   # conv0 masked taps
                pl.BlockSpec((ck, 1), lambda i: (0, 0)),           # b0
                pl.BlockSpec((49, ck, HW), lambda i: (0, 0, 0)),   # conv_spatial masked taps
                pl.BlockSpec((ck, 1), lambda i: (0, 0)),           # b_spatial
                pl.BlockSpec((dim, d3), lambda i: (0, 0)),         # shuffled identity sel
                pl.BlockSpec((dim, ck), lambda i: (0, 0)),         # shuffled conv1 weight
                pl.BlockSpec((dim, ck), lambda i: (0, 0)),         # shuffled conv2 weight
                pl.BlockSpec((dim, 1), lambda i: (0, 0)),          # shuffled bias
            ],
            out_specs=pl.BlockSpec((batch_tile, dim, HW), lambda i: (i, 0, 0)),
        ),
        compiler_params=pltpu.CompilerParams(
            dimension_semantics=("parallel",)),
    )(x_id, x_k, w0m, b0, wspm, bsp, wid, wa1, wa2, bout)

    return out_flat.reshape(B, dim, H, W)


def init_params(key, dim):
    """Deterministic synthetic params in PyTorch layouts (OIHW / (O,))."""
    d3 = dim // 3
    ck = 2 * dim // 3
    ks = jax.random.split(key, 8)
    p = {
        "w0_t":  jax.random.normal(ks[0], (ck, 1, 5, 5), jnp.float32) * 0.1,
        "b0":    jax.random.normal(ks[1], (ck,), jnp.float32) * 0.1,
        "wsp_t": jax.random.normal(ks[2], (ck, 1, 7, 7), jnp.float32) * 0.1,
        "bsp":   jax.random.normal(ks[3], (ck,), jnp.float32) * 0.1,
        "w1_t":  jax.random.normal(ks[4], (d3, ck, 1, 1), jnp.float32) * 0.1,
        "b1":    jax.random.normal(ks[5], (d3,), jnp.float32) * 0.1,
        "w2_t":  jax.random.normal(ks[6], (d3, ck, 1, 1), jnp.float32) * 0.1,
        "b2":    jax.random.normal(ks[7], (d3,), jnp.float32) * 0.1,
    }
    # NOTE: self.conv1x1 (Conv+BN+ReLU) and self.norm are defined in __init__
    # but never used in forward(), so they carry no parameters here.
    return p


def _masked_dw_weights(w_oihw, offsets, H, W):
    """(ntaps, C, H*W) per-tap depthwise weights pre-multiplied by the
    zero-padding validity mask of each tap's (di, dj) source offset."""
    w = np.asarray(w_oihw)[:, 0]                 # (C, K, K)
    _, K, _ = w.shape
    HW = H * W
    ii = np.repeat(np.arange(H), W)              # row index of flat position
    jj = np.tile(np.arange(W), H)                # col index of flat position
    out = np.zeros((len(offsets), w.shape[0], HW), np.float32)
    for t, (di, dj) in enumerate(offsets):
        valid = ((ii + di >= 0) & (ii + di < H) &
                 (jj + dj >= 0) & (jj + dj < W)).astype(np.float32)
        out[t] = w[:, t // K, t % K, None] * valid[None, :]
    return jnp.asarray(out)


def to_kernel_params(p, dim, H, W):
    """Convert PyTorch-layout params to the layouts the kernel expects."""
    d3 = dim // 3
    ck = 2 * dim // 3
    w0m = _masked_dw_weights(p["w0_t"], _tap_offsets(5, 1, 2), H, W)
    wspm = _masked_dw_weights(p["wsp_t"], _tap_offsets(7, 3, 9), H, W)
    b0 = jnp.asarray(p["b0"])[:, None]
    bsp = jnp.asarray(p["bsp"])[:, None]

    # Fold identity branch + concat + channel_shuffle(groups=2) into the 1x1
    # convs: out[c] = attn_cat[perm(c)], attn_cat = [x_id; conv1(a1); conv2(a2)].
    w1 = np.asarray(p["w1_t"])[:, :, 0, 0]       # (d3, ck)
    w2 = np.asarray(p["w2_t"])[:, :, 0, 0]       # (d3, ck)
    b1 = np.asarray(p["b1"])
    b2 = np.asarray(p["b2"])
    half = dim // 2
    wid = np.zeros((dim, d3), np.float32)
    wa1 = np.zeros((dim, ck), np.float32)
    wa2 = np.zeros((dim, ck), np.float32)
    bout = np.zeros((dim,), np.float32)
    for c in range(dim):
        src = (c % 2) * half + c // 2            # channel_shuffle source channel
        if src < d3:                             # identity branch row
            wid[c, src] = 1.0
        elif src < 2 * d3:                       # conv1 row
            wa1[c] = w1[src - d3]
            bout[c] = b1[src - d3]
        else:                                    # conv2 row
            wa2[c] = w2[src - 2 * d3]
            bout[c] = b2[src - 2 * d3]
    return (w0m, b0, wspm, bsp,
            jnp.asarray(wid), jnp.asarray(wa1), jnp.asarray(wa2),
            jnp.asarray(bout)[:, None])


def lkfe_reference(x, p, dim):
    """Pure-JAX (XLA conv) reference of the PyTorch forward, NCHW."""
    d3 = dim // 3
    ck = 2 * dim // 3
    dn = ("NCHW", "OIHW", "NCHW")
    prec = lax.Precision.HIGHEST
    x_id, x_k = x[:, :d3], x[:, d3:]
    attn1 = lax.conv_general_dilated(
        x_k, p["w0_t"], (1, 1), ((2, 2), (2, 2)),
        dimension_numbers=dn, feature_group_count=ck, precision=prec)
    attn1 = attn1 + p["b0"][None, :, None, None]
    attn2 = lax.conv_general_dilated(
        attn1, p["wsp_t"], (1, 1), ((9, 9), (9, 9)), rhs_dilation=(3, 3),
        dimension_numbers=dn, feature_group_count=ck, precision=prec)
    attn2 = attn2 + p["bsp"][None, :, None, None]
    a1 = lax.conv_general_dilated(attn1, p["w1_t"], (1, 1), ((0, 0), (0, 0)),
                                  dimension_numbers=dn, precision=prec)
    a1 = a1 + p["b1"][None, :, None, None]
    a2 = lax.conv_general_dilated(attn2, p["w2_t"], (1, 1), ((0, 0), (0, 0)),
                                  dimension_numbers=dn, precision=prec)
    a2 = a2 + p["b2"][None, :, None, None]
    attn = jnp.concatenate([x_id, a1, a2], axis=1)
    B, C, H, W = attn.shape
    g = 2
    out = attn.reshape(B, g, C // g, H, W).transpose(0, 2, 1, 3, 4).reshape(B, C, H, W)
    return out


if __name__ == "__main__":
    B, dim, H, W = 2, 12, 16, 16   # dim divisible by 6 (d3 / 2*d3 split, shuffle groups=2)

    key = jax.random.PRNGKey(0)
    kx, kp = jax.random.split(key)
    x = jax.random.normal(kx, (B, dim, H, W), jnp.float32)
    params = init_params(kp, dim)
    kparams = to_kernel_params(params, dim, H, W)

    out = lkfe_pallas(x, kparams)
    out = jax.block_until_ready(out)

    ref = jax.block_until_ready(lkfe_reference(x, params, dim))
    assert out.shape == (B, dim, H, W), out.shape
    np.testing.assert_allclose(np.asarray(out), np.asarray(ref), rtol=1e-4, atol=1e-4)

    print("KERNEL_OK")
</pallas_src>

<mosaic_0001>
module attributes {stable_mosaic.version = 11 : i64} {
  func.func @_lkfe_kernel(%arg0: i32, %arg1: memref<1x4x256xf32, #tpu.memory_space<vmem>>, %arg2: memref<1x8x256xf32, #tpu.memory_space<vmem>>, %arg3: memref<25x8x256xf32, #tpu.memory_space<vmem>>, %arg4: memref<8x1xf32, #tpu.memory_space<vmem>>, %arg5: memref<49x8x256xf32, #tpu.memory_space<vmem>>, %arg6: memref<8x1xf32, #tpu.memory_space<vmem>>, %arg7: memref<12x4xf32, #tpu.memory_space<vmem>>, %arg8: memref<12x8xf32, #tpu.memory_space<vmem>>, %arg9: memref<12x8xf32, #tpu.memory_space<vmem>>, %arg10: memref<12x1xf32, #tpu.memory_space<vmem>>, %arg11: memref<1x12x256xf32, #tpu.memory_space<vmem>>) attributes {dimension_semantics = [#tpu.dimension_semantics<parallel>], iteration_bounds = array<i64: 2>, scalar_prefetch = 0 : i64, scratch_operands = 0 : i64, tpu.core_type = #tpu.core_type<tc>, window_params = [{transform_indices = @transform_0, window_bounds = array<i64: 1, 4, 256>}, {transform_indices = @transform_1, window_bounds = array<i64: 1, 8, 256>}, {pipeline_mode = #tpu.pipeline_mode<synchronous>, transform_indices = @transform_2, window_bounds = array<i64: 25, 8, 256>}, {pipeline_mode = #tpu.pipeline_mode<synchronous>, transform_indices = @transform_3, window_bounds = array<i64: 8, 1>}, {pipeline_mode = #tpu.pipeline_mode<synchronous>, transform_indices = @transform_4, window_bounds = array<i64: 49, 8, 256>}, {pipeline_mode = #tpu.pipeline_mode<synchronous>, transform_indices = @transform_5, window_bounds = array<i64: 8, 1>}, {pipeline_mode = #tpu.pipeline_mode<synchronous>, transform_indices = @transform_6, window_bounds = array<i64: 12, 4>}, {pipeline_mode = #tpu.pipeline_mode<synchronous>, transform_indices = @transform_7, window_bounds = array<i64: 12, 8>}, {pipeline_mode = #tpu.pipeline_mode<synchronous>, transform_indices = @transform_8, window_bounds = array<i64: 12, 8>}, {pipeline_mode = #tpu.pipeline_mode<synchronous>, transform_indices = @transform_9, window_bounds = array<i64: 12, 1>}, {transform_indices = @transform_10, window_bounds = array<i64: 1, 12, 256>}]} {
    %c0 = arith.constant 0 : index
    %c0_0 = arith.constant 0 : index
    %c0_1 = arith.constant 0 : index
    %0 = vector.load %arg1[%c0, %c0_0, %c0_1] : memref<1x4x256xf32, #tpu.memory_space<vmem>>, vector<1x4x256xf32>
    %1 = vector.shape_cast %0 : vector<1x4x256xf32> to vector<4x256xf32>
    %c0_2 = arith.constant 0 : index
    %c0_3 = arith.constant 0 : index
    %c0_4 = arith.constant 0 : index
    %2 = vector.load %arg2[%c0_2, %c0_3, %c0_4] : memref<1x8x256xf32, #tpu.memory_space<vmem>>, vector<1x8x256xf32>
    %3 = vector.shape_cast %2 : vector<1x8x256xf32> to vector<8x256xf32>
    %c34_i32 = arith.constant 34 : i32
    %4 = tpu.dynamic_rotate %3 by %c34_i32 dim 1 : vector<8x256xf32>, i32 -> vector<8x256xf32>
    %c0_5 = arith.constant 0 : index
    %c0_6 = arith.constant 0 : index
    %c0_7 = arith.constant 0 : index
    %5 = vector.load %arg3[%c0_5, %c0_6, %c0_7] : memref<25x8x256xf32, #tpu.memory_space<vmem>>, vector<1x8x256xf32>
    %6 = vector.shape_cast %5 : vector<1x8x256xf32> to vector<8x256xf32>
    %7 = arith.mulf %4, %6 : vector<8x256xf32>
    %c33_i32 = arith.constant 33 : i32
    %8 = tpu.dynamic_rotate %3 by %c33_i32 dim 1 : vector<8x256xf32>, i32 -> vector<8x256xf32>
    %c1 = arith.constant 1 : index
    %c0_8 = arith.constant 0 : index
    %c0_9 = arith.constant 0 : index
    %9 = vector.load %arg3[%c1, %c0_8, %c0_9] : memref<25x8x256xf32, #tpu.memory_space<vmem>>, vector<1x8x256xf32>
    %10 = vector.shape_cast %9 : vector<1x8x256xf32> to vector<8x256xf32>
    %11 = arith.mulf %8, %10 : vector<8x256xf32>
    %12 = arith.addf %7, %11 : vector<8x256xf32>
    %c32_i32 = arith.constant 32 : i32
    %13 = tpu.dynamic_rotate %3 by %c32_i32 dim 1 : vector<8x256xf32>, i32 -> vector<8x256xf32>
    %c2 = arith.constant 2 : index
    %c0_10 = arith.constant 0 : index
    %c0_11 = arith.constant 0 : index
    %14 = vector.load %arg3[%c2, %c0_10, %c0_11] : memref<25x8x256xf32, #tpu.memory_space<vmem>>, vector<1x8x256xf32>
    %15 = vector.shape_cast %14 : vector<1x8x256xf32> to vector<8x256xf32>
    %16 = arith.mulf %13, %15 : vector<8x256xf32>
    %17 = arith.addf %12, %16 : vector<8x256xf32>
    %c31_i32 = arith.constant 31 : i32
    %18 = tpu.dynamic_rotate %3 by %c31_i32 dim 1 : vector<8x256xf32>, i32 -> vector<8x256xf32>
    %c3 = arith.constant 3 : index
    %c0_12 = arith.constant 0 : index
    %c0_13 = arith.constant 0 : index
    %19 = vector.load %arg3[%c3, %c0_12, %c0_13] : memref<25x8x256xf32, #tpu.memory_space<vmem>>, vector<1x8x256xf32>
    %20 = vector.shape_cast %19 : vector<1x8x256xf32> to vector<8x256xf32>
    %21 = arith.mulf %18, %20 : vector<8x256xf32>
    %22 = arith.addf %17, %21 : vector<8x256xf32>
    %c30_i32 = arith.constant 30 : i32
    %23 = tpu.dynamic_rotate %3 by %c30_i32 dim 1 : vector<8x256xf32>, i32 -> vector<8x256xf32>
    %c4 = arith.constant 4 : index
    %c0_14 = arith.constant 0 : index
    %c0_15 = arith.constant 0 : index
    %24 = vector.load %arg3[%c4, %c0_14, %c0_15] : memref<25x8x256xf32, #tpu.memory_space<vmem>>, vector<1x8x256xf32>
    %25 = vector.shape_cast %24 : vector<1x8x256xf32> to vector<8x256xf32>
    %26 = arith.mulf %23, %25 : vector<8x256xf32>
    %27 = arith.addf %22, %26 : vector<8x256xf32>
    %c18_i32 = arith.constant 18 : i32
    %28 = tpu.dynamic_rotate %3 by %c18_i32 dim 1 : vector<8x256xf32>, i32 -> vector<8x256xf32>
    %c5 = arith.constant 5 : index
    %c0_16 = arith.constant 0 : index
    %c0_17 = arith.constant 0 : index
    %29 = vector.load %arg3[%c5, %c0_16, %c0_17] : memref<25x8x256xf32, #tpu.memory_space<vmem>>, vector<1x8x256xf32>
    %30 = vector.shape_cast %29 : vector<1x8x256xf32> to vector<8x256xf32>
    %31 = arith.mulf %28, %30 : vector<8x256xf32>
    %32 = arith.addf %27, %31 : vector<8x256xf32>
    %c17_i32 = arith.constant 17 : i32
    %33 = tpu.dynamic_rotate %3 by %c17_i32 dim 1 : vector<8x256xf32>, i32 -> vector<8x256xf32>
    %c6 = arith.constant 6 : index
    %c0_18 = arith.constant 0 : index
    %c0_19 = arith.constant 0 : index
    %34 = vector.load %arg3[%c6, %c0_18, %c0_19] : memref<25x8x256xf32, #tpu.memory_space<vmem>>, vector<1x8x256xf32>
    %35 = vector.shape_cast %34 : vector<1x8x256xf32> to vector<8x256xf32>
    %36 = arith.mulf %33, %35 : vector<8x256xf32>
    %37 = arith.addf %32, %36 : vector<8x256xf32>
    %c16_i32 = arith.constant 16 : i32
    %38 = tpu.dynamic_rotate %3 by %c16_i32 dim 1 : vector<8x256xf32>, i32 -> vector<8x256xf32>
    %c7 = arith.constant 7 : index
    %c0_20 = arith.constant 0 : index
    %c0_21 = arith.constant 0 : index
    %39 = vector.load %arg3[%c7, %c0_20, %c0_21] : memref<25x8x256xf32, #tpu.memory_space<vmem>>, vector<1x8x256xf32>
    %40 = vector.shape_cast %39 : vector<1x8x256xf32> to vector<8x256xf32>
    %41 = arith.mulf %38, %40 : vector<8x256xf32>
    %42 = arith.addf %37, %41 : vector<8x256xf32>
    %c15_i32 = arith.constant 15 : i32
    %43 = tpu.dynamic_rotate %3 by %c15_i32 dim 1 : vector<8x256xf32>, i32 -> vector<8x256xf32>
    %c8 = arith.constant 8 : index
    %c0_22 = arith.constant 0 : index
    %c0_23 = arith.constant 0 : index
    %44 = vector.load %arg3[%c8, %c0_22, %c0_23] : memref<25x8x256xf32, #tpu.memory_space<vmem>>, vector<1x8x256xf32>
    %45 = vector.shape_cast %44 : vector<1x8x256xf32> to vector<8x256xf32>
    %46 = arith.mulf %43, %45 : vector<8x256xf32>
    %47 = arith.addf %42, %46 : vector<8x256xf32>
    %c14_i32 = arith.constant 14 : i32
    %48 = tpu.dynamic_rotate %3 by %c14_i32 dim 1 : vector<8x256xf32>, i32 -> vector<8x256xf32>
    %c9 = arith.constant 9 : index
    %c0_24 = arith.constant 0 : index
    %c0_25 = arith.constant 0 : index
    %49 = vector.load %arg3[%c9, %c0_24, %c0_25] : memref<25x8x256xf32, #tpu.memory_space<vmem>>, vector<1x8x256xf32>
    %50 = vector.shape_cast %49 : vector<1x8x256xf32> to vector<8x256xf32>
    %51 = arith.mulf %48, %50 : vector<8x256xf32>
    %52 = arith.addf %47, %51 : vector<8x256xf32>
    %c2_i32 = arith.constant 2 : i32
    %53 = tpu.dynamic_rotate %3 by %c2_i32 dim 1 : vector<8x256xf32>, i32 -> vector<8x256xf32>
    %c10 = arith.constant 10 : index
    %c0_26 = arith.constant 0 : index
    %c0_27 = arith.constant 0 : index
    %54 = vector.load %arg3[%c10, %c0_26, %c0_27] : memref<25x8x256xf32, #tpu.memory_space<vmem>>, vector<1x8x256xf32>
    %55 = vector.shape_cast %54 : vector<1x8x256xf32> to vector<8x256xf32>
    %56 = arith.mulf %53, %55 : vector<8x256xf32>
    %57 = arith.addf %52, %56 : vector<8x256xf32>
    %c1_i32 = arith.constant 1 : i32
    %58 = tpu.dynamic_rotate %3 by %c1_i32 dim 1 : vector<8x256xf32>, i32 -> vector<8x256xf32>
    %c11 = arith.constant 11 : index
    %c0_28 = arith.constant 0 : index
    %c0_29 = arith.constant 0 : index
    %59 = vector.load %arg3[%c11, %c0_28, %c0_29] : memref<25x8x256xf32, #tpu.memory_space<vmem>>, vector<1x8x256xf32>
    %60 = vector.shape_cast %59 : vector<1x8x256xf32> to vector<8x256xf32>
    %61 = arith.mulf %58, %60 : vector<8x256xf32>
    %62 = arith.addf %57, %61 : vector<8x256xf32>
    %c12 = arith.constant 12 : index
    %c0_30 = arith.constant 0 : index
    %c0_31 = arith.constant 0 : index
    %63 = vector.load %arg3[%c12, %c0_30, %c0_31] : memref<25x8x256xf32, #tpu.memory_space<vmem>>, vector<1x8x256xf32>
    %64 = vector.shape_cast %63 : vector<1x8x256xf32> to vector<8x256xf32>
    %65 = arith.mulf %3, %64 : vector<8x256xf32>
    %66 = arith.addf %62, %65 : vector<8x256xf32>
    %c255_i32 = arith.constant 255 : i32
    %67 = tpu.dynamic_rotate %3 by %c255_i32 dim 1 : vector<8x256xf32>, i32 -> vector<8x256xf32>
    %c13 = arith.constant 13 : index
    %c0_32 = arith.constant 0 : index
    %c0_33 = arith.constant 0 : index
    %68 = vector.load %arg3[%c13, %c0_32, %c0_33] : memref<25x8x256xf32, #tpu.memory_space<vmem>>, vector<1x8x256xf32>
    %69 = vector.shape_cast %68 : vector<1x8x256xf32> to vector<8x256xf32>
    %70 = arith.mulf %67, %69 : vector<8x256xf32>
    %71 = arith.addf %66, %70 : vector<8x256xf32>
    %c254_i32 = arith.constant 254 : i32
    %72 = tpu.dynamic_rotate %3 by %c254_i32 dim 1 : vector<8x256xf32>, i32 -> vector<8x256xf32>
    %c14 = arith.constant 14 : index
    %c0_34 = arith.constant 0 : index
    %c0_35 = arith.constant 0 : index
    %73 = vector.load %arg3[%c14, %c0_34, %c0_35] : memref<25x8x256xf32, #tpu.memory_space<vmem>>, vector<1x8x256xf32>
    %74 = vector.shape_cast %73 : vector<1x8x256xf32> to vector<8x256xf32>
    %75 = arith.mulf %72, %74 : vector<8x256xf32>
    %76 = arith.addf %71, %75 : vector<8x256xf32>
    %c242_i32 = arith.constant 242 : i32
    %77 = tpu.dynamic_rotate %3 by %c242_i32 dim 1 : vector<8x256xf32>, i32 -> vector<8x256xf32>
    %c15 = arith.constant 15 : index
    %c0_36 = arith.constant 0 : index
    %c0_37 = arith.constant 0 : index
    %78 = vector.load %arg3[%c15, %c0_36, %c0_37] : memref<25x8x256xf32, #tpu.memory_space<vmem>>, vector<1x8x256xf32>
    %79 = vector.shape_cast %78 : vector<1x8x256xf32> to vector<8x256xf32>
    %80 = arith.mulf %77, %79 : vector<8x256xf32>
    %81 = arith.addf %76, %80 : vector<8x256xf32>
    %c241_i32 = arith.constant 241 : i32
    %82 = tpu.dynamic_rotate %3 by %c241_i32 dim 1 : vector<8x256xf32>, i32 -> vector<8x256xf32>
    %c16 = arith.constant 16 : index
    %c0_38 = arith.constant 0 : index
    %c0_39 = arith.constant 0 : index
    %83 = vector.load %arg3[%c16, %c0_38, %c0_39] : memref<25x8x256xf32, #tpu.memory_space<vmem>>, vector<1x8x256xf32>
    %84 = vector.shape_cast %83 : vector<1x8x256xf32> to vector<8x256xf32>
    %85 = arith.mulf %82, %84 : vector<8x256xf32>
    %86 = arith.addf %81, %85 : vector<8x256xf32>
    %c240_i32 = arith.constant 240 : i32
    %87 = tpu.dynamic_rotate %3 by %c240_i32 dim 1 : vector<8x256xf32>, i32 -> vector<8x256xf32>
    %c17 = arith.constant 17 : index
    %c0_40 = arith.constant 0 : index
    %c0_41 = arith.constant 0 : index
    %88 = vector.load %arg3[%c17, %c0_40, %c0_41] : memref<25x8x256xf32, #tpu.memory_space<vmem>>, vector<1x8x256xf32>
    %89 = vector.shape_cast %88 : vector<1x8x256xf32> to vector<8x256xf32>
    %90 = arith.mulf %87, %89 : vector<8x256xf32>
    %91 = arith.addf %86, %90 : vector<8x256xf32>
    %c239_i32 = arith.constant 239 : i32
    %92 = tpu.dynamic_rotate %3 by %c239_i32 dim 1 : vector<8x256xf32>, i32 -> vector<8x256xf32>
    %c18 = arith.constant 18 : index
    %c0_42 = arith.constant 0 : index
    %c0_43 = arith.constant 0 : index
    %93 = vector.load %arg3[%c18, %c0_42, %c0_43] : memref<25x8x256xf32, #tpu.memory_space<vmem>>, vector<1x8x256xf32>
    %94 = vector.shape_cast %93 : vector<1x8x256xf32> to vector<8x256xf32>
    %95 = arith.mulf %92, %94 : vector<8x256xf32>
    %96 = arith.addf %91, %95 : vector<8x256xf32>
    %c238_i32 = arith.constant 238 : i32
    %97 = tpu.dynamic_rotate %3 by %c238_i32 dim 1 : vector<8x256xf32>, i32 -> vector<8x256xf32>
    %c19 = arith.constant 19 : index
    %c0_44 = arith.constant 0 : index
    %c0_45 = arith.constant 0 : index
    %98 = vector.load %arg3[%c19, %c0_44, %c0_45] : memref<25x8x256xf32, #tpu.memory_space<vmem>>, vector<1x8x256xf32>
    %99 = vector.shape_cast %98 : vector<1x8x256xf32> to vector<8x256xf32>
    %100 = arith.mulf %97, %99 : vector<8x256xf32>
    %101 = arith.addf %96, %100 : vector<8x256xf32>
    %c226_i32 = arith.constant 226 : i32
    %102 = tpu.dynamic_rotate %3 by %c226_i32 dim 1 : vector<8x256xf32>, i32 -> vector<8x256xf32>
    %c20 = arith.constant 20 : index
    %c0_46 = arith.constant 0 : index
    %c0_47 = arith.constant 0 : index
    %103 = vector.load %arg3[%c20, %c0_46, %c0_47] : memref<25x8x256xf32, #tpu.memory_space<vmem>>, vector<1x8x256xf32>
    %104 = vector.shape_cast %103 : vector<1x8x256xf32> to vector<8x256xf32>
    %105 = arith.mulf %102, %104 : vector<8x256xf32>
    %106 = arith.addf %101, %105 : vector<8x256xf32>
    %c225_i32 = arith.constant 225 : i32
    %107 = tpu.dynamic_rotate %3 by %c225_i32 dim 1 : vector<8x256xf32>, i32 -> vector<8x256xf32>
    %c21 = arith.constant 21 : index
    %c0_48 = arith.constant 0 : index
    %c0_49 = arith.constant 0 : index
    %108 = vector.load %arg3[%c21, %c0_48, %c0_49] : memref<25x8x256xf32, #tpu.memory_space<vmem>>, vector<1x8x256xf32>
    %109 = vector.shape_cast %108 : vector<1x8x256xf32> to vector<8x256xf32>
    %110 = arith.mulf %107, %109 : vector<8x256xf32>
    %111 = arith.addf %106, %110 : vector<8x256xf32>
    %c224_i32 = arith.constant 224 : i32
    %112 = tpu.dynamic_rotate %3 by %c224_i32 dim 1 : vector<8x256xf32>, i32 -> vector<8x256xf32>
    %c22 = arith.constant 22 : index
    %c0_50 = arith.constant 0 : index
    %c0_51 = arith.constant 0 : index
    %113 = vector.load %arg3[%c22, %c0_50, %c0_51] : memref<25x8x256xf32, #tpu.memory_space<vmem>>, vector<1x8x256xf32>
    %114 = vector.shape_cast %113 : vector<1x8x256xf32> to vector<8x256xf32>
    %115 = arith.mulf %112, %114 : vector<8x256xf32>
    %116 = arith.addf %111, %115 : vector<8x256xf32>
    %c223_i32 = arith.constant 223 : i32
    %117 = tpu.dynamic_rotate %3 by %c223_i32 dim 1 : vector<8x256xf32>, i32 -> vector<8x256xf32>
    %c23 = arith.constant 23 : index
    %c0_52 = arith.constant 0 : index
    %c0_53 = arith.constant 0 : index
    %118 = vector.load %arg3[%c23, %c0_52, %c0_53] : memref<25x8x256xf32, #tpu.memory_space<vmem>>, vector<1x8x256xf32>
    %119 = vector.shape_cast %118 : vector<1x8x256xf32> to vector<8x256xf32>
    %120 = arith.mulf %117, %119 : vector<8x256xf32>
    %121 = arith.addf %116, %120 : vector<8x256xf32>
    %c222_i32 = arith.constant 222 : i32
    %122 = tpu.dynamic_rotate %3 by %c222_i32 dim 1 : vector<8x256xf32>, i32 -> vector<8x256xf32>
    %c24 = arith.constant 24 : index
    %c0_54 = arith.constant 0 : index
    %c0_55 = arith.constant 0 : index
    %123 = vector.load %arg3[%c24, %c0_54, %c0_55] : memref<25x8x256xf32, #tpu.memory_space<vmem>>, vector<1x8x256xf32>
    %124 = vector.shape_cast %123 : vector<1x8x256xf32> to vector<8x256xf32>
    %125 = arith.mulf %122, %124 : vector<8x256xf32>
    %126 = arith.addf %121, %125 : vector<8x256xf32>
    %c0_56 = arith.constant 0 : index
    %c0_57 = arith.constant 0 : index
    %127 = vector.load %arg4[%c0_56, %c0_57] : memref<8x1xf32, #tpu.memory_space<vmem>>, vector<8x1xf32>
    %128 = vector.broadcast %127 : vector<8x1xf32> to vector<8x256xf32>
    %129 = arith.addf %126, %128 : vector<8x256xf32>
    %c153_i32 = arith.constant 153 : i32
    %130 = tpu.dynamic_rotate %129 by %c153_i32 dim 1 : vector<8x256xf32>, i32 -> vector<8x256xf32>
    %c0_58 = arith.constant 0 : index
    %c0_59 = arith.constant 0 : index
    %c0_60 = arith.constant 0 : index
    %131 = vector.load %arg5[%c0_58, %c0_59, %c0_60] : memref<49x8x256xf32, #tpu.memory_space<vmem>>, vector<1x8x256xf32>
    %132 = vector.shape_cast %131 : vector<1x8x256xf32> to vector<8x256xf32>
    %133 = arith.mulf %130, %132 : vector<8x256xf32>
    %c150_i32 = arith.constant 150 : i32
    %134 = tpu.dynamic_rotate %129 by %c150_i32 dim 1 : vector<8x256xf32>, i32 -> vector<8x256xf32>
    %c1_61 = arith.constant 1 : index
    %c0_62 = arith.constant 0 : index
    %c0_63 = arith.constant 0 : index
    %135 = vector.load %arg5[%c1_61, %c0_62, %c0_63] : memref<49x8x256xf32, #tpu.memory_space<vmem>>, vector<1x8x256xf32>
    %136 = vector.shape_cast %135 : vector<1x8x256xf32> to vector<8x256xf32>
    %137 = arith.mulf %134, %136 : vector<8x256xf32>
    %138 = arith.addf %133, %137 : vector<8x256xf32>
    %c147_i32 = arith.constant 147 : i32
    %139 = tpu.dynamic_rotate %129 by %c147_i32 dim 1 : vector<8x256xf32>, i32 -> vector<8x256xf32>
    %c2_64 = arith.constant 2 : index
    %c0_65 = arith.constant 0 : index
    %c0_66 = arith.constant 0 : index
    %140 = vector.load %arg5[%c2_64, %c0_65, %c0_66] : memref<49x8x256xf32, #tpu.memory_space<vmem>>, vector<1x8x256xf32>
    %141 = vector.shape_cast %140 : vector<1x8x256xf32> to vector<8x256xf32>
    %142 = arith.mulf %139, %141 : vector<8x256xf32>
    %143 = arith.addf %138, %142 : vector<8x256xf32>
    %c144_i32 = arith.constant 144 : i32
    %144 = tpu.dynamic_rotate %129 by %c144_i32 dim 1 : vector<8x256xf32>, i32 -> vector<8x256xf32>
    %c3_67 = arith.constant 3 : index
    %c0_68 = arith.constant 0 : index
    %c0_69 = arith.constant 0 : index
    %145 = vector.load %arg5[%c3_67, %c0_68, %c0_69] : memref<49x8x256xf32, #tpu.memory_space<vmem>>, vector<1x8x256xf32>
    %146 = vector.shape_cast %145 : vector<1x8x256xf32> to vector<8x256xf32>
    %147 = arith.mulf %144, %146 : vector<8x256xf32>
    %148 = arith.addf %143, %147 : vector<8x256xf32>
    %c141_i32 = arith.constant 141 : i32
    %149 = tpu.dynamic_rotate %129 by %c141_i32 dim 1 : vector<8x256xf32>, i32 -> vector<8x256xf32>
    %c4_70 = arith.constant 4 : index
    %c0_71 = arith.constant 0 : index
    %c0_72 = arith.constant 0 : index
    %150 = vector.load %arg5[%c4_70, %c0_71, %c0_72] : memref<49x8x256xf32, #tpu.memory_space<vmem>>, vector<1x8x256xf32>
    %151 = vector.shape_cast %150 : vector<1x8x256xf32> to vector<8x256xf32>
    %152 = arith.mulf %149, %151 : vector<8x256xf32>
    %153 = arith.addf %148, %152 : vector<8x256xf32>
    %c138_i32 = arith.constant 138 : i32
    %154 = tpu.dynamic_rotate %129 by %c138_i32 dim 1 : vector<8x256xf32>, i32 -> vector<8x256xf32>
    %c5_73 = arith.constant 5 : index
    %c0_74 = arith.constant 0 : index
    %c0_75 = arith.constant 0 : index
    %155 = vector.load %arg5[%c5_73, %c0_74, %c0_75] : memref<49x8x256xf32, #tpu.memory_space<vmem>>, vector<1x8x256xf32>
    %156 = vector.shape_cast %155 : vector<1x8x256xf32> to vector<8x256xf32>
    %157 = arith.mulf %154, %156 : vector<8x256xf32>
    %158 = arith.addf %153, %157 : vector<8x256xf32>
    %c135_i32 = arith.constant 135 : i32
    %159 = tpu.dynamic_rotate %129 by %c135_i32 dim 1 : vector<8x256xf32>, i32 -> vector<8x256xf32>
    %c6_76 = arith.constant 6 : index
    %c0_77 = arith.constant 0 : index
    %c0_78 = arith.constant 0 : index
    %160 = vector.load %arg5[%c6_76, %c0_77, %c0_78] : memref<49x8x256xf32, #tpu.memory_space<vmem>>, vector<1x8x256xf32>
    %161 = vector.shape_cast %160 : vector<1x8x256xf32> to vector<8x256xf32>
    %162 = arith.mulf %159, %161 : vector<8x256xf32>
    %163 = arith.addf %158, %162 : vector<8x256xf32>
    %c105_i32 = arith.constant 105 : i32
    %164 = tpu.dynamic_rotate %129 by %c105_i32 dim 1 : vector<8x256xf32>, i32 -> vector<8x256xf32>
    %c7_79 = arith.constant 7 : index
    %c0_80 = arith.constant 0 : index
    %c0_81 = arith.constant 0 : index
    %165 = vector.load %arg5[%c7_79, %c0_80, %c0_81] : memref<49x8x256xf32, #tpu.memory_space<vmem>>, vector<1x8x256xf32>
    %166 = vector.shape_cast %165 : vector<1x8x256xf32> to vector<8x256xf32>
    %167 = arith.mulf %164, %166 : vector<8x256xf32>
    %168 = arith.addf %163, %167 : vector<8x256xf32>
    %c102_i32 = arith.constant 102 : i32
    %169 = tpu.dynamic_rotate %129 by %c102_i32 dim 1 : vector<8x256xf32>, i32 -> vector<8x256xf32>
    %c8_82 = arith.constant 8 : index
    %c0_83 = arith.constant 0 : index
    %c0_84 = arith.constant 0 : index
    %170 = vector.load %arg5[%c8_82, %c0_83, %c0_84] : memref<49x8x256xf32, #tpu.memory_space<vmem>>, vector<1x8x256xf32>
    %171 = vector.shape_cast %170 : vector<1x8x256xf32> to vector<8x256xf32>
    %172 = arith.mulf %169, %171 : vector<8x256xf32>
    %173 = arith.addf %168, %172 : vector<8x256xf32>
    %c99_i32 = arith.constant 99 : i32
    %174 = tpu.dynamic_rotate %129 by %c99_i32 dim 1 : vector<8x256xf32>, i32 -> vector<8x256xf32>
    %c9_85 = arith.constant 9 : index
    %c0_86 = arith.constant 0 : index
    %c0_87 = arith.constant 0 : index
    %175 = vector.load %arg5[%c9_85, %c0_86, %c0_87] : memref<49x8x256xf32, #tpu.memory_space<vmem>>, vector<1x8x256xf32>
    %176 = vector.shape_cast %175 : vector<1x8x256xf32> to vector<8x256xf32>
    %177 = arith.mulf %174, %176 : vector<8x256xf32>
    %178 = arith.addf %173, %177 : vector<8x256xf32>
    %c96_i32 = arith.constant 96 : i32
    %179 = tpu.dynamic_rotate %129 by %c96_i32 dim 1 : vector<8x256xf32>, i32 -> vector<8x256xf32>
    %c10_88 = arith.constant 10 : index
    %c0_89 = arith.constant 0 : index
    %c0_90 = arith.constant 0 : index
    %180 = vector.load %arg5[%c10_88, %c0_89, %c0_90] : memref<49x8x256xf32, #tpu.memory_space<vmem>>, vector<1x8x256xf32>
    %181 = vector.shape_cast %180 : vector<1x8x256xf32> to vector<8x256xf32>
    %182 = arith.mulf %179, %181 : vector<8x256xf32>
    %183 = arith.addf %178, %182 : vector<8x256xf32>
    %c93_i32 = arith.constant 93 : i32
    %184 = tpu.dynamic_rotate %129 by %c93_i32 dim 1 : vector<8x256xf32>, i32 -> vector<8x256xf32>
    %c11_91 = arith.constant 11 : index
    %c0_92 = arith.constant 0 : index
    %c0_93 = arith.constant 0 : index
    %185 = vector.load %arg5[%c11_91, %c0_92, %c0_93] : memref<49x8x256xf32, #tpu.memory_space<vmem>>, vector<1x8x256xf32>
    %186 = vector.shape_cast %185 : vector<1x8x256xf32> to vector<8x256xf32>
    %187 = arith.mulf %184, %186 : vector<8x256xf32>
    %188 = arith.addf %183, %187 : vector<8x256xf32>
    %c90_i32 = arith.constant 90 : i32
    %189 = tpu.dynamic_rotate %129 by %c90_i32 dim 1 : vector<8x256xf32>, i32 -> vector<8x256xf32>
    %c12_94 = arith.constant 12 : index
    %c0_95 = arith.constant 0 : index
    %c0_96 = arith.constant 0 : index
    %190 = vector.load %arg5[%c12_94, %c0_95, %c0_96] : memref<49x8x256xf32, #tpu.memory_space<vmem>>, vector<1x8x256xf32>
    %191 = vector.shape_cast %190 : vector<1x8x256xf32> to vector<8x256xf32>
    %192 = arith.mulf %189, %191 : vector<8x256xf32>
    %193 = arith.addf %188, %192 : vector<8x256xf32>
    %c87_i32 = arith.constant 87 : i32
    %194 = tpu.dynamic_rotate %129 by %c87_i32 dim 1 : vector<8x256xf32>, i32 -> vector<8x256xf32>
    %c13_97 = arith.constant 13 : index
    %c0_98 = arith.constant 0 : index
    %c0_99 = arith.constant 0 : index
    %195 = vector.load %arg5[%c13_97, %c0_98, %c0_99] : memref<49x8x256xf32, #tpu.memory_space<vmem>>, vector<1x8x256xf32>
    %196 = vector.shape_cast %195 : vector<1x8x256xf32> to vector<8x256xf32>
    %197 = arith.mulf %194, %196 : vector<8x256xf32>
    %198 = arith.addf %193, %197 : vector<8x256xf32>
    %c57_i32 = arith.constant 57 : i32
    %199 = tpu.dynamic_rotate %129 by %c57_i32 dim 1 : vector<8x256xf32>, i32 -> vector<8x256xf32>
    %c14_100 = arith.constant 14 : index
    %c0_101 = arith.constant 0 : index
    %c0_102 = arith.constant 0 : index
    %200 = vector.load %arg5[%c14_100, %c0_101, %c0_102] : memref<49x8x256xf32, #tpu.memory_space<vmem>>, vector<1x8x256xf32>
    %201 = vector.shape_cast %200 : vector<1x8x256xf32> to vector<8x256xf32>
    %202 = arith.mulf %199, %201 : vector<8x256xf32>
    %203 = arith.addf %198, %202 : vector<8x256xf32>
    %c54_i32 = arith.constant 54 : i32
    %204 = tpu.dynamic_rotate %129 by %c54_i32 dim 1 : vector<8x256xf32>, i32 -> vector<8x256xf32>
    %c15_103 = arith.constant 15 : index
    %c0_104 = arith.constant 0 : index
    %c0_105 = arith.constant 0 : index
    %205 = vector.load %arg5[%c15_103, %c0_104, %c0_105] : memref<49x8x256xf32, #tpu.memory_space<vmem>>, vector<1x8x256xf32>
    %206 = vector.shape_cast %205 : vector<1x8x256xf32> to vector<8x256xf32>
    %207 = arith.mulf %204, %206 : vector<8x256xf32>
    %208 = arith.addf %203, %207 : vector<8x256xf32>
    %c51_i32 = arith.constant 51 : i32
    %209 = tpu.dynamic_rotate %129 by %c51_i32 dim 1 : vector<8x256xf32>, i32 -> vector<8x256xf32>
    %c16_106 = arith.constant 16 : index
    %c0_107 = arith.constant 0 : index
    %c0_108 = arith.constant 0 : index
    %210 = vector.load %arg5[%c16_106, %c0_107, %c0_108] : memref<49x8x256xf32, #tpu.memory_space<vmem>>, vector<1x8x256xf32>
    %211 = vector.shape_cast %210 : vector<1x8x256xf32> to vector<8x256xf32>
    %212 = arith.mulf %209, %211 : vector<8x256xf32>
    %213 = arith.addf %208, %212 : vector<8x256xf32>
    %c48_i32 = arith.constant 48 : i32
    %214 = tpu.dynamic_rotate %129 by %c48_i32 dim 1 : vector<8x256xf32>, i32 -> vector<8x256xf32>
    %c17_109 = arith.constant 17 : index
    %c0_110 = arith.constant 0 : index
    %c0_111 = arith.constant 0 : index
    %215 = vector.load %arg5[%c17_109, %c0_110, %c0_111] : memref<49x8x256xf32, #tpu.memory_space<vmem>>, vector<1x8x256xf32>
    %216 = vector.shape_cast %215 : vector<1x8x256xf32> to vector<8x256xf32>
    %217 = arith.mulf %214, %216 : vector<8x256xf32>
    %218 = arith.addf %213, %217 : vector<8x256xf32>
    %c45_i32 = arith.constant 45 : i32
    %219 = tpu.dynamic_rotate %129 by %c45_i32 dim 1 : vector<8x256xf32>, i32 -> vector<8x256xf32>
    %c18_112 = arith.constant 18 : index
    %c0_113 = arith.constant 0 : index
    %c0_114 = arith.constant 0 : index
    %220 = vector.load %arg5[%c18_112, %c0_113, %c0_114] : memref<49x8x256xf32, #tpu.memory_space<vmem>>, vector<1x8x256xf32>
    %221 = vector.shape_cast %220 : vector<1x8x256xf32> to vector<8x256xf32>
    %222 = arith.mulf %219, %221 : vector<8x256xf32>
    %223 = arith.addf %218, %222 : vector<8x256xf32>
    %c42_i32 = arith.constant 42 : i32
    %224 = tpu.dynamic_rotate %129 by %c42_i32 dim 1 : vector<8x256xf32>, i32 -> vector<8x256xf32>
    %c19_115 = arith.constant 19 : index
    %c0_116 = arith.constant 0 : index
    %c0_117 = arith.constant 0 : index
    %225 = vector.load %arg5[%c19_115, %c0_116, %c0_117] : memref<49x8x256xf32, #tpu.memory_space<vmem>>, vector<1x8x256xf32>
    %226 = vector.shape_cast %225 : vector<1x8x256xf32> to vector<8x256xf32>
    %227 = arith.mulf %224, %226 : vector<8x256xf32>
    %228 = arith.addf %223, %227 : vector<8x256xf32>
    %c39_i32 = arith.constant 39 : i32
    %229 = tpu.dynamic_rotate %129 by %c39_i32 dim 1 : vector<8x256xf32>, i32 -> vector<8x256xf32>
    %c20_118 = arith.constant 20 : index
    %c0_119 = arith.constant 0 : index
    %c0_120 = arith.constant 0 : index
    %230 = vector.load %arg5[%c20_118, %c0_119, %c0_120] : memref<49x8x256xf32, #tpu.memory_space<vmem>>, vector<1x8x256xf32>
    %231 = vector.shape_cast %230 : vector<1x8x256xf32> to vector<8x256xf32>
    %232 = arith.mulf %229, %231 : vector<8x256xf32>
    %233 = arith.addf %228, %232 : vector<8x256xf32>
    %c9_i32 = arith.constant 9 : i32
    %234 = tpu.dynamic_rotate %129 by %c9_i32 dim 1 : vector<8x256xf32>, i32 -> vector<8x256xf32>
    %c21_121 = arith.constant 21 : index
    %c0_122 = arith.constant 0 : index
    %c0_123 = arith.constant 0 : index
    %235 = vector.load %arg5[%c21_121, %c0_122, %c0_123] : memref<49x8x256xf32, #tpu.memory_space<vmem>>, vector<1x8x256xf32>
    %236 = vector.shape_cast %235 : vector<1x8x256xf32> to vector<8x256xf32>
    %237 = arith.mulf %234, %236 : vector<8x256xf32>
    %238 = arith.addf %233, %237 : vector<8x256xf32>
    %c6_i32 = arith.constant 6 : i32
    %239 = tpu.dynamic_rotate %129 by %c6_i32 dim 1 : vector<8x256xf32>, i32 -> vector<8x256xf32>
    %c22_124 = arith.constant 22 : index
    %c0_125 = arith.constant 0 : index
    %c0_126 = arith.constant 0 : index
    %240 = vector.load %arg5[%c22_124, %c0_125, %c0_126] : memref<49x8x256xf32, #tpu.memory_space<vmem>>, vector<1x8x256xf32>
    %241 = vector.shape_cast %240 : vector<1x8x256xf32> to vector<8x256xf32>
    %242 = arith.mulf %239, %241 : vector<8x256xf32>
    %243 = arith.addf %238, %242 : vector<8x256xf32>
    %c3_i32 = arith.constant 3 : i32
    %244 = tpu.dynamic_rotate %129 by %c3_i32 dim 1 : vector<8x256xf32>, i32 -> vector<8x256xf32>
    %c23_127 = arith.constant 23 : index
    %c0_128 = arith.constant 0 : index
    %c0_129 = arith.constant 0 : index
    %245 = vector.load %arg5[%c23_127, %c0_128, %c0_129] : memref<49x8x256xf32, #tpu.memory_space<vmem>>, vector<1x8x256xf32>
    %246 = vector.shape_cast %245 : vector<1x8x256xf32> to vector<8x256xf32>
    %247 = arith.mulf %244, %246 : vector<8x256xf32>
    %248 = arith.addf %243, %247 : vector<8x256xf32>
    %c24_130 = arith.constant 24 : index
    %c0_131 = arith.constant 0 : index
    %c0_132 = arith.constant 0 : index
    %249 = vector.load %arg5[%c24_130, %c0_131, %c0_132] : memref<49x8x256xf32, #tpu.memory_space<vmem>>, vector<1x8x256xf32>
    %250 = vector.shape_cast %249 : vector<1x8x256xf32> to vector<8x256xf32>
    %251 = arith.mulf %129, %250 : vector<8x256xf32>
    %252 = arith.addf %248, %251 : vector<8x256xf32>
    %c253_i32 = arith.constant 253 : i32
    %253 = tpu.dynamic_rotate %129 by %c253_i32 dim 1 : vector<8x256xf32>, i32 -> vector<8x256xf32>
    %c25 = arith.constant 25 : index
    %c0_133 = arith.constant 0 : index
    %c0_134 = arith.constant 0 : index
    %254 = vector.load %arg5[%c25, %c0_133, %c0_134] : memref<49x8x256xf32, #tpu.memory_space<vmem>>, vector<1x8x256xf32>
    %255 = vector.shape_cast %254 : vector<1x8x256xf32> to vector<8x256xf32>
    %256 = arith.mulf %253, %255 : vector<8x256xf32>
    %257 = arith.addf %252, %256 : vector<8x256xf32>
    %c250_i32 = arith.constant 250 : i32
    %258 = tpu.dynamic_rotate %129 by %c250_i32 dim 1 : vector<8x256xf32>, i32 -> vector<8x256xf32>
    %c26 = arith.constant 26 : index
    %c0_135 = arith.constant 0 : index
    %c0_136 = arith.constant 0 : index
    %259 = vector.load %arg5[%c26, %c0_135, %c0_136] : memref<49x8x256xf32, #tpu.memory_space<vmem>>, vector<1x8x256xf32>
    %260 = vector.shape_cast %259 : vector<1x8x256xf32> to vector<8x256xf32>
    %261 = arith.mulf %258, %260 : vector<8x256xf32>
    %262 = arith.addf %257, %261 : vector<8x256xf32>
    %c247_i32 = arith.constant 247 : i32
    %263 = tpu.dynamic_rotate %129 by %c247_i32 dim 1 : vector<8x256xf32>, i32 -> vector<8x256xf32>
    %c27 = arith.constant 27 : index
    %c0_137 = arith.constant 0 : index
    %c0_138 = arith.constant 0 : index
    %264 = vector.load %arg5[%c27, %c0_137, %c0_138] : memref<49x8x256xf32, #tpu.memory_space<vmem>>, vector<1x8x256xf32>
    %265 = vector.shape_cast %264 : vector<1x8x256xf32> to vector<8x256xf32>
    %266 = arith.mulf %263, %265 : vector<8x256xf32>
    %267 = arith.addf %262, %266 : vector<8x256xf32>
    %c217_i32 = arith.constant 217 : i32
    %268 = tpu.dynamic_rotate %129 by %c217_i32 dim 1 : vector<8x256xf32>, i32 -> vector<8x256xf32>
    %c28 = arith.constant 28 : index
    %c0_139 = arith.constant 0 : index
    %c0_140 = arith.constant 0 : index
    %269 = vector.load %arg5[%c28, %c0_139, %c0_140] : memref<49x8x256xf32, #tpu.memory_space<vmem>>, vector<1x8x256xf32>
    %270 = vector.shape_cast %269 : vector<1x8x256xf32> to vector<8x256xf32>
    %271 = arith.mulf %268, %270 : vector<8x256xf32>
    %272 = arith.addf %267, %271 : vector<8x256xf32>
    %c214_i32 = arith.constant 214 : i32
    %273 = tpu.dynamic_rotate %129 by %c214_i32 dim 1 : vector<8x256xf32>, i32 -> vector<8x256xf32>
    %c29 = arith.constant 29 : index
    %c0_141 = arith.constant 0 : index
    %c0_142 = arith.constant 0 : index
    %274 = vector.load %arg5[%c29, %c0_141, %c0_142] : memref<49x8x256xf32, #tpu.memory_space<vmem>>, vector<1x8x256xf32>
    %275 = vector.shape_cast %274 : vector<1x8x256xf32> to vector<8x256xf32>
    %276 = arith.mulf %273, %275 : vector<8x256xf32>
    %277 = arith.addf %272, %276 : vector<8x256xf32>
    %c211_i32 = arith.constant 211 : i32
    %278 = tpu.dynamic_rotate %129 by %c211_i32 dim 1 : vector<8x256xf32>, i32 -> vector<8x256xf32>
    %c30 = arith.constant 30 : index
    %c0_143 = arith.constant 0 : index
    %c0_144 = arith.constant 0 : index
    %279 = vector.load %arg5[%c30, %c0_143, %c0_144] : memref<49x8x256xf32, #tpu.memory_space<vmem>>, vector<1x8x256xf32>
    %280 = vector.shape_cast %279 : vector<1x8x256xf32> to vector<8x256xf32>
    %281 = arith.mulf %278, %280 : vector<8x256xf32>
    %282 = arith.addf %277, %281 : vector<8x256xf32>
    %c208_i32 = arith.constant 208 : i32
    %283 = tpu.dynamic_rotate %129 by %c208_i32 dim 1 : vector<8x256xf32>, i32 -> vector<8x256xf32>
    %c31 = arith.constant 31 : index
    %c0_145 = arith.constant 0 : index
    %c0_146 = arith.constant 0 : index
    %284 = vector.load %arg5[%c31, %c0_145, %c0_146] : memref<49x8x256xf32, #tpu.memory_space<vmem>>, vector<1x8x256xf32>
    %285 = vector.shape_cast %284 : vector<1x8x256xf32> to vector<8x256xf32>
    %286 = arith.mulf %283, %285 : vector<8x256xf32>
    %287 = arith.addf %282, %286 : vector<8x256xf32>
    %c205_i32 = arith.constant 205 : i32
    %288 = tpu.dynamic_rotate %129 by %c205_i32 dim 1 : vector<8x256xf32>, i32 -> vector<8x256xf32>
    %c32 = arith.constant 32 : index
    %c0_147 = arith.constant 0 : index
    %c0_148 = arith.constant 0 : index
    %289 = vector.load %arg5[%c32, %c0_147, %c0_148] : memref<49x8x256xf32, #tpu.memory_space<vmem>>, vector<1x8x256xf32>
    %290 = vector.shape_cast %289 : vector<1x8x256xf32> to vector<8x256xf32>
    %291 = arith.mulf %288, %290 : vector<8x256xf32>
    %292 = arith.addf %287, %291 : vector<8x256xf32>
    %c202_i32 = arith.constant 202 : i32
    %293 = tpu.dynamic_rotate %129 by %c202_i32 dim 1 : vector<8x256xf32>, i32 -> vector<8x256xf32>
    %c33 = arith.constant 33 : index
    %c0_149 = arith.constant 0 : index
    %c0_150 = arith.constant 0 : index
    %294 = vector.load %arg5[%c33, %c0_149, %c0_150] : memref<49x8x256xf32, #tpu.memory_space<vmem>>, vector<1x8x256xf32>
    %295 = vector.shape_cast %294 : vector<1x8x256xf32> to vector<8x256xf32>
    %296 = arith.mulf %293, %295 : vector<8x256xf32>
    %297 = arith.addf %292, %296 : vector<8x256xf32>
    %c199_i32 = arith.constant 199 : i32
    %298 = tpu.dynamic_rotate %129 by %c199_i32 dim 1 : vector<8x256xf32>, i32 -> vector<8x256xf32>
    %c34 = arith.constant 34 : index
    %c0_151 = arith.constant 0 : index
    %c0_152 = arith.constant 0 : index
    %299 = vector.load %arg5[%c34, %c0_151, %c0_152] : memref<49x8x256xf32, #tpu.memory_space<vmem>>, vector<1x8x256xf32>
    %300 = vector.shape_cast %299 : vector<1x8x256xf32> to vector<8x256xf32>
    %301 = arith.mulf %298, %300 : vector<8x256xf32>
    %302 = arith.addf %297, %301 : vector<8x256xf32>
    %c169_i32 = arith.constant 169 : i32
    %303 = tpu.dynamic_rotate %129 by %c169_i32 dim 1 : vector<8x256xf32>, i32 -> vector<8x256xf32>
    %c35 = arith.constant 35 : index
    %c0_153 = arith.constant 0 : index
    %c0_154 = arith.constant 0 : index
    %304 = vector.load %arg5[%c35, %c0_153, %c0_154] : memref<49x8x256xf32, #tpu.memory_space<vmem>>, vector<1x8x256xf32>
    %305 = vector.shape_cast %304 : vector<1x8x256xf32> to vector<8x256xf32>
    %306 = arith.mulf %303, %305 : vector<8x256xf32>
    %307 = arith.addf %302, %306 : vector<8x256xf32>
    %c166_i32 = arith.constant 166 : i32
    %308 = tpu.dynamic_rotate %129 by %c166_i32 dim 1 : vector<8x256xf32>, i32 -> vector<8x256xf32>
    %c36 = arith.constant 36 : index
    %c0_155 = arith.constant 0 : index
    %c0_156 = arith.constant 0 : index
    %309 = vector.load %arg5[%c36, %c0_155, %c0_156] : memref<49x8x256xf32, #tpu.memory_space<vmem>>, vector<1x8x256xf32>
    %310 = vector.shape_cast %309 : vector<1x8x256xf32> to vector<8x256xf32>
    %311 = arith.mulf %308, %310 : vector<8x256xf32>
    %312 = arith.addf %307, %311 : vector<8x256xf32>
    %c163_i32 = arith.constant 163 : i32
    %313 = tpu.dynamic_rotate %129 by %c163_i32 dim 1 : vector<8x256xf32>, i32 -> vector<8x256xf32>
    %c37 = arith.constant 37 : index
    %c0_157 = arith.constant 0 : index
    %c0_158 = arith.constant 0 : index
    %314 = vector.load %arg5[%c37, %c0_157, %c0_158] : memref<49x8x256xf32, #tpu.memory_space<vmem>>, vector<1x8x256xf32>
    %315 = vector.shape_cast %314 : vector<1x8x256xf32> to vector<8x256xf32>
    %316 = arith.mulf %313, %315 : vector<8x256xf32>
    %317 = arith.addf %312, %316 : vector<8x256xf32>
    %c160_i32 = arith.constant 160 : i32
    %318 = tpu.dynamic_rotate %129 by %c160_i32 dim 1 : vector<8x256xf32>, i32 -> vector<8x256xf32>
    %c38 = arith.constant 38 : index
    %c0_159 = arith.constant 0 : index
    %c0_160 = arith.constant 0 : index
    %319 = vector.load %arg5[%c38, %c0_159, %c0_160] : memref<49x8x256xf32, #tpu.memory_space<vmem>>, vector<1x8x256xf32>
    %320 = vector.shape_cast %319 : vector<1x8x256xf32> to vector<8x256xf32>
    %321 = arith.mulf %318, %320 : vector<8x256xf32>
    %322 = arith.addf %317, %321 : vector<8x256xf32>
    %c157_i32 = arith.constant 157 : i32
    %323 = tpu.dynamic_rotate %129 by %c157_i32 dim 1 : vector<8x256xf32>, i32 -> vector<8x256xf32>
    %c39 = arith.constant 39 : index
    %c0_161 = arith.constant 0 : index
    %c0_162 = arith.constant 0 : index
    %324 = vector.load %arg5[%c39, %c0_161, %c0_162] : memref<49x8x256xf32, #tpu.memory_space<vmem>>, vector<1x8x256xf32>
    %325 = vector.shape_cast %324 : vector<1x8x256xf32> to vector<8x256xf32>
    %326 = arith.mulf %323, %325 : vector<8x256xf32>
    %327 = arith.addf %322, %326 : vector<8x256xf32>
    %c154_i32 = arith.constant 154 : i32
    %328 = tpu.dynamic_rotate %129 by %c154_i32 dim 1 : vector<8x256xf32>, i32 -> vector<8x256xf32>
    %c40 = arith.constant 40 : index
    %c0_163 = arith.constant 0 : index
    %c0_164 = arith.constant 0 : index
    %329 = vector.load %arg5[%c40, %c0_163, %c0_164] : memref<49x8x256xf32, #tpu.memory_space<vmem>>, vector<1x8x256xf32>
    %330 = vector.shape_cast %329 : vector<1x8x256xf32> to vector<8x256xf32>
    %331 = arith.mulf %328, %330 : vector<8x256xf32>
    %332 = arith.addf %327, %331 : vector<8x256xf32>
    %c151_i32 = arith.constant 151 : i32
    %333 = tpu.dynamic_rotate %129 by %c151_i32 dim 1 : vector<8x256xf32>, i32 -> vector<8x256xf32>
    %c41 = arith.constant 41 : index
    %c0_165 = arith.constant 0 : index
    %c0_166 = arith.constant 0 : index
    %334 = vector.load %arg5[%c41, %c0_165, %c0_166] : memref<49x8x256xf32, #tpu.memory_space<vmem>>, vector<1x8x256xf32>
    %335 = vector.shape_cast %334 : vector<1x8x256xf32> to vector<8x256xf32>
    %336 = arith.mulf %333, %335 : vector<8x256xf32>
    %337 = arith.addf %332, %336 : vector<8x256xf32>
    %c121_i32 = arith.constant 121 : i32
    %338 = tpu.dynamic_rotate %129 by %c121_i32 dim 1 : vector<8x256xf32>, i32 -> vector<8x256xf32>
    %c42 = arith.constant 42 : index
    %c0_167 = arith.constant 0 : index
    %c0_168 = arith.constant 0 : index
    %339 = vector.load %arg5[%c42, %c0_167, %c0_168] : memref<49x8x256xf32, #tpu.memory_space<vmem>>, vector<1x8x256xf32>
    %340 = vector.shape_cast %339 : vector<1x8x256xf32> to vector<8x256xf32>
    %341 = arith.mulf %338, %340 : vector<8x256xf32>
    %342 = arith.addf %337, %341 : vector<8x256xf32>
    %c118_i32 = arith.constant 118 : i32
    %343 = tpu.dynamic_rotate %129 by %c118_i32 dim 1 : vector<8x256xf32>, i32 -> vector<8x256xf32>
    %c43 = arith.constant 43 : index
    %c0_169 = arith.constant 0 : index
    %c0_170 = arith.constant 0 : index
    %344 = vector.load %arg5[%c43, %c0_169, %c0_170] : memref<49x8x256xf32, #tpu.memory_space<vmem>>, vector<1x8x256xf32>
    %345 = vector.shape_cast %344 : vector<1x8x256xf32> to vector<8x256xf32>
    %346 = arith.mulf %343, %345 : vector<8x256xf32>
    %347 = arith.addf %342, %346 : vector<8x256xf32>
    %c115_i32 = arith.constant 115 : i32
    %348 = tpu.dynamic_rotate %129 by %c115_i32 dim 1 : vector<8x256xf32>, i32 -> vector<8x256xf32>
    %c44 = arith.constant 44 : index
    %c0_171 = arith.constant 0 : index
    %c0_172 = arith.constant 0 : index
    %349 = vector.load %arg5[%c44, %c0_171, %c0_172] : memref<49x8x256xf32, #tpu.memory_space<vmem>>, vector<1x8x256xf32>
    %350 = vector.shape_cast %349 : vector<1x8x256xf32> to vector<8x256xf32>
    %351 = arith.mulf %348, %350 : vector<8x256xf32>
    %352 = arith.addf %347, %351 : vector<8x256xf32>
    %c112_i32 = arith.constant 112 : i32
    %353 = tpu.dynamic_rotate %129 by %c112_i32 dim 1 : vector<8x256xf32>, i32 -> vector<8x256xf32>
    %c45 = arith.constant 45 : index
    %c0_173 = arith.constant 0 : index
    %c0_174 = arith.constant 0 : index
    %354 = vector.load %arg5[%c45, %c0_173, %c0_174] : memref<49x8x256xf32, #tpu.memory_space<vmem>>, vector<1x8x256xf32>
    %355 = vector.shape_cast %354 : vector<1x8x256xf32> to vector<8x256xf32>
    %356 = arith.mulf %353, %355 : vector<8x256xf32>
    %357 = arith.addf %352, %356 : vector<8x256xf32>
    %c109_i32 = arith.constant 109 : i32
    %358 = tpu.dynamic_rotate %129 by %c109_i32 dim 1 : vector<8x256xf32>, i32 -> vector<8x256xf32>
    %c46 = arith.constant 46 : index
    %c0_175 = arith.constant 0 : index
    %c0_176 = arith.constant 0 : index
    %359 = vector.load %arg5[%c46, %c0_175, %c0_176] : memref<49x8x256xf32, #tpu.memory_space<vmem>>, vector<1x8x256xf32>
    %360 = vector.shape_cast %359 : vector<1x8x256xf32> to vector<8x256xf32>
    %361 = arith.mulf %358, %360 : vector<8x256xf32>
    %362 = arith.addf %357, %361 : vector<8x256xf32>
    %c106_i32 = arith.constant 106 : i32
    %363 = tpu.dynamic_rotate %129 by %c106_i32 dim 1 : vector<8x256xf32>, i32 -> vector<8x256xf32>
    %c47 = arith.constant 47 : index
    %c0_177 = arith.constant 0 : index
    %c0_178 = arith.constant 0 : index
    %364 = vector.load %arg5[%c47, %c0_177, %c0_178] : memref<49x8x256xf32, #tpu.memory_space<vmem>>, vector<1x8x256xf32>
    %365 = vector.shape_cast %364 : vector<1x8x256xf32> to vector<8x256xf32>
    %366 = arith.mulf %363, %365 : vector<8x256xf32>
    %367 = arith.addf %362, %366 : vector<8x256xf32>
    %c103_i32 = arith.constant 103 : i32
    %368 = tpu.dynamic_rotate %129 by %c103_i32 dim 1 : vector<8x256xf32>, i32 -> vector<8x256xf32>
    %c48 = arith.constant 48 : index
    %c0_179 = arith.constant 0 : index
    %c0_180 = arith.constant 0 : index
    %369 = vector.load %arg5[%c48, %c0_179, %c0_180] : memref<49x8x256xf32, #tpu.memory_space<vmem>>, vector<1x8x256xf32>
    %370 = vector.shape_cast %369 : vector<1x8x256xf32> to vector<8x256xf32>
    %371 = arith.mulf %368, %370 : vector<8x256xf32>
    %372 = arith.addf %367, %371 : vector<8x256xf32>
    %c0_181 = arith.constant 0 : index
    %c0_182 = arith.constant 0 : index
    %373 = vector.load %arg6[%c0_181, %c0_182] : memref<8x1xf32, #tpu.memory_space<vmem>>, vector<8x1xf32>
    %374 = vector.broadcast %373 : vector<8x1xf32> to vector<8x256xf32>
    %375 = arith.addf %372, %374 : vector<8x256xf32>
    %c0_183 = arith.constant 0 : index
    %c0_184 = arith.constant 0 : index
    %376 = vector.load %arg7[%c0_183, %c0_184] : memref<12x4xf32, #tpu.memory_space<vmem>>, vector<12x4xf32>
    %cst = arith.constant dense<0.000000e+00> : vector<12x256xf32>
    %377 = tpu.matmul %376, %1, %cst {dimension_numbers = #tpu.dot_dimension_numbers<[1], [0], [0], [1], [0, 0, 1, 1], [], []>, precision = #tpu.contract_precision<fp32>} : vector<12x4xf32>, vector<4x256xf32>, vector<12x256xf32> -> vector<12x256xf32>
    %c0_185 = arith.constant 0 : index
    %c0_186 = arith.constant 0 : index
    %378 = vector.load %arg8[%c0_185, %c0_186] : memref<12x8xf32, #tpu.memory_space<vmem>>, vector<12x8xf32>
    %cst_187 = arith.constant dense<0.000000e+00> : vector<12x256xf32>
    %379 = tpu.matmul %378, %129, %cst_187 {dimension_numbers = #tpu.dot_dimension_numbers<[1], [0], [0], [1], [0, 0, 1, 1], [], []>, precision = #tpu.contract_precision<fp32>} : vector<12x8xf32>, vector<8x256xf32>, vector<12x256xf32> -> vector<12x256xf32>
    %380 = arith.addf %377, %379 : vector<12x256xf32>
    %c0_188 = arith.constant 0 : index
    %c0_189 = arith.constant 0 : index
    %381 = vector.load %arg9[%c0_188, %c0_189] : memref<12x8xf32, #tpu.memory_space<vmem>>, vector<12x8xf32>
    %cst_190 = arith.constant dense<0.000000e+00> : vector<12x256xf32>
    %382 = tpu.matmul %381, %375, %cst_190 {dimension_numbers = #tpu.dot_dimension_numbers<[1], [0], [0], [1], [0, 0, 1, 1], [], []>, precision = #tpu.contract_precision<fp32>} : vector<12x8xf32>, vector<8x256xf32>, vector<12x256xf32> -> vector<12x256xf32>
    %383 = arith.addf %380, %382 : vector<12x256xf32>
    %c0_191 = arith.constant 0 : index
    %c0_192 = arith.constant 0 : index
    %384 = vector.load %arg10[%c0_191, %c0_192] : memref<12x1xf32, #tpu.memory_space<vmem>>, vector<12x1xf32>
    %385 = vector.broadcast %384 : vector<12x1xf32> to vector<12x256xf32>
    %386 = arith.addf %383, %385 : vector<12x256xf32>
    %c0_193 = arith.constant 0 : index
    %c0_194 = arith.constant 0 : index
    %c0_195 = arith.constant 0 : index
    %387 = vector.load %arg11[%c0_193, %c0_194, %c0_195] : memref<1x12x256xf32, #tpu.memory_space<vmem>>, vector<1x12x256xf32>
    %388 = vector.shape_cast %387 : vector<1x12x256xf32> to vector<12x256xf32>
    %389 = vector.shape_cast %386 : vector<12x256xf32> to vector<1x12x256xf32>
    tpu.vector_store %arg11[%c0_193, %c0_194, %c0_195], %389 {strides = array<i32>} : memref<1x12x256xf32, #tpu.memory_space<vmem>>, vector<1x12x256xf32>,
    return
  }
  func.func @transform_0(%arg0: i32) -> (i32, i32, i32) {
    %c0_i32 = arith.constant 0 : i32
    %c0_i32_0 = arith.constant 0 : i32
    %c0_i32_1 = arith.constant 0 : i32
    return %arg0, %c0_i32, %c0_i32_0 : i32, i32, i32
  }
  func.func @transform_1(%arg0: i32) -> (i32, i32, i32) {
    %c0_i32 = arith.constant 0 : i32
    %c0_i32_0 = arith.constant 0 : i32
    %c0_i32_1 = arith.constant 0 : i32
    return %arg0, %c0_i32, %c0_i32_0 : i32, i32, i32
  }
  func.func @transform_2(%arg0: i32) -> (i32, i32, i32) {
    %c0_i32 = arith.constant 0 : i32
    %c0_i32_0 = arith.constant 0 : i32
    %c0_i32_1 = arith.constant 0 : i32
    %c0_i32_2 = arith.constant 0 : i32
    return %c0_i32, %c0_i32_0, %c0_i32_1 : i32, i32, i32
  }
  func.func @transform_3(%arg0: i32) -> (i32, i32) {
    %c0_i32 = arith.constant 0 : i32
    %c0_i32_0 = arith.constant 0 : i32
    %c0_i32_1 = arith.constant 0 : i32
    return %c0_i32, %c0_i32_0 : i32, i32
  }
  func.func @transform_4(%arg0: i32) -> (i32, i32, i32) {
    %c0_i32 = arith.constant 0 : i32
    %c0_i32_0 = arith.constant 0 : i32
    %c0_i32_1 = arith.constant 0 : i32
    %c0_i32_2 = arith.constant 0 : i32
    return %c0_i32, %c0_i32_0, %c0_i32_1 : i32, i32, i32
  }
  func.func @transform_5(%arg0: i32) -> (i32, i32) {
    %c0_i32 = arith.constant 0 : i32
    %c0_i32_0 = arith.constant 0 : i32
    %c0_i32_1 = arith.constant 0 : i32
    return %c0_i32, %c0_i32_0 : i32, i32
  }
  func.func @transform_6(%arg0: i32) -> (i32, i32) {
    %c0_i32 = arith.constant 0 : i32
    %c0_i32_0 = arith.constant 0 : i32
    %c0_i32_1 = arith.constant 0 : i32
    return %c0_i32, %c0_i32_0 : i32, i32
  }
  func.func @transform_7(%arg0: i32) -> (i32, i32) {
    %c0_i32 = arith.constant 0 : i32
    %c0_i32_0 = arith.constant 0 : i32
    %c0_i32_1 = arith.constant 0 : i32
    return %c0_i32, %c0_i32_0 : i32, i32
  }
  func.func @transform_8(%arg0: i32) -> (i32, i32) {
    %c0_i32 = arith.constant 0 : i32
    %c0_i32_0 = arith.constant 0 : i32
    %c0_i32_1 = arith.constant 0 : i32
    return %c0_i32, %c0_i32_0 : i32, i32
  }
  func.func @transform_9(%arg0: i32) -> (i32, i32) {
    %c0_i32 = arith.constant 0 : i32
    %c0_i32_0 = arith.constant 0 : i32
    %c0_i32_1 = arith.constant 0 : i32
    return %c0_i32, %c0_i32_0 : i32, i32
  }
  func.func @transform_10(%arg0: i32) -> (i32, i32, i32) {
    %c0_i32 = arith.constant 0 : i32
    %c0_i32_0 = arith.constant 0 : i32
    %c0_i32_1 = arith.constant 0 : i32
    return %arg0, %c0_i32, %c0_i32_0 : i32, i32, i32
  }
}

</mosaic_0001>

<bundles_post_ra>
// kernel: tpu_custom_call.1
= control target key start
LH: loop header
LB: loop body
LE: loop exit
PB: predicated region body
PF: predicated region fallthrough
CT: control target
= control target key end

     0   :  { %15 = vsyncpa [#allocation3], 0  ;;  %s3781_s0 = inlined_call_operand.vmem [shape: f32[2,4,256], index: 0, kind: input, shape index: {}]   ;;  %s3782_s1 = inlined_call_operand.vmem [shape: f32[2,8,256], index: 1, kind: input, shape index: {}]   ;;  %s3783_s2 = inlined_call_operand.hbm [shape: f32[25,8,256], index: 2, kind: input, shape index: {}]   ;;  %s3784_s3 = inlined_call_operand.vmem [shape: f32[8,1], index: 3, kind: input, shape index: {}]   ;;  %s3785_s4 = inlined_call_operand.hbm [shape: f32[49,8,256], index: 4, kind: input, shape index: {}]   ;;  %s3786_s5 = inlined_call_operand.vmem [shape: f32[8,1], index: 5, kind: input, shape index: {}]   ;;  %s3787_s6 = inlined_call_operand.vmem [shape: f32[12,4], index: 6, kind: input, shape index: {}]   ;;  %s3788_s7 = inlined_call_operand.vmem [shape: f32[12,8], index: 7, kind: input, shape index: {}]   ;;  %s3789_s8 = inlined_call_operand.vmem [shape: f32[12,8], index: 8, kind: input, shape index: {}]   ;;  %s3790_s9 = inlined_call_operand.vmem [shape: f32[12,1], index: 9, kind: input, shape index: {}]   ;;  %s3791_s10 = inlined_call_operand.vmem [shape: f32[2,12,256], index: 10, kind: output, shape index: {}]  }
   0x1   :  { %16 = vsyncpa [#allocation5], 0  ;;  %s2984_s13 = smov 0  }
   0x2 LB: > { %s284_s16 = sshll.u32 %s3783_s2, 4  ;;  %s2657_s17 = sadd.s32 4294967295, %s2854_s13   ;;  %s2854_s13 = sphi %s2984_s13, %s22_s13   ;;  %s285_s16 = int_to_ptr.hbm [resolvable:$true] %s284_s16 }
   0x3   : > { %p2659_p0 = scmp.ge.s32.totalorder %s2854_s13, 1  ;;  %p273_p1 = scmp.lt.s32.totalorder %s2854_s13, 3 }
   0x4   : > { %p2692_p2 = scmp.eq.s32.totalorder %s2657_s17, 0  ;;  %s2856_s19 = smov [#allocation2]  }
   0x5   : > { %p2995_p3 = pnand %p2659_p0, %p273_p1  ;;  %s286_s20 = sshll.u32 %s2856_s19, 4  ;;  %s287_s20 = int_to_ptr.vmem [resolvable:$true] %s286_s20 }
   0x6   : > { %s301_s23 = sshll.u32 %s3785_s4, 4  ;;  %s2857_s24 = smov [#allocation4]   ;;  %s302_s23 = int_to_ptr.hbm [resolvable:$true] %s301_s23 }
   0x7   : > { %p2685_p4 = pneg %p2995_p3  ;;  %s303_s25 = sshll.u32 %s2857_s24, 4  ;;  %s304_s25 = int_to_ptr.vmem [resolvable:$true] %s303_s25 }
   0x8   : > { %s2858_s26 = smov 256   ;;  %s2859_s27 = smov 16  }
   0x9   : > { %p2686_p5 = pnand %p2692_p2, %p2685_p4  ;;  %350 = sbr.rel (%p2995_p3) target bundleno = 836 (0x344), region = 60 }
   0xb   : > { %2688 = dma.hbm_to_vmem [thread:$0]  (!%p2686_p5), %s285_s16, 6400, %s287_s20, [#allocation3], %s2858_s26, %s2858_s26, %s2859_s27  }
   0xc   : > { %2691 = dma.hbm_to_vmem [thread:$0]  (!%p2686_p5), %s302_s23, 12544, %s304_s25, [#allocation5], %s2858_s26, %s2858_s26, %s2859_s27  }
   0xe   : > { %2845 = dma.done.wait (%p2692_p2), [#allocation3], 6400  }
   0xf   : > { %2847 = vsyncadd (%p2692_p2), [#allocation3], 4294960896 }
  0x10   : > { %2849 = dma.done.wait (%p2692_p2), [#allocation5], 12544  }
  0x11   : > { %2851 = vsyncadd (%p2692_p2), [#allocation5], 4294954752  ;;  %p399_p6 = scmp.lt.s32.totalorder %s2657_s17, 1  ;;  %s2860_s12 = smov 33   ;;  %v421_v2 = vlaneseq  ;;  %v2878_v5 = vmov 0   ;;  %v438_v13 = vld [vmem:[#allocation2 + $0x10] sm:$0xff] }
  0x12   : > { %s2861_s14 = smov 34   ;;  %s2862_s15 = smov 32   ;;  %2777 = vset.pattern.permute.xlu0 %v2878_v5  ;;  %2778 = vset.pattern.permute.xlu2 %v2878_v5  ;;  %v439_v14 = vld [vmem:[#allocation2 + $0x18] sm:$0xff]  ;;  %v426_v15 = vld [vmem:[#allocation2] sm:$0xff]  ;;  %v427_v16 = vld [vmem:[#allocation2 + $0x8] sm:$0xff] }
  0x13   : > { %s3794_s17 = smov (!%p399_p6, %s2657_s17), 1  ;;  %s2863_s16 = smov 31   ;;  %v3063_v4 = vand.u32 127, %v421_v2  ;;  %2779 = vset.pattern.permute.xlu1 %v2878_v5  ;;  %v452_v19 = vld [vmem:[#allocation2 + $0x20] sm:$0xff]  ;;  %v453_v20 = vld [vmem:[#allocation2 + $0x28] sm:$0xff]  ;;  %v759_v30 = vld [vmem:[%s3784_s3] sm:$0xff] }
  0x14   : > { %s2675_s28 = sshll.u32 %s3794_s17, 4  ;;  %s2864_s18 = smov 30   ;;  %v466_v37 = vld [vmem:[#allocation2 + $0x30] sm:$0xff]  ;;  %v467_v38 = vld [vmem:[#allocation2 + $0x38] sm:$0xff]  ;;  %v480_v48 = vld [vmem:[#allocation2 + $0x40] sm:$0xff] }
  0x15   : > { %s408_s11 = scalar_lea.vmem %s3782_s1, %s2675_s28  ;;  %s2865_s19 = smov 18   ;;  %vm448_vm0 = vcmp.lt.s32.totalorder %v3063_v4, 32  ;;  %vm434_vm1 = vcmp.lt.s32.totalorder %v3063_v4, 33  ;;  %vm423_vm2 = vcmp.lt.s32.totalorder %v3063_v4, 34  ;;  %vm462_vm3 = vcmp.lt.s32.totalorder %v3063_v4, 31  ;;  %v481_v49 = vld [vmem:[#allocation2 + $0x48] sm:$0xff] }
  0x16   : > { %v3017_v0 = vld [vmem:[%s408_s11] sm:$0xff]  ;;  %v3023_v1 = vld [vmem:[%s408_s11 + $0x8] sm:$0xff]  ;;  %s2866_s20 = smov 17   ;;  %s2867_s21 = smov 16   ;;  %vm476_vm4 = vcmp.lt.s32.totalorder %v3063_v4, 30  ;;  %vm490_vm5 = vcmp.lt.s32.totalorder %v3063_v4, 18 }
  0x17   : > { %430 = vrot.lane.b32.xlu1 %v3017_v0, %s2860_s12  ;;  %417 = vrot.lane.b32.xlu0 %v3017_v0, %s2861_s14  ;;  %s2868_s22 = smov 15   ;;  %s2869_s23 = smov 14   ;;  %vm504_vm6 = vcmp.lt.s32.totalorder %v3063_v4, 17  ;;  %vm518_vm7 = vcmp.lt.s32.totalorder %v3063_v4, 16  ;;  %vm532_vm8 = vcmp.lt.s32.totalorder %v3063_v4, 15  ;;  %vm546_vm9 = vcmp.lt.s32.totalorder %v3063_v4, 14 }
  0x18   : > { %444 = vrot.lane.b32.xlu2 %v3017_v0, %s2862_s15  ;;  %s2870_s24 = smov 2   ;;  %s2871_s25 = smov 1   ;;  %vm560_vm10 = vcmp.lt.s32.totalorder %v3063_v4, 2  ;;  %vm574_vm11 = vcmp.lt.s32.totalorder %v3063_v4, 1  ;;  %vm595_vm12 = vcmp.lt.s32.totalorder %v3063_v4, 127  ;;  %vm609_vm13 = vcmp.lt.s32.totalorder %v3063_v4, 126 }
  0x19   : > { %s2872_s26 = smov 127   ;;  %s2873_s27 = smov 126   ;;  %vm623_vm14 = vcmp.lt.s32.totalorder %v3063_v4, 114  ;;  %vm637_vm15 = vcmp.lt.s32.totalorder %v3063_v4, 113 }
  0x1a   : > { %s2874_s28 = smov 114   ;;  %s2875_s29 = smov 113  }
  0x1b   : > { %s2876_s30 = smov 112   ;;  %s2877_s11 = smov 111  }
  0x1f   : > { %432 = vrot.lane.b32.xlu1 %v3023_v1, %s2860_s12  ;;  %419 = vrot.lane.b32.xlu0 %v3023_v1, %s2861_s14  ;;  %s2879_s12 = smov 110   ;;  %s2880_s14 = smov 98  }
  0x20   : > { %446 = vrot.lane.b32.xlu2 %v3023_v1, %s2862_s15 }
  0x27   : > { %460 = vrot.lane.b32.xlu1 %v3023_v1, %s2863_s16  ;;  %458 = vrot.lane.b32.xlu0 %v3017_v0, %s2863_s16  ;;  %s2881_s16 = smov 97  }
  0x28   : > { %472 = vrot.lane.b32.xlu2 %v3017_v0, %s2864_s18 }
  0x2f   : > { %486 = vrot.lane.b32.xlu1 %v3017_v0, %s2865_s19  ;;  %474 = vrot.lane.b32.xlu0 %v3023_v1, %s2864_s18  ;;  %s2882_s18 = smov 96  }
  0x30   : > { %488 = vrot.lane.b32.xlu2 %v3023_v1, %s2865_s19  ;;  %s2883_s19 = smov 95  }
  0x37   : > { %502 = vrot.lane.b32.xlu1 %v3023_v1, %s2866_s20  ;;  %500 = vrot.lane.b32.xlu0 %v3017_v0, %s2866_s20  ;;  %s2884_s20 = smov 94  }
  0x38   : > { %514 = vrot.lane.b32.xlu2 %v3017_v0, %s2867_s21 }
  0x3f   : > { %528 = vrot.lane.b32.xlu1 %v3017_v0, %s2868_s22  ;;  %516 = vrot.lane.b32.xlu0 %v3023_v1, %s2867_s21 }
  0x40   : > { %530 = vrot.lane.b32.xlu2 %v3023_v1, %s2868_s22  ;;  %s2896_s22 = smov 57  }
  0x47   : > { %544 = vrot.lane.b32.xlu1 %v3023_v1, %s2869_s23  ;;  %542 = vrot.lane.b32.xlu0 %v3017_v0, %s2869_s23  ;;  %s2897_s23 = smov 87  }
  0x48   : > { %556 = vrot.lane.b32.xlu2 %v3017_v0, %s2870_s24 }
  0x4f   : > { %570 = vrot.lane.b32.xlu1 %v3017_v0, %s2871_s25  ;;  %558 = vrot.lane.b32.xlu0 %v3023_v1, %s2870_s24  ;;  %s2898_s24 = smov 54  }
  0x50   : > { %572 = vrot.lane.b32.xlu2 %v3023_v1, %s2871_s25  ;;  %s2899_s25 = smov 48  }
  0x57   : > { %593 = vrot.lane.b32.xlu1 %v3023_v1, %s2872_s26  ;;  %591 = vrot.lane.b32.xlu0 %v3017_v0, %s2872_s26  ;;  %s2885_s26 = smov 25  }
  0x58   : > { %605 = vrot.lane.b32.xlu2 %v3017_v0, %s2873_s27 }
  0x5f   : > { %619 = vrot.lane.b32.xlu1 %v3017_v0, %s2874_s28  ;;  %607 = vrot.lane.b32.xlu0 %v3023_v1, %s2873_s27  ;;  %s2886_s27 = smov 19  }
  0x60   : > { %621 = vrot.lane.b32.xlu2 %v3023_v1, %s2874_s28  ;;  %s2887_s28 = smov 22  }
  0x67   : > { %635 = vrot.lane.b32.xlu1 %v3023_v1, %s2875_s29  ;;  %633 = vrot.lane.b32.xlu0 %v3017_v0, %s2875_s29  ;;  %s2888_s29 = smov 10  }
  0x68   : > { %647 = vrot.lane.b32.xlu2 %v3017_v0, %s2876_s30 }
  0x6f   : > { %661 = vrot.lane.b32.xlu1 %v3017_v0, %s2877_s11  ;;  %649 = vrot.lane.b32.xlu0 %v3023_v1, %s2876_s30 }
  0x70   : > { %663 = vrot.lane.b32.xlu2 %v3023_v1, %s2877_s11  ;;  %s2889_s11 = smov 13  }
  0x72   : > { %v445_v3 = vpop.permute.xlu2 %444 }
  0x77   : > { %677 = vrot.lane.b32.xlu1 %v3023_v1, %s2879_s12  ;;  %675 = vrot.lane.b32.xlu0 %v3017_v0, %s2879_s12  ;;  %s2890_s12 = smov 7  }
  0x78   : > { %689 = vrot.lane.b32.xlu2 %v3017_v0, %s2880_s14 }
  0x7a   : > { %v447_v6 = vpop.permute.xlu2 %446 }
  0x7b   : > { %v449_v7 = vsel %vm448_vm0, %v445_v3, %v447_v6  ;;  %v450_v8 = vsel %vm448_vm0, %v447_v6, %v445_v3 }
  0x7c   : > { %v454_v31 = vmul.f32 %v452_v19, %v450_v8  ;;  %v455_v32 = vmul.f32 %v453_v20, %v449_v7  ;;  %v509_v20 = vld [vmem:[#allocation2 + $0x68] sm:$0xff] }
  0x7f   : > { %703 = vrot.lane.b32.xlu1 %v3017_v0, %s2881_s16  ;;  %691 = vrot.lane.b32.xlu0 %v3023_v1, %s2880_s14  ;;  %s2891_s14 = smov 102  }
  0x80   : > { %705 = vrot.lane.b32.xlu2 %v3023_v1, %s2881_s16  ;;  %s2893_s16 = smov 99  }
  0x82   : > { %v473_v9 = vpop.permute.xlu2 %472 }
  0x87   : > { %719 = vrot.lane.b32.xlu1 %v3023_v1, %s2882_s18  ;;  %717 = vrot.lane.b32.xlu0 %v3017_v0, %s2882_s18 }
  0x88   : > { %731 = vrot.lane.b32.xlu2 %v3017_v0, %s2883_s19 }
  0x89   : > { %v431_v10 = vpop.permute.xlu1 %430  ;;  %v418_v11 = vpop.permute.xlu0 %417 }
  0x8a   : > { %v3081_v12 = vpop.permute.xlu2 %488 }
  0x8f   : > { %733 = vrot.lane.b32.xlu0 %v3023_v1, %s2883_s19  ;;  %745 = vrot.lane.b32.xlu1 %v3017_v0, %s2884_s20  ;;  %s2894_s19 = smov 93  }
  0x90   : > { %747 = vrot.lane.b32.xlu2 %v3023_v1, %s2884_s20  ;;  %s2895_s20 = smov 90  }
  0x91   : > { %v433_v17 = vpop.permute.xlu1 %432  ;;  %v420_v18 = vpop.permute.xlu0 %419 }
  0x92   : > { %v435_v21 = vsel %vm434_vm1, %v431_v10, %v433_v17  ;;  %v436_v22 = vsel %vm434_vm1, %v433_v17, %v431_v10  ;;  %v424_v23 = vsel %vm423_vm2, %v418_v11, %v420_v18  ;;  %v425_v24 = vsel %vm423_vm2, %v420_v18, %v418_v11  ;;  %v3088_v25 = vpop.permute.xlu2 %514  ;;  %v494_v11 = vld [vmem:[#allocation2 + $0x50] sm:$0xff]  ;;  %v508_v17 = vld [vmem:[#allocation2 + $0x60] sm:$0xff] }
  0x93   : > { %v440_v26 = vmul.f32 %v438_v13, %v436_v22  ;;  %v441_v27 = vmul.f32 %v439_v14, %v435_v21  ;;  %v428_v28 = vmul.f32 %v426_v15, %v425_v24  ;;  %v429_v29 = vmul.f32 %v427_v16, %v424_v23  ;;  %v495_v14 = vld [vmem:[#allocation2 + $0x58] sm:$0xff]  ;;  %v522_v23 = vld [vmem:[#allocation2 + $0x70] sm:$0xff] }
  0x94   : > { %vm651_vm1 = vcmp.lt.s32.totalorder %v3063_v4, 112  ;;  %vm665_vm2 = vcmp.lt.s32.totalorder %v3063_v4, 111 }
  0x95   : > { %v442_v33 = vadd.f32 %v440_v26, %v428_v28  ;;  %v443_v34 = vadd.f32 %v441_v27, %v429_v29  ;;  %v523_v27 = vld [vmem:[#allocation2 + $0x78] sm:$0xff] }
  0x97   : > { %762 = vperm.xlu0 %2777, %v759_v30   ;;  %v456_v35 = vadd.f32 %v454_v31, %v442_v33  ;;  %v457_v36 = vadd.f32 %v455_v32, %v443_v34 }
  0x99   : > { %v461_v39 = vpop.permute.xlu1 %460  ;;  %v459_v40 = vpop.permute.xlu0 %458 }
  0x9a   : > { %v463_v41 = vsel %vm462_vm3, %v459_v40, %v461_v39  ;;  %v464_v42 = vsel %vm462_vm3, %v461_v39, %v459_v40  ;;  %v3094_v43 = vpop.permute.xlu2 %530  ;;  %v550_v40 = vld [vmem:[#allocation2 + $0x90] sm:$0xff]  ;;  %vm679_vm3 = vcmp.lt.s32.totalorder %v3063_v4, 110 }
  0x9b   : > { %v468_v44 = vmul.f32 %v466_v37, %v464_v42  ;;  %v469_v45 = vmul.f32 %v467_v38, %v463_v41  ;;  %v537_v38 = vld [vmem:[#allocation2 + $0x88] sm:$0xff] }
  0x9d   : > { %v470_v46 = vadd.f32 %v468_v44, %v456_v35  ;;  %v471_v47 = vadd.f32 %v469_v45, %v457_v36  ;;  %v536_v35 = vld [vmem:[#allocation2 + $0x80] sm:$0xff]  ;;  %v551_v45 = vld [vmem:[#allocation2 + $0x98] sm:$0xff] }
  0xa1   : > { %v487_v50 = vpop.permute.xlu1 %486  ;;  %v475_v51 = vpop.permute.xlu0 %474 }
  0xa2   : > { %v477_v52 = vsel %vm476_vm4, %v473_v9, %v475_v51  ;;  %v478_v53 = vsel %vm476_vm4, %v475_v51, %v473_v9  ;;  %v3097_v56 = vpop.permute.xlu2 %556  ;;  %v492_v13 = vsel %vm490_vm5, %v3081_v12, %v487_v50  ;;  %v491_v15 = vsel %vm490_vm5, %v487_v50, %v3081_v12  ;;  %v564_v50 = vld [vmem:[#allocation2 + $0xa0] sm:$0xff] }
  0xa3   : > { %v482_v54 = vmul.f32 %v480_v48, %v478_v53  ;;  %v483_v55 = vmul.f32 %v481_v49, %v477_v52  ;;  %v496_v19 = vmul.f32 %v494_v11, %v492_v13  ;;  %v497_v22 = vmul.f32 %v495_v14, %v491_v15  ;;  %v565_v53 = vld [vmem:[#allocation2 + $0xa8] sm:$0xff]  ;;  %v579_v11 = vld [vmem:[#allocation2 + $0xb8] sm:$0xff] }
  0xa4   : > { %vm693_vm4 = vcmp.lt.s32.totalorder %v3063_v4, 98  ;;  %vm1451_vm5 = vcmask 64512  }
  0xa5   : > { %v484_v57 = vadd.f32 %v482_v54, %v470_v46  ;;  %v485_v58 = vadd.f32 %v483_v55, %v471_v47 }
  0xa7   : > { %v498_v31 = vadd.f32 %v496_v19, %v484_v57  ;;  %v499_v33 = vadd.f32 %v497_v22, %v485_v58  ;;  %v586_v19 = vld [vmem:[#allocation2 + $0xc8] sm:$0xff] }
  0xa9   : > { %v503_v59 = vpop.permute.xlu1 %502  ;;  %v501_v60 = vpop.permute.xlu0 %500 }
  0xaa   : > { %v3099_v61 = vpop.permute.xlu2 %572  ;;  %v506_v18 = vsel %vm504_vm6, %v503_v59, %v501_v60  ;;  %v505_v21 = vsel %vm504_vm6, %v501_v60, %v503_v59  ;;  %vm707_vm6 = vcmp.lt.s32.totalorder %v3063_v4, 97 }
  0xab   : > { %v510_v26 = vmul.f32 %v508_v17, %v506_v18  ;;  %v511_v28 = vmul.f32 %v509_v20, %v505_v21  ;;  %v585_v18 = vld [vmem:[#allocation2 + $0xc0] sm:$0xff]  ;;  %v599_v21 = vld [vmem:[#allocation2 + $0xd0] sm:$0xff] }
  0xad   : > { %v512_v37 = vadd.f32 %v510_v26, %v498_v31  ;;  %v513_v39 = vadd.f32 %v511_v28, %v499_v33  ;;  %v587_v26 = vmul.f32 %v585_v18, %v3017_v0  ;;  %v588_v28 = vmul.f32 %v586_v19, %v3023_v1  ;;  %v613_v31 = vld [vmem:[#allocation2 + $0xe0] sm:$0xff] }
  0xb1   : > { %v529_v62 = vpop.permute.xlu1 %528  ;;  %v517_v63 = vpop.permute.xlu0 %516 }
  0xb2   : > { %v3101_v2 = vpop.permute.xlu2 %605  ;;  %v520_v24 = vsel %vm518_vm7, %v517_v63, %v3088_v25  ;;  %v519_v12 = vsel %vm518_vm7, %v3088_v25, %v517_v63  ;;  %v534_v36 = vsel %vm532_vm8, %v3094_v43, %v529_v62  ;;  %v533_v25 = vsel %vm532_vm8, %v529_v62, %v3094_v43  ;;  %v578_v63 = vld [vmem:[#allocation2 + $0xb0] sm:$0xff] }
  0xb3   : > { %v524_v32 = vmul.f32 %v522_v23, %v520_v24  ;;  %v525_v34 = vmul.f32 %v523_v27, %v519_v12  ;;  %v538_v44 = vmul.f32 %v536_v35, %v534_v36  ;;  %v539_v49 = vmul.f32 %v537_v38, %v533_v25 }
  0xb4   : > { %vm721_vm8 = vcmp.lt.s32.totalorder %v3063_v4, 96 }
  0xb5   : > { %v526_v42 = vadd.f32 %v524_v32, %v512_v37  ;;  %v527_v48 = vadd.f32 %v525_v34, %v513_v39  ;;  %v614_v34 = vld [vmem:[#allocation2 + $0xe8] sm:$0xff]  ;;  %v627_v37 = vld [vmem:[#allocation2 + $0xf0] sm:$0xff]  ;;  %v628_v39 = vld [vmem:[#allocation2 + $0xf8] sm:$0xff] }
  0xb7   : > { %v540_v58 = vadd.f32 %v538_v44, %v526_v42  ;;  %v541_v60 = vadd.f32 %v539_v49, %v527_v48 }
  0xb9   : > { %v545_v3 = vpop.permute.xlu1 %544  ;;  %v543_v5 = vpop.permute.xlu0 %542 }
  0xba   : > { %v3105_v8 = vpop.permute.xlu2 %621  ;;  %v548_v41 = vsel %vm546_vm9, %v545_v3, %v543_v5  ;;  %v547_v46 = vsel %vm546_vm9, %v543_v5, %v545_v3  ;;  %vm735_vm9 = vcmp.lt.s32.totalorder %v3063_v4, 95 }
  0xbb   : > { %v552_v52 = vmul.f32 %v550_v40, %v548_v41  ;;  %v553_v54 = vmul.f32 %v551_v45, %v547_v46  ;;  %v641_v45 = vld [vmem:[#allocation2 + $0x100] sm:$0xff]  ;;  %v642_v46 = vld [vmem:[#allocation2 + $0x108] sm:$0xff] }
  0xbd   : > { %v554_v5 = vadd.f32 %v552_v52, %v540_v58  ;;  %v555_v14 = vadd.f32 %v553_v54, %v541_v60 }
  0xc1   : > { %v3103_v6 = vpop.permute.xlu1 %570  ;;  %v559_v7 = vpop.permute.xlu0 %558 }
  0xc2   : > { %v3116_v16 = vpop.permute.xlu2 %647  ;;  %v562_v51 = vsel %vm560_vm10, %v559_v7, %v3097_v56  ;;  %v561_v43 = vsel %vm560_vm10, %v3097_v56, %v559_v7  ;;  %v576_v3 = vsel %vm574_vm11, %v3099_v61, %v3103_v6  ;;  %v575_v13 = vsel %vm574_vm11, %v3103_v6, %v3099_v61  ;;  %v600_v6 = vld [vmem:[#allocation2 + $0xd8] sm:$0xff] }
  0xc3   : > { %v566_v59 = vmul.f32 %v564_v50, %v562_v51  ;;  %v567_v62 = vmul.f32 %v565_v53, %v561_v43  ;;  %v580_v7 = vmul.f32 %v578_v63, %v576_v3  ;;  %v581_v17 = vmul.f32 %v579_v11, %v575_v13  ;;  %v655_v53 = vld [vmem:[#allocation2 + $0x110] sm:$0xff]  ;;  %v656_v43 = vld [vmem:[#allocation2 + $0x118] sm:$0xff]  ;;  %v670_v3 = vld [vmem:[#allocation2 + $0x128] sm:$0xff] }
  0xc4   : > { %vm749_vm10 = vcmp.lt.s32.totalorder %v3063_v4, 94  ;;  %vm771_vm11 = vcmp.lt.s32.totalorder %v3063_v4, 25 }
  0xc5   : > { %v568_v56 = vadd.f32 %v566_v59, %v554_v5  ;;  %v569_v15 = vadd.f32 %v567_v62, %v555_v14  ;;  %v669_v62 = vld [vmem:[#allocation2 + $0x120] sm:$0xff] }
  0xc7   : > { %v582_v61 = vadd.f32 %v580_v7, %v568_v56  ;;  %v583_v12 = vadd.f32 %v581_v17, %v569_v15  ;;  %v683_v7 = vld [vmem:[#allocation2 + $0x130] sm:$0xff]  ;;  %v684_v15 = vld [vmem:[#allocation2 + $0x138] sm:$0xff] }
  0xc9   : > { %v3108_v9 = vpop.permute.xlu1 %593  ;;  %v3110_v10 = vpop.permute.xlu0 %591  ;;  %v590_v36 = vadd.f32 %v588_v28, %v583_v12 }
  0xca   : > { %v3133_v47 = vpop.permute.xlu2 %663  ;;  %v596_v22 = vsel %vm595_vm12, %v3110_v10, %v3108_v9  ;;  %v597_v27 = vsel %vm595_vm12, %v3108_v9, %v3110_v10  ;;  %v589_v9 = vadd.f32 %v587_v26, %v582_v61  ;;  %vm782_vm12 = vcmp.lt.s32.totalorder %v3063_v4, 22 }
  0xcb   : > { %v601_v33 = vmul.f32 %v599_v21, %v596_v22  ;;  %v602_v0 = vmul.f32 %v600_v6, %v597_v27 }
  0xcd   : > { %v603_v25 = vadd.f32 %v601_v33, %v589_v9  ;;  %v604_v41 = vadd.f32 %v602_v0, %v590_v36  ;;  %v712_v0 = vld [vmem:[#allocation2 + $0x158] sm:$0xff] }
  0xd1   : > { %v3125_v29 = vpop.permute.xlu1 %619  ;;  %v3127_v30 = vpop.permute.xlu0 %607 }
  0xd2   : > { %v3144_v20 = vpop.permute.xlu2 %689  ;;  %v610_v32 = vsel %vm609_vm13, %v3101_v2, %v3127_v30  ;;  %v611_v35 = vsel %vm609_vm13, %v3127_v30, %v3101_v2  ;;  %v624_v38 = vsel %vm623_vm14, %v3125_v29, %v3105_v8  ;;  %v625_v40 = vsel %vm623_vm14, %v3105_v8, %v3125_v29 }
  0xd3   : > { %v615_v10 = vmul.f32 %v613_v31, %v610_v32  ;;  %v616_v1 = vmul.f32 %v614_v34, %v611_v35  ;;  %v629_v44 = vmul.f32 %v627_v37, %v624_v38  ;;  %v630_v51 = vmul.f32 %v628_v39, %v625_v40  ;;  %v711_v35 = vld [vmem:[#allocation2 + $0x150] sm:$0xff]  ;;  %v726_v39 = vld [vmem:[#allocation2 + $0x168] sm:$0xff] }
  0xd4   : > { %vm851_vm13 = vcmp.lt.s32.totalorder %v3063_v4, 7  ;;  %vm823_vm14 = vcmp.lt.s32.totalorder %v3063_v4, 13 }
  0xd5   : > { %v617_v42 = vadd.f32 %v615_v10, %v603_v25  ;;  %v618_v50 = vadd.f32 %v616_v1, %v604_v41  ;;  %v725_v25 = vld [vmem:[#allocation2 + $0x160] sm:$0xff] }
  0xd7   : > { %v631_v59 = vadd.f32 %v629_v44, %v617_v42 }
  0xd9   : > { %v636_v55 = vpop.permute.xlu1 %635  ;;  %v634_v57 = vpop.permute.xlu0 %633 }
  0xda   : > { %v638_v48 = vsel %vm637_vm15, %v634_v57, %v636_v55  ;;  %v639_v49 = vsel %vm637_vm15, %v636_v55, %v634_v57  ;;  %v706_v52 = vpop.permute.xlu2 %705  ;;  %v632_v55 = vadd.f32 %v630_v51, %v618_v50  ;;  %v739_v51 = vld [vmem:[#allocation2 + $0x170] sm:$0xff]  ;;  %vm837_vm15 = vcmp.lt.s32.totalorder %v3063_v4, 10 }
  0xdb   : > { %v643_v54 = vmul.f32 %v641_v45, %v638_v48  ;;  %v644_v58 = vmul.f32 %v642_v46, %v639_v49 }
  0xdd   : > { %v645_v11 = vadd.f32 %v643_v54, %v631_v59  ;;  %v646_v13 = vadd.f32 %v644_v58, %v632_v55 }
  0xe1   : > { %v662_v23 = vpop.permute.xlu1 %661  ;;  %v650_v24 = vpop.permute.xlu0 %649 }
  0xe2   : > { %v652_v8 = vsel %vm651_vm1, %v3116_v16, %v650_v24  ;;  %v653_v29 = vsel %vm651_vm1, %v650_v24, %v3116_v16  ;;  %v666_v63 = vsel %vm665_vm2, %v662_v23, %v3133_v47  ;;  %v667_v5 = vsel %vm665_vm2, %v3133_v47, %v662_v23  ;;  %v1449_v47 = vld [vmem:[%s3788_s7] sm:$0xff]  ;;  %v697_v23 = vld [vmem:[#allocation2 + $0x140] sm:$0xff]  ;;  %v698_v24 = vld [vmem:[#allocation2 + $0x148] sm:$0xff]  ;;  %v732_v12 = vpop.permute.xlu2 %731 }
  0xe3   : > { %v657_v57 = vmul.f32 %v655_v53, %v652_v8  ;;  %v658_v60 = vmul.f32 %v656_v43, %v653_v29  ;;  %v671_v56 = vmul.f32 %v669_v62, %v666_v63  ;;  %v672_v22 = vmul.f32 %v670_v3, %v667_v5  ;;  %v740_v53 = vld [vmem:[#allocation2 + $0x178] sm:$0xff]  ;;  %v753_v43 = vld [vmem:[#allocation2 + $0x180] sm:$0xff]  ;;  %v754_v8 = vld [vmem:[#allocation2 + $0x188] sm:$0xff] }
  0xe4   : > { %v1453_v28 = vsel %vm1451_vm5, %v1449_v47, 0  ;;  %vm893_vm2 = vcmp.lt.s32.totalorder %v3063_v4, 99 }
  0xe5   : > { %v659_v19 = vadd.f32 %v657_v57, %v645_v11  ;;  %v660_v21 = vadd.f32 %v658_v60, %v646_v13  ;;  %v3190_v38 = vand.u32 4294901760, %v1453_v28 }
  0xe7   : > { %v673_v31 = vadd.f32 %v671_v56, %v659_v19  ;;  %v674_v32 = vadd.f32 %v672_v22, %v660_v21  ;;  %v3197_v48 = vsub.f32 %v1453_v28, %v3190_v38 }
  0xe9   : > { %v678_v2 = vpop.permute.xlu1 %677  ;;  %v676_v30 = vpop.permute.xlu0 %675  ;;  %v3202_v55 = vand.u32 4294901760, %v3197_v48 }
  0xea   : > { %v680_v17 = vsel %vm679_vm3, %v676_v30, %v678_v2  ;;  %v681_v18 = vsel %vm679_vm3, %v678_v2, %v676_v30  ;;  %vm865_vm3 = vcmp.lt.s32.totalorder %v3063_v4, 105 }
  0xeb   : > { %v685_v26 = vmul.f32 %v683_v7, %v680_v17  ;;  %v686_v27 = vmul.f32 %v684_v15, %v681_v18  ;;  %v1478_v15 = vsub.f32 %v3197_v48, %v3202_v55 }
  0xed   : > { %v687_v36 = vadd.f32 %v685_v26, %v673_v31  ;;  %v688_v1 = vadd.f32 %v686_v27, %v674_v32  ;;  %v3210_v21 = vand.u32 4294901760, %v1478_v15  ;;  %v828_v15 = vld [vmem:[#allocation4 + $0x48] sm:$0xff] }
  0xf1   : > { %v704_v14 = vpop.permute.xlu1 %703  ;;  %v692_v16 = vpop.permute.xlu0 %691 }
  0xf2   : > { %v694_v61 = vsel %vm693_vm4, %v3144_v20, %v692_v16  ;;  %v695_v6 = vsel %vm693_vm4, %v692_v16, %v3144_v20  ;;  %v708_v9 = vsel %vm707_vm6, %v704_v14, %v706_v52  ;;  %v709_v10 = vsel %vm707_vm6, %v706_v52, %v704_v14  ;;  %v748_v52 = vpop.permute.xlu2 %747 }
  0xf3   : > { %v699_v33 = vmul.f32 %v697_v23, %v694_v61  ;;  %v700_v34 = vmul.f32 %v698_v24, %v695_v6  ;;  %v713_v42 = vmul.f32 %v711_v35, %v708_v9  ;;  %v714_v44 = vmul.f32 %v712_v0, %v709_v10 }
  0xf4   : > { %vm879_vm4 = vcmp.lt.s32.totalorder %v3063_v4, 102  ;;  %vm934_vm6 = vcmp.lt.s32.totalorder %v3063_v4, 90 }
  0xf5   : > { %v701_v2 = vadd.f32 %v699_v33, %v687_v36  ;;  %v702_v30 = vadd.f32 %v700_v34, %v688_v1  ;;  %v774_v36 = vld [vmem:[#allocation4] sm:$0xff]  ;;  %v775_v1 = vld [vmem:[#allocation4 + $0x8] sm:$0xff] }
  0xf7   : > { %v715_v49 = vadd.f32 %v713_v42, %v701_v2  ;;  %v716_v50 = vadd.f32 %v714_v44, %v702_v30 }
  0xf9   : > { %v720_v20 = vpop.permute.xlu1 %719  ;;  %v718_v37 = vpop.permute.xlu0 %717 }
  0xfa   : > { %v722_v40 = vsel %vm721_vm8, %v718_v37, %v720_v20  ;;  %v723_v41 = vsel %vm721_vm8, %v720_v20, %v718_v37 }
  0xfb   : > { %v727_v45 = vmul.f32 %v725_v25, %v722_v40  ;;  %v728_v46 = vmul.f32 %v726_v39, %v723_v41  ;;  %v786_v25 = vld [vmem:[#allocation4 + $0x10] sm:$0xff]  ;;  %v787_v39 = vld [vmem:[#allocation4 + $0x18] sm:$0xff] }
  0xfd   : > { %v729_v29 = vadd.f32 %v727_v45, %v715_v49  ;;  %v730_v54 = vadd.f32 %v728_v46, %v716_v50 }
 0x101   : > { %v734_v58 = vpop.permute.xlu0 %733  ;;  %v746_v59 = vpop.permute.xlu1 %745 }
 0x102   : > { %v736_v57 = vsel %vm735_vm9, %v732_v12, %v734_v58  ;;  %v737_v60 = vsel %vm735_vm9, %v734_v58, %v732_v12  ;;  %v750_v62 = vsel %vm749_vm10, %v746_v59, %v748_v52  ;;  %v751_v63 = vsel %vm749_vm10, %v748_v52, %v746_v59  ;;  %v814_v58 = vld [vmem:[#allocation4 + $0x38] sm:$0xff] }
 0x103   : > { %v741_v3 = vmul.f32 %v739_v51, %v736_v57  ;;  %v742_v5 = vmul.f32 %v740_v53, %v737_v60  ;;  %v755_v11 = vmul.f32 %v753_v43, %v750_v62  ;;  %v756_v13 = vmul.f32 %v754_v8, %v751_v63  ;;  %v800_v43 = vld [vmem:[#allocation4 + $0x20] sm:$0xff]  ;;  %v801_v8 = vld [vmem:[#allocation4 + $0x28] sm:$0xff] }
 0x104   : > { %vm920_vm9 = vcmp.lt.s32.totalorder %v3063_v4, 93  ;;  %vm948_vm10 = vcmp.lt.s32.totalorder %v3063_v4, 87 }
 0x105   : > { %v743_v14 = vadd.f32 %v741_v3, %v729_v29  ;;  %v744_v16 = vadd.f32 %v742_v5, %v730_v54  ;;  %v813_v54 = vld [vmem:[#allocation4 + $0x30] sm:$0xff] }
 0x107   : > { %v757_v56 = vadd.f32 %v755_v11, %v743_v14  ;;  %v758_v7 = vadd.f32 %v756_v13, %v744_v16 }
 0x109   : > { %v763_v17 = vpop.permute.xlu0 %762 }
 0x10a   : > { %v3206_v18 = vadd.f32 %v763_v17, %v757_v56  ;;  %v3208_v19 = vadd.f32 %v763_v17, %v758_v7  ;;  %v827_v7 = vld [vmem:[#allocation4 + $0x40] sm:$0xff] }
 0x10c   : > { %769 = vrot.lane.b32.xlu2 %v3208_v19, %s2885_s26  ;;  %792 = vrot.lane.b32.xlu0 %v3206_v18, %s2886_s27  ;;  %v1473_v22 = vand.u32 4294901760, %v3206_v18  ;;  %v1650_v47 = vand.u32 4294901760, %v3208_v19 }
 0x10d   : > { %767 = vrot.lane.b32.xlu1 %v3206_v18, %s2885_s26  ;;  %s2901_s26 = smov 45  }
 0x10e   : > { %1474 = vmatpush.msra.mxu0 %v1473_v22  ;;  %1567 = vmatpush.msra.mxu3 %v1473_v22  ;;  %v1508_v23 = vsub.f32 %v3206_v18, %v1473_v22  ;;  %v1685_v24 = vsub.f32 %v3208_v19, %v1650_v47 }
 0x10f   : > { %1480 = vmatmul.f32.vlgmr.msra.gmra.mxu0 %v3210_v21  ;;  %1571 = vmatmul.f32.vlgmr.msra.gmra.mxu3 %v3202_v55 }
 0x110   : > { %1539 = vmatpush.msra.mxu2 %v1508_v23  ;;  %v1509_v61 = vand.u32 4294901760, %v1508_v23  ;;  %v1686_v6 = vand.u32 4294901760, %v1685_v24 }
 0x111   : > { %1542 = vmatmul.f32.vlgmr.msra.gmra.mxu2 %v3197_v48 }
 0x112   : > { %1651 = vmatpush.msrb.mxu2 %v1650_v47  ;;  %1599 = vmatpush.msrb.mxu0 %v1509_v61  ;;  %v1510_v26 = vsub.f32 %v1508_v23, %v1509_v61  ;;  %v1687_v27 = vsub.f32 %v1685_v24, %v1686_v6 }
 0x114   : > { %1776 = vmatpush.msra.mxu2 %v1686_v6  ;;  %1716 = vmatpush.msra.mxu0 %v1685_v24  ;;  %v1511_v12 = vand.u32 4294901760, %v1510_v26  ;;  %v1688_v28 = vand.u32 4294901760, %v1687_v27 }
 0x115   : > { %780 = vrot.lane.b32.xlu2 %v3208_v19, %s2887_s28  ;;  %808 = vrot.lane.b32.xlu0 %v3208_v19, %s2867_s21 }
 0x116   : > { %778 = vrot.lane.b32.xlu1 %v3206_v18, %s2887_s28  ;;  %1512 = vmatpush.msra.mxu1 %v1511_v12  ;;  %s2903_s28 = smov 42  }
 0x117   : > { %1689 = vmatpush.msrb.mxu3 %v1688_v28  ;;  %1514 = vmatmul.f32.vlgmr.msra.gmra.mxu1 %v3190_v38 }
 0x118   : > { %1625 = vmatpush.msrb.mxu1 %v1473_v22 }
 0x119   : > { %1802 = vmatpush.msra.mxu3 %v1650_v47 }
 0x11a   : > { %1744 = vmatpush.msra.mxu1 %v1650_v47 }
 0x11d   : > { %806 = vrot.lane.b32.xlu2 %v3206_v18, %s2867_s21  ;;  %833 = vrot.lane.b32.xlu0 %v3206_v18, %s2888_s29  ;;  %s2892_s21 = smov 105  }
 0x11e   : > { %794 = vrot.lane.b32.xlu1 %v3208_v19, %s2886_s27  ;;  %s2902_s27 = smov 39  }
 0x125   : > { %821 = vrot.lane.b32.xlu2 %v3208_v19, %s2889_s11  ;;  %849 = vrot.lane.b32.xlu0 %v3208_v19, %s2890_s12 }
 0x126   : > { %819 = vrot.lane.b32.xlu1 %v3206_v18, %s2889_s11  ;;  %s2905_s11 = smov 3  }
 0x12d   : > { %847 = vrot.lane.b32.xlu2 %v3206_v18, %s2890_s12  ;;  %875 = vrot.lane.b32.xlu0 %v3206_v18, %s2891_s14  ;;  %s2906_s12 = smov 6  }
 0x12e   : > { %835 = vrot.lane.b32.xlu1 %v3208_v19, %s2888_s29  ;;  %s2904_s29 = smov 9  }
 0x135   : > { %863 = vrot.lane.b32.xlu2 %v3208_v19, %s2892_s21  ;;  %891 = vrot.lane.b32.xlu0 %v3208_v19, %s2893_s16 }
 0x136   : > { %861 = vrot.lane.b32.xlu1 %v3206_v18, %s2892_s21  ;;  %s2908_s21 = smov 119  }
 0x13d   : > { %889 = vrot.lane.b32.xlu2 %v3206_v18, %s2893_s16  ;;  %916 = vrot.lane.b32.xlu0 %v3206_v18, %s2894_s19  ;;  %s2909_s16 = smov 122  }
 0x13e   : > { %877 = vrot.lane.b32.xlu1 %v3208_v19, %s2891_s14  ;;  %s2907_s14 = smov 125  }
 0x145   : > { %905 = vrot.lane.b32.xlu2 %v3208_v19, %s2882_s18  ;;  %932 = vrot.lane.b32.xlu0 %v3208_v19, %s2895_s20 }
 0x146   : > { %903 = vrot.lane.b32.xlu1 %v3206_v18, %s2882_s18  ;;  %s2900_s18 = smov 51  }
 0x14d   : > { %930 = vrot.lane.b32.xlu2 %v3206_v18, %s2895_s20  ;;  %958 = vrot.lane.b32.xlu0 %v3206_v18, %s2896_s22  ;;  %s2911_s20 = smov 83  }
 0x14e   : > { %918 = vrot.lane.b32.xlu1 %v3208_v19, %s2894_s19  ;;  %s2910_s19 = smov 89  }
 0x155   : > { %946 = vrot.lane.b32.xlu2 %v3208_v19, %s2897_s23  ;;  %974 = vrot.lane.b32.xlu0 %v3208_v19, %s2898_s24 }
 0x156   : > { %944 = vrot.lane.b32.xlu1 %v3206_v18, %s2897_s23  ;;  %s2913_s23 = smov 80  }
 0x15d   : > { %972 = vrot.lane.b32.xlu2 %v3206_v18, %s2898_s24  ;;  %1000 = vrot.lane.b32.xlu0 %v3206_v18, %s2899_s25  ;;  %s2914_s24 = smov 74  }
 0x15e   : > { %960 = vrot.lane.b32.xlu1 %v3208_v19, %s2896_s22  ;;  %s2912_s22 = smov 86  }
 0x165   : > { %988 = vrot.lane.b32.xlu2 %v3208_v19, %s2900_s18  ;;  %1016 = vrot.lane.b32.xlu0 %v3208_v19, %s2901_s26 }
 0x166   : > { %986 = vrot.lane.b32.xlu1 %v3206_v18, %s2900_s18  ;;  %v770_v31 = vpop.permute.xlu2 %769  ;;  %s2916_s18 = smov 71  }
 0x16d   : > { %1014 = vrot.lane.b32.xlu2 %v3206_v18, %s2901_s26  ;;  %1042 = vrot.lane.b32.xlu0 %v3206_v18, %s2902_s27  ;;  %s2917_s26 = smov 38  }
 0x16e   : > { %1002 = vrot.lane.b32.xlu1 %v3208_v19, %s2899_s25  ;;  %s2915_s25 = smov 77  }
 0x16f   : > { %v781_v32 = vpop.permute.xlu2 %780 }
 0x175   : > { %1030 = vrot.lane.b32.xlu2 %v3208_v19, %s2903_s28  ;;  %1058 = vrot.lane.b32.xlu0 %v3208_v19, %s2904_s29 }
 0x176   : > { %1028 = vrot.lane.b32.xlu1 %v3206_v18, %s2903_s28  ;;  %s2919_s28 = smov 35  }
 0x177   : > { %v807_v33 = vpop.permute.xlu2 %806 }
 0x17d   : > { %1056 = vrot.lane.b32.xlu2 %v3206_v18, %s2904_s29  ;;  %1084 = vrot.lane.b32.xlu0 %v3206_v18, %s2905_s11  ;;  %s2920_s29 = smov 29  }
 0x17e   : > { %1044 = vrot.lane.b32.xlu1 %v3208_v19, %s2902_s27  ;;  %v793_v35 = vpop.permute.xlu0 %792  ;;  %s2918_s27 = smov 41  }
 0x17f   : > { %v3273_v34 = vpop.permute.xlu2 %821  ;;  %v768_v0 = vpop.permute.xlu1 %767 }
 0x180   : > { %v772_v9 = vsel %vm771_vm11, %v768_v0, %v770_v31  ;;  %v773_v10 = vsel %vm771_vm11, %v770_v31, %v768_v0  ;;  %v841_v31 = vld [vmem:[#allocation4 + $0x50] sm:$0xff]  ;;  %vm962_vm11 = vcmp.lt.s32.totalorder %v3063_v4, 57 }
 0x181   : > { %v776_v44 = vmul.f32 %v774_v36, %v772_v9  ;;  %v777_v45 = vmul.f32 %v775_v1, %v773_v10 }
 0x185   : > { %1072 = vrot.lane.b32.xlu2 %v3208_v19, %s2906_s12  ;;  %1107 = vrot.lane.b32.xlu0 %v3208_v19, %s2907_s14 }
 0x186   : > { %1070 = vrot.lane.b32.xlu1 %v3206_v18, %s2906_s12 }
 0x187   : > { %v848_v20 = vpop.permute.xlu2 %847  ;;  %v809_v37 = vpop.permute.xlu0 %808 }
 0x188   : > { %v810_v40 = vsel %vm518_vm7, %v807_v33, %v809_v37  ;;  %v811_v41 = vsel %vm518_vm7, %v809_v37, %v807_v33  ;;  %v779_v2 = vpop.permute.xlu1 %778  ;;  %vm796_vm7 = vcmp.lt.s32.totalorder %v3063_v4, 19 }
 0x189   : > { %v783_v30 = vsel %vm782_vm12, %v779_v2, %v781_v32  ;;  %v784_v42 = vsel %vm782_vm12, %v781_v32, %v779_v2  ;;  %v815_v63 = vmul.f32 %v813_v54, %v810_v40  ;;  %v816_v3 = vmul.f32 %v814_v58, %v811_v41  ;;  %v842_v32 = vld [vmem:[#allocation4 + $0x58] sm:$0xff]  ;;  %v883_v58 = vld [vmem:[#allocation4 + $0x80] sm:$0xff] }
 0x18a   : > { %v788_v46 = vmul.f32 %v786_v25, %v783_v30  ;;  %v789_v49 = vmul.f32 %v787_v39, %v784_v42  ;;  %v869_v30 = vld [vmem:[#allocation4 + $0x70] sm:$0xff]  ;;  %v870_v42 = vld [vmem:[#allocation4 + $0x78] sm:$0xff]  ;;  %vm1018_vm12 = vcmp.lt.s32.totalorder %v3063_v4, 45 }
 0x18c   : > { %v790_v50 = vadd.f32 %v788_v46, %v776_v44  ;;  %v791_v51 = vadd.f32 %v789_v49, %v777_v45 }
 0x18d   : > { %1105 = vrot.lane.b32.xlu2 %v3206_v18, %s2907_s14  ;;  %1133 = vrot.lane.b32.xlu0 %v3206_v18, %s2908_s21 }
 0x18e   : > { %1086 = vrot.lane.b32.xlu1 %v3208_v19, %s2905_s11  ;;  %s2921_s11 = smov 26  }
 0x18f   : > { %v3289_v52 = vpop.permute.xlu2 %863  ;;  %v834_v53 = vpop.permute.xlu0 %833 }
 0x190   : > { %v795_v29 = vpop.permute.xlu1 %794 }
 0x191   : > { %v797_v59 = vsel %vm796_vm7, %v793_v35, %v795_v29  ;;  %v798_v57 = vsel %vm796_vm7, %v795_v29, %v793_v35  ;;  %v856_v35 = vld [vmem:[#allocation4 + $0x68] sm:$0xff]  ;;  %vm990_vm7 = vcmp.lt.s32.totalorder %v3063_v4, 51 }
 0x192   : > { %v802_v60 = vmul.f32 %v800_v43, %v797_v59  ;;  %v803_v62 = vmul.f32 %v801_v8, %v798_v57  ;;  %v897_v57 = vld [vmem:[#allocation4 + $0x90] sm:$0xff] }
 0x194   : > { %v804_v5 = vadd.f32 %v802_v60, %v790_v50  ;;  %v805_v11 = vadd.f32 %v803_v62, %v791_v51  ;;  %v898_v60 = vld [vmem:[#allocation4 + $0x98] sm:$0xff] }
 0x195   : > { %1121 = vrot.lane.b32.xlu2 %v3208_v19, %s2909_s16  ;;  %1149 = vrot.lane.b32.xlu0 %v3208_v19, %s2910_s19 }
 0x196   : > { %1119 = vrot.lane.b32.xlu1 %v3206_v18, %s2909_s16  ;;  %v817_v13 = vadd.f32 %v815_v63, %v804_v5  ;;  %v818_v14 = vadd.f32 %v816_v3, %v805_v11  ;;  %s2924_s16 = smov 118  }
 0x197   : > { %v890_v16 = vpop.permute.xlu2 %889  ;;  %v850_v56 = vpop.permute.xlu0 %849 }
 0x198   : > { %v852_v17 = vsel %vm851_vm13, %v848_v20, %v850_v56  ;;  %v853_v22 = vsel %vm851_vm13, %v850_v56, %v848_v20  ;;  %v820_v47 = vpop.permute.xlu1 %819  ;;  %vm1004_vm13 = vcmp.lt.s32.totalorder %v3063_v4, 48 }
 0x199   : > { %v824_v23 = vsel %vm823_vm14, %v820_v47, %v3273_v34  ;;  %v825_v24 = vsel %vm823_vm14, %v3273_v34, %v820_v47  ;;  %v855_v34 = vld [vmem:[#allocation4 + $0x60] sm:$0xff]  ;;  %v858_v20 = vmul.f32 %v856_v35, %v853_v22  ;;  %v911_v47 = vld [vmem:[#allocation4 + $0xa8] sm:$0xff]  ;;  %v924_v35 = vld [vmem:[#allocation4 + $0xb0] sm:$0xff]  ;;  %vm1060_vm14 = vcmp.lt.s32.totalorder %v3063_v4, 9 }
 0x19a   : > { %v829_v61 = vmul.f32 %v827_v7, %v824_v23  ;;  %v830_v6 = vmul.f32 %v828_v15, %v825_v24  ;;  %v857_v1 = vmul.f32 %v855_v34, %v852_v17  ;;  %v910_v22 = vld [vmem:[#allocation4 + $0xa0] sm:$0xff] }
 0x19c   : > { %v831_v26 = vadd.f32 %v829_v61, %v817_v13  ;;  %v832_v27 = vadd.f32 %v830_v6, %v818_v14 }
 0x19d   : > { %1147 = vrot.lane.b32.xlu2 %v3206_v18, %s2910_s19  ;;  %1175 = vrot.lane.b32.xlu0 %v3206_v18, %s2911_s20  ;;  %s2925_s19 = smov 115  }
 0x19e   : > { %1135 = vrot.lane.b32.xlu1 %v3208_v19, %s2908_s21  ;;  %s2923_s21 = smov 23  }
 0x19f   : > { %v3304_v12 = vpop.permute.xlu2 %905  ;;  %v876_v28 = vpop.permute.xlu0 %875 }
 0x1a0   : > { %v836_v33 = vpop.permute.xlu1 %835 }
 0x1a1   : > { %v838_v0 = vsel %vm837_vm15, %v834_v53, %v836_v33  ;;  %v839_v9 = vsel %vm837_vm15, %v836_v33, %v834_v53  ;;  %vm1032_vm15 = vcmp.lt.s32.totalorder %v3063_v4, 42 }
 0x1a2   : > { %v843_v10 = vmul.f32 %v841_v31, %v838_v0  ;;  %v844_v36 = vmul.f32 %v842_v32, %v839_v9  ;;  %v938_v9 = vld [vmem:[#allocation4 + $0xc0] sm:$0xff] }
 0x1a4   : > { %v845_v37 = vadd.f32 %v843_v10, %v831_v26  ;;  %v846_v25 = vadd.f32 %v844_v36, %v832_v27  ;;  %v939_v10 = vld [vmem:[#allocation4 + $0xc8] sm:$0xff] }
 0x1a5   : > { %1163 = vrot.lane.b32.xlu2 %v3208_v19, %s2912_s22  ;;  %1191 = vrot.lane.b32.xlu0 %v3208_v19, %s2913_s23 }
 0x1a6   : > { %1161 = vrot.lane.b32.xlu1 %v3206_v18, %s2912_s22  ;;  %v859_v39 = vadd.f32 %v857_v1, %v845_v37  ;;  %v860_v40 = vadd.f32 %v858_v20, %v846_v25  ;;  %s2674_s22 = sshll.u32 %s3794_s17, 3 }
 0x1a7   : > { %v931_v41 = vpop.permute.xlu2 %930  ;;  %v892_v2 = vpop.permute.xlu0 %891 }
 0x1a8   : > { %v894_v44 = vsel %vm893_vm2, %v890_v16, %v892_v2  ;;  %v895_v45 = vsel %vm893_vm2, %v892_v2, %v890_v16  ;;  %v862_v46 = vpop.permute.xlu1 %861  ;;  %vm1046_vm2 = vcmp.lt.s32.totalorder %v3063_v4, 39 }
 0x1a9   : > { %v866_v49 = vsel %vm865_vm3, %v862_v46, %v3289_v52  ;;  %v867_v50 = vsel %vm865_vm3, %v3289_v52, %v862_v46  ;;  %v884_v52 = vld [vmem:[#allocation4 + $0x88] sm:$0xff]  ;;  %v899_v11 = vmul.f32 %v897_v57, %v895_v45  ;;  %v900_v13 = vmul.f32 %v898_v60, %v894_v44  ;;  %v952_v45 = vld [vmem:[#allocation4 + $0xd0] sm:$0xff]  ;;  %v953_v46 = vld [vmem:[#allocation4 + $0xd8] sm:$0xff] }
 0x1aa   : > { %v871_v51 = vmul.f32 %v869_v30, %v867_v50  ;;  %v872_v53 = vmul.f32 %v870_v42, %v866_v49  ;;  %v966_v60 = vld [vmem:[#allocation4 + $0xe0] sm:$0xff]  ;;  %vm1109_vm3 = vcmp.lt.s32.totalorder %v3063_v4, 125 }
 0x1ac   : > { %v873_v43 = vadd.f32 %v871_v51, %v859_v39  ;;  %v874_v8 = vadd.f32 %v872_v53, %v860_v40 }
 0x1ad   : > { %1189 = vrot.lane.b32.xlu2 %v3206_v18, %s2913_s23  ;;  %1217 = vrot.lane.b32.xlu0 %v3206_v18, %s2914_s24  ;;  %s2927_s23 = smov 103  }
 0x1ae   : > { %1177 = vrot.lane.b32.xlu1 %v3208_v19, %s2911_s20  ;;  %s2926_s20 = smov 109  }
 0x1af   : > { %v3319_v29 = vpop.permute.xlu2 %946  ;;  %v917_v54 = vpop.permute.xlu0 %916 }
 0x1b0   : > { %v878_v59 = vpop.permute.xlu1 %877 }
 0x1b1   : > { %v880_v62 = vsel %vm879_vm4, %v876_v28, %v878_v59  ;;  %v881_v63 = vsel %vm879_vm4, %v878_v59, %v876_v28  ;;  %vm1074_vm4 = vcmp.lt.s32.totalorder %v3063_v4, 6 }
 0x1b2   : > { %v885_v3 = vmul.f32 %v883_v58, %v881_v63  ;;  %v886_v5 = vmul.f32 %v884_v52, %v880_v62  ;;  %v980_v63 = vld [vmem:[#allocation4 + $0xf0] sm:$0xff] }
 0x1b4   : > { %v887_v14 = vadd.f32 %v885_v3, %v873_v43  ;;  %v888_v16 = vadd.f32 %v886_v5, %v874_v8  ;;  %v981_v3 = vld [vmem:[#allocation4 + $0xf8] sm:$0xff] }
 0x1b5   : > { %1205 = vrot.lane.b32.xlu2 %v3208_v19, %s2915_s25  ;;  %1233 = vrot.lane.b32.xlu0 %v3208_v19, %s2916_s18 }
 0x1b6   : > { %1203 = vrot.lane.b32.xlu1 %v3206_v18, %s2915_s25  ;;  %v901_v56 = vadd.f32 %v899_v11, %v887_v14  ;;  %v902_v7 = vadd.f32 %v900_v13, %v888_v16 }
 0x1b7   : > { %v973_v15 = vpop.permute.xlu2 %972  ;;  %v933_v17 = vpop.permute.xlu0 %932 }
 0x1b8   : > { %v935_v23 = vsel %vm934_vm6, %v931_v41, %v933_v17  ;;  %v936_v24 = vsel %vm934_vm6, %v933_v17, %v931_v41  ;;  %v904_v61 = vpop.permute.xlu1 %903  ;;  %vm1088_vm6 = vcmp.lt.s32.totalorder %v3063_v4, 3 }
 0x1b9   : > { %v907_v6 = vsel %vm721_vm8, %v904_v61, %v3304_v12  ;;  %v908_v26 = vsel %vm721_vm8, %v3304_v12, %v904_v61  ;;  %v925_v12 = vld [vmem:[#allocation4 + $0xb8] sm:$0xff]  ;;  %v940_v25 = vmul.f32 %v938_v9, %v936_v24  ;;  %v941_v39 = vmul.f32 %v939_v10, %v935_v23  ;;  %v994_v24 = vld [vmem:[#allocation4 + $0x100] sm:$0xff]  ;;  %v995_v61 = vld [vmem:[#allocation4 + $0x108] sm:$0xff] }
 0x1ba   : > { %v912_v27 = vmul.f32 %v910_v22, %v908_v26  ;;  %v913_v28 = vmul.f32 %v911_v47, %v907_v6  ;;  %vm976_vm8 = vcmp.lt.s32.totalorder %v3063_v4, 54  ;;  %v1009_v10 = vld [vmem:[#allocation4 + $0x118] sm:$0xff] }
 0x1bc   : > { %v914_v31 = vadd.f32 %v912_v27, %v901_v56  ;;  %v915_v32 = vadd.f32 %v913_v28, %v902_v7 }
 0x1bd   : > { %1231 = vrot.lane.b32.xlu2 %v3206_v18, %s2916_s18  ;;  %1259 = vrot.lane.b32.xlu0 %v3206_v18, %s2917_s26  ;;  %s403_s18 = scalar_lea.vmem %s3781_s0, %s2674_s22 }
 0x1be   : > { %1219 = vrot.lane.b32.xlu1 %v3208_v19, %s2914_s24  ;;  %s2676_s24 = sshll.u32 %s3794_s17, 5 }
 0x1bf   : > { %v3337_v33 = vpop.permute.xlu2 %988  ;;  %v959_v34 = vpop.permute.xlu0 %958 }
 0x1c0   : > { %v919_v0 = vpop.permute.xlu1 %918 }
 0x1c1   : > { %v921_v36 = vsel %vm920_vm9, %v917_v54, %v919_v0  ;;  %v922_v1 = vsel %vm920_vm9, %v919_v0, %v917_v54  ;;  %vm1151_vm9 = vcmp.lt.s32.totalorder %v3063_v4, 89 }
 0x1c2   : > { %v926_v20 = vmul.f32 %v924_v35, %v922_v1  ;;  %v927_v37 = vmul.f32 %v925_v12, %v921_v36  ;;  %v1450_v36 = vld [vmem:[%s3788_s7 + $0x8] sm:$0xf] }
 0x1c4   : > { %v928_v40 = vadd.f32 %v926_v20, %v914_v31  ;;  %v929_v41 = vadd.f32 %v927_v37, %v915_v32  ;;  %v1456_v20 = vsel %vm1451_vm5, %v1450_v36, 0  ;;  %v1022_v37 = vld [vmem:[#allocation4 + $0x120] sm:$0xff] }
 0x1c5   : > { %1247 = vrot.lane.b32.xlu2 %v3208_v19, %s2918_s27  ;;  %1275 = vrot.lane.b32.xlu0 %v3208_v19, %s2919_s28 }
 0x1c6   : > { %1245 = vrot.lane.b32.xlu1 %v3206_v18, %s2918_s27  ;;  %v942_v2 = vadd.f32 %v940_v25, %v928_v40  ;;  %v943_v30 = vadd.f32 %v941_v39, %v929_v41  ;;  %v1023_v25 = vld [vmem:[#allocation4 + $0x128] sm:$0xff]  ;;  %v3377_v41 = vand.u32 4294901760, %v1456_v20  ;;  %s2928_s27 = smov 106  }
 0x1c7   : > { %v1015_v42 = vpop.permute.xlu2 %1014  ;;  %v975_v44 = vpop.permute.xlu0 %974 }
 0x1c8   : > { %v977_v49 = vsel %vm976_vm8, %v973_v15, %v975_v44  ;;  %v978_v50 = vsel %vm976_vm8, %v975_v44, %v973_v15  ;;  %v945_v51 = vpop.permute.xlu1 %944  ;;  %1518 = vmatmul.f32.gmra.mxu1 %v3377_v41  ;;  %vm1123_vm8 = vcmp.lt.s32.totalorder %v3063_v4, 122 }
 0x1c9   : > { %v949_v53 = vsel %vm948_vm10, %v945_v51, %v3319_v29  ;;  %v950_v43 = vsel %vm948_vm10, %v3319_v29, %v945_v51  ;;  %v967_v29 = vld [vmem:[#allocation4 + $0xe8] sm:$0xff]  ;;  %v982_v16 = vmul.f32 %v980_v63, %v978_v50  ;;  %v983_v56 = vmul.f32 %v981_v3, %v977_v49 }
 0x1ca   : > { %v954_v8 = vmul.f32 %v952_v45, %v950_v43  ;;  %v955_v54 = vmul.f32 %v953_v46, %v949_v53  ;;  %vm1816_vm10 = vcmask 31744  }
 0x1cc   : > { %v956_v58 = vadd.f32 %v954_v8, %v942_v2  ;;  %v957_v52 = vadd.f32 %v955_v54, %v943_v30  ;;  %v1036_v54 = vld [vmem:[#allocation4 + $0x130] sm:$0xff] }
 0x1cd   : > { %1273 = vrot.lane.b32.xlu2 %v3206_v18, %s2919_s28  ;;  %1300 = vrot.lane.b32.xlu0 %v3206_v18, %s2920_s29 }
 0x1ce   : > { %1261 = vrot.lane.b32.xlu1 %v3208_v19, %s2917_s26 }
 0x1cf   : > { %v3352_v59 = vpop.permute.xlu2 %1030  ;;  %v1001_v57 = vpop.permute.xlu0 %1000 }
 0x1d0   : > { %v961_v62 = vpop.permute.xlu1 %960  ;;  %1627 = vmatmul.f32.vlgmr.msrb.gmra.mxu1 %v3190_v38 }
 0x1d1   : > { %v963_v5 = vsel %vm962_vm11, %v959_v34, %v961_v62  ;;  %v964_v11 = vsel %vm962_vm11, %v961_v62, %v959_v34  ;;  %vm1823_vm11 = vcmask 1043456  }
 0x1d2   : > { %v968_v13 = vmul.f32 %v966_v60, %v964_v11  ;;  %v969_v14 = vmul.f32 %v967_v29, %v963_v5 }
 0x1d4   : > { %v970_v7 = vadd.f32 %v968_v13, %v956_v58  ;;  %v971_v15 = vadd.f32 %v969_v14, %v957_v52  ;;  %v1037_v58 = vld [vmem:[#allocation4 + $0x138] sm:$0xff] }
 0x1d5   : > { %1289 = vrot.lane.b32.xlu2 %v3208_v19, %s2862_s15  ;;  %1316 = vrot.lane.b32.xlu0 %v3208_v19, %s2921_s11 }
 0x1d6   : > { %1287 = vrot.lane.b32.xlu1 %v3206_v18, %s2862_s15  ;;  %v984_v17 = vadd.f32 %v982_v16, %v970_v7  ;;  %v985_v22 = vadd.f32 %v983_v56, %v971_v15  ;;  %s2922_s15 = smov 121   ;;  %v1050_v56 = vld [vmem:[#allocation4 + $0x140] sm:$0xff]  ;;  %v1051_v7 = vld [vmem:[#allocation4 + $0x148] sm:$0xff] }
 0x1d7   : > { %v1057_v47 = vpop.permute.xlu2 %1056  ;;  %v1017_v23 = vpop.permute.xlu0 %1016 }
 0x1d8   : > { %v1019_v6 = vsel %vm1018_vm12, %v1015_v42, %v1017_v23  ;;  %v1020_v26 = vsel %vm1018_vm12, %v1017_v23, %v1015_v42  ;;  %v987_v27 = vpop.permute.xlu1 %986  ;;  %v3380_v42 = vsub.f32 %v1456_v20, %v3377_v41  ;;  %1631 = vmatmul.f32.gmra.mxu1 %v3377_v41  ;;  %vm1137_vm12 = vcmp.lt.s32.totalorder %v3063_v4, 119 }
 0x1d9   : > { %v991_v28 = vsel %vm990_vm7, %v987_v27, %v3337_v33  ;;  %v992_v31 = vsel %vm990_vm7, %v3337_v33, %v987_v27  ;;  %v1008_v33 = vld [vmem:[#allocation4 + $0x110] sm:$0xff]  ;;  %v1024_v44 = vmul.f32 %v1022_v37, %v1020_v26  ;;  %v1025_v45 = vmul.f32 %v1023_v25, %v1019_v6 }
 0x1da   : > { %v996_v32 = vmul.f32 %v994_v24, %v992_v31  ;;  %v997_v34 = vmul.f32 %v995_v61, %v991_v28  ;;  %v3387_v50 = vand.u32 4294901760, %v3380_v42  ;;  %1547 = vmatmul.f32.gmra.mxu2 %v3380_v42  ;;  %vm1165_vm7 = vcmp.lt.s32.totalorder %v3063_v4, 86 }
 0x1dc   : > { %v998_v35 = vadd.f32 %v996_v32, %v984_v17  ;;  %v999_v12 = vadd.f32 %v997_v34, %v985_v22  ;;  %v1486_v52 = vsub.f32 %v3380_v42, %v3387_v50  ;;  %1577 = vmatmul.f32.gmra.mxu3 %v3387_v50  ;;  %v1064_v17 = vld [vmem:[#allocation4 + $0x150] sm:$0xff]  ;;  %v1065_v22 = vld [vmem:[#allocation4 + $0x158] sm:$0xff]  ;;  %v1078_v34 = vld [vmem:[#allocation4 + $0x160] sm:$0xff] }
 0x1dd   : > { %1314 = vrot.lane.b32.xlu2 %v3206_v18, %s2921_s11  ;;  %1342 = vrot.lane.b32.xlu0 %v3206_v18, %s2922_s15 }
 0x1de   : > { %1302 = vrot.lane.b32.xlu1 %v3208_v19, %s2920_s29  ;;  %v1487_v11 = vand.u32 4294901760, %v1486_v52 }
 0x1df   : > { %v3369_v0 = vpop.permute.xlu2 %1072  ;;  %v3371_v9 = vpop.permute.xlu0 %1042 }
 0x1e0   : > { %v1003_v1 = vpop.permute.xlu1 %1002  ;;  %1488 = vmatmul.f32.gmra.mxu0 %v1487_v11  ;;  %1748 = vmatmul.f32.vlgmr.msra.gmra.mxu1 %v3202_v55 }
 0x1e1   : > { %v1005_v39 = vsel %vm1004_vm13, %v1001_v57, %v1003_v1  ;;  %v1006_v40 = vsel %vm1004_vm13, %v1003_v1, %v1001_v57  ;;  %vm1179_vm13 = vcmp.lt.s32.totalorder %v3063_v4, 83 }
 0x1e2   : > { %v1010_v2 = vmul.f32 %v1008_v33, %v1006_v40  ;;  %v1011_v30 = vmul.f32 %v1009_v10, %v1005_v39  ;;  %1657 = vmatmul.f32.vlgmr.msrb.gmra.mxu2 %v3210_v21  ;;  %v1093_v40 = vld [vmem:[#allocation4 + $0x178] sm:$0xff] }
 0x1e4   : > { %v1012_v46 = vadd.f32 %v1010_v2, %v998_v35  ;;  %v1013_v49 = vadd.f32 %v1011_v30, %v999_v12  ;;  %1691 = vmatmul.f32.vlgmr.msrb.gmra.mxu3 %v3190_v38  ;;  %v1079_v35 = vld [vmem:[#allocation4 + $0x168] sm:$0xff] }
 0x1e5   : > { %1330 = vrot.lane.b32.xlu2 %v3208_v19, %s2923_s21  ;;  %1358 = vrot.lane.b32.xlu0 %v3208_v19, %s2924_s16  ;;  %v414_v30 = vld [vmem:[%s403_s18] sm:$0xff] }
 0x1e6   : > { %1328 = vrot.lane.b32.xlu1 %v3206_v18, %s2923_s21  ;;  %v1026_v51 = vadd.f32 %v1024_v44, %v1012_v46  ;;  %v1027_v53 = vadd.f32 %v1025_v45, %v1013_v49  ;;  %v1099_v44 = vld [vmem:[#allocation4 + $0x180] sm:$0xff]  ;;  %v1100_v45 = vld [vmem:[#allocation4 + $0x188] sm:$0xff]  ;;  %1813 = vst [vmem:[#allocation1] ss:$2 sm:$0xff] %v414_v30 }
 0x1e7   : > { %v1106_v43 = vpop.permute.xlu2 %1105  ;;  %v1059_v8 = vpop.permute.xlu0 %1058 }
 0x1e8   : > { %v1061_v57 = vsel %vm1060_vm14, %v1057_v47, %v1059_v8  ;;  %v1062_v60 = vsel %vm1060_vm14, %v1059_v8, %v1057_v47  ;;  %v1029_v29 = vpop.permute.xlu1 %1028  ;;  %1601 = vmatmul.f32.vlgmr.msrb.gmra.mxu0 %v3190_v38  ;;  %1754 = vmatmul.f32.gmra.mxu1 %v3387_v50  ;;  %vm1193_vm14 = vcmp.lt.s32.totalorder %v3063_v4, 80 }
 0x1e9   : > { %v1033_v62 = vsel %vm1032_vm15, %v1029_v29, %v3352_v59  ;;  %v1034_v63 = vsel %vm1032_vm15, %v3352_v59, %v1029_v29  ;;  %v1066_v6 = vmul.f32 %v1064_v17, %v1062_v60  ;;  %v1067_v21 = vmul.f32 %v1065_v22, %v1061_v57 }
 0x1ea   : > { %v1038_v3 = vmul.f32 %v1036_v54, %v1034_v63  ;;  %v1039_v5 = vmul.f32 %v1037_v58, %v1033_v62  ;;  %1665 = vmatmul.f32.gmra.mxu2 %v1487_v11  ;;  %v2548_v54 = vld [vmem:[%s3790_s9] sm:$0xff]  ;;  %v1114_v58 = vld [vmem:[#allocation4 + $0x198] sm:$0xff]  ;;  %v1101_v60 = vmul.f32 %v1099_v44, %v3206_v18  ;;  %vm1207_vm15 = vcmp.lt.s32.totalorder %v3063_v4, 77 }
 0x1eb   : > { %v1128_v11 = vld [vmem:[#allocation4 + $0x1a8] sm:$0xff] }
 0x1ec   : > { %v1040_v13 = vadd.f32 %v1038_v3, %v1026_v51  ;;  %v1041_v14 = vadd.f32 %v1039_v5, %v1027_v53  ;;  %1695 = vmatmul.f32.gmra.mxu3 %v3377_v41  ;;  %v1113_v51 = vld [vmem:[#allocation4 + $0x190] sm:$0xff]  ;;  %v1127_v5 = vld [vmem:[#allocation4 + $0x1a0] sm:$0xff] }
 0x1ed   : > { %1356 = vrot.lane.b32.xlu2 %v3206_v18, %s2924_s16  ;;  %1384 = vrot.lane.b32.xlu0 %v3206_v18, %s2876_s30 }
 0x1ee   : > { %1344 = vrot.lane.b32.xlu1 %v3208_v19, %s2922_s15 }
 0x1ef   : > { %v3405_v59 = vpop.permute.xlu2 %1121  ;;  %v1085_v16 = vpop.permute.xlu0 %1084 }
 0x1f0   : > { %v1045_v15 = vpop.permute.xlu1 %1044  ;;  %1605 = vmatmul.f32.gmra.mxu0 %v3377_v41 }
 0x1f1   : > { %v1047_v47 = vsel %vm1046_vm2, %v3371_v9, %v1045_v15  ;;  %v1048_v23 = vsel %vm1046_vm2, %v1045_v15, %v3371_v9  ;;  %vm1221_vm2 = vcmp.lt.s32.totalorder %v3063_v4, 74 }
 0x1f2   : > { %v1052_v24 = vmul.f32 %v1050_v56, %v1048_v23  ;;  %v1053_v61 = vmul.f32 %v1051_v7, %v1047_v47  ;;  %1778 = vmatmul.f32.vlgmr.msra.gmra.mxu2 %v3190_v38  ;;  %v1814_v7 = vld.sshfl [vmem:[#allocation1] sm:$0xff pattern:$0x75316420] }
 0x1f3   : > { %v1824_v23 = vsel %vm1823_vm11, %v1814_v7, 0 }
 0x1f4   : > { %v1054_v26 = vadd.f32 %v1052_v24, %v1040_v13  ;;  %v1055_v27 = vadd.f32 %v1053_v61, %v1041_v14  ;;  %1804 = vmatmul.f32.vlgmr.msra.gmra.mxu3 %v3190_v38  ;;  %v1102_v38 = vmul.f32 %v1100_v45, %v3208_v19 }
 0x1f5   : > { %1372 = vrot.lane.b32.xlu2 %v3208_v19, %s2925_s19  ;;  %1399 = vrot.lane.b32.xlu0 %v3208_v19, %s2926_s20 }
 0x1f6   : > { %1370 = vrot.lane.b32.xlu1 %v3206_v18, %s2925_s19  ;;  %v1068_v28 = vadd.f32 %v1066_v6, %v1054_v26  ;;  %v1069_v31 = vadd.f32 %v1067_v21, %v1055_v27  ;;  %v1843_v26 = vand.u32 4294901760, %v1824_v23 }
 0x1f7   : > { %v1108_v32 = vpop.permute.xlu0 %1107  ;;  %v1148_v12 = vpop.permute.xlu2 %1147 }
 0x1f8   : > { %v1110_v9 = vsel %vm1109_vm3, %v1106_v43, %v1108_v32  ;;  %v1111_v33 = vsel %vm1109_vm3, %v1108_v32, %v1106_v43  ;;  %v1071_v10 = vpop.permute.xlu1 %1070  ;;  %1719 = vmatmul.f32.vlgmr.msra.gmra.mxu0 %v3197_v48  ;;  %v1141_v32 = vld [vmem:[#allocation4 + $0x1b0] sm:$0xff]  ;;  %1937 = vmatpush.msrb.mxu3 %v1843_v26  ;;  %vm1235_vm3 = vcmp.lt.s32.totalorder %v3063_v4, 71 }
 0x1f9   : > { %v1075_v36 = vsel %vm1074_vm4, %v1071_v10, %v3369_v0  ;;  %v1076_v1 = vsel %vm1074_vm4, %v3369_v0, %v1071_v10  ;;  %v1092_v0 = vld [vmem:[#allocation4 + $0x170] sm:$0xff]  ;;  %v1115_v29 = vmul.f32 %v1113_v51, %v1110_v9  ;;  %v1116_v62 = vmul.f32 %v1114_v58, %v1111_v33  ;;  %1844 = vmatpush.msrb.mxu0 %v1843_v26 }
 0x1fa   : > { %v1080_v20 = vmul.f32 %v1078_v34, %v1076_v1  ;;  %v1081_v37 = vmul.f32 %v1079_v35, %v1075_v36  ;;  %1782 = vmatmul.f32.gmra.mxu2 %v3377_v41  ;;  %v1142_v34 = vld [vmem:[#allocation4 + $0x1b8] sm:$0xff]  ;;  %v1155_v35 = vld [vmem:[#allocation4 + $0x1c0] sm:$0xff]  ;;  %vm1249_vm4 = vcmp.lt.s32.totalorder %v3063_v4, 41 }
 0x1fc   : > { %v1082_v25 = vadd.f32 %v1080_v20, %v1068_v28  ;;  %v1083_v39 = vadd.f32 %v1081_v37, %v1069_v31  ;;  %1808 = vmatmul.f32.gmra.mxu3 %v3377_v41  ;;  %v1439_v41 = vld [vmem:[%s3786_s5] sm:$0xff] }
 0x1fd   : > { %1397 = vrot.lane.b32.xlu2 %v3206_v18, %s2926_s20  ;;  %1425 = vrot.lane.b32.xlu0 %v3206_v18, %s2927_s23 }
 0x1fe   : > { %1386 = vrot.lane.b32.xlu1 %v3208_v19, %s2876_s30  ;;  %s3765_s30 = scalar_lea.vmem %s3791_s10, %s2676_s24 }
 0x1ff   : > { %v3433_v55 = vpop.permute.xlu0 %1133  ;;  %v3436_v53 = vpop.permute.xlu2 %1163 }
 0x200   : > { %v1087_v2 = vpop.permute.xlu1 %1086  ;;  %1724 = vmatmul.f32.gmra.mxu0 %v3380_v42  ;;  %v1448_v42 = vld [vmem:[%s3787_s6 + $0x8] sm:$0xf] }
 0x201   : > { %v1089_v46 = vsel %vm1088_vm6, %v1085_v16, %v1087_v2  ;;  %v1090_v49 = vsel %vm1088_vm6, %v1087_v2, %v1085_v16  ;;  %v1821_v10 = vsel %vm1816_vm10, %v1448_v42, 0  ;;  %vm1263_vm6 = vcmp.lt.s32.totalorder %v3063_v4, 38 }
 0x202   : > { %v1094_v43 = vmul.f32 %v1092_v0, %v1090_v49  ;;  %v1095_v8 = vmul.f32 %v1093_v40, %v1089_v46  ;;  %v3488_v20 = vand.u32 4294901760, %v1821_v10 }
 0x204   : > { %v1096_v52 = vadd.f32 %v1094_v43, %v1082_v25  ;;  %v1097_v57 = vadd.f32 %v1095_v8, %v1083_v39  ;;  %v3494_v30 = vsub.f32 %v1821_v10, %v3488_v20 }
 0x205   : > { %1413 = vrot.lane.b32.xlu2 %v3208_v19, %s2928_s27  ;;  %2552 = vperm.xlu0 %2777, %v2548_v54   ;;  %v1815_v54 = vld.sshfl [vmem:[#allocation1 + $0x8] sm:$0xff pattern:$0x75316420] }
 0x206   : > { %v1103_v63 = vadd.f32 %v1101_v60, %v1096_v52  ;;  %v1104_v3 = vadd.f32 %v1102_v38, %v1097_v57  ;;  %1411 = vrot.lane.b32.xlu1 %v3206_v18, %s2928_s27  ;;  %v1447_v18 = vld [vmem:[%s3787_s6] sm:$0xff]  ;;  %v3497_v49 = vand.u32 4294901760, %v3494_v30  ;;  %v1169_v38 = vld [vmem:[#allocation4 + $0x1d0] sm:$0xff]  ;;  %v1170_v52 = vld [vmem:[#allocation4 + $0x1d8] sm:$0xff]  ;;  %v1826_v60 = vsel %vm1823_vm11, %v1815_v54, 0 }
 0x207   : > { %v1150_v50 = vpop.permute.xlu0 %1149  ;;  %v1818_v24 = vsel %vm1816_vm10, %v1447_v18, 0  ;;  %v3461_v61 = vpop.permute.xlu2 %1189  ;;  %vm1332_vm10 = vcmp.lt.s32.totalorder %v3063_v4, 23  ;;  %vm1346_vm11 = vcmp.lt.s32.totalorder %v3063_v4, 121 }
 0x208   : > { %v1152_v48 = vsel %vm1151_vm9, %v1148_v12, %v1150_v50  ;;  %v1153_v13 = vsel %vm1151_vm9, %v1150_v50, %v1148_v12  ;;  %v1118_v14 = vadd.f32 %v1116_v62, %v1104_v3  ;;  %v1120_v16 = vpop.permute.xlu1 %1119  ;;  %v1117_v56 = vadd.f32 %v1115_v29, %v1103_v63  ;;  %v1156_v12 = vld [vmem:[#allocation4 + $0x1c8] sm:$0xff] }
 0x209   : > { %v1124_v15 = vsel %vm1123_vm8, %v1120_v16, %v3405_v59  ;;  %v1125_v17 = vsel %vm1123_vm8, %v3405_v59, %v1120_v16  ;;  %v3464_v27 = vand.u32 4294901760, %v1818_v24  ;;  %v1878_v59 = vsub.f32 %v1824_v23, %v1843_v26 }
 0x20a   : > { %v1129_v22 = vmul.f32 %v1127_v5, %v1124_v15  ;;  %v1130_v47 = vmul.f32 %v1128_v11, %v1125_v17  ;;  %v1157_v40 = vmul.f32 %v1155_v35, %v1152_v48  ;;  %v1158_v2 = vmul.f32 %v1156_v12, %v1153_v13  ;;  %v1183_v35 = vld [vmem:[#allocation4 + $0x1e0] sm:$0xff] }
 0x20b   : > { %v3470_v28 = vsub.f32 %v1818_v24, %v3464_v27  ;;  %1909 = vmatpush.msrb.mxu2 %v1878_v59  ;;  %v1879_v33 = vand.u32 4294901760, %v1878_v59  ;;  %v1856_v57 = vsub.f32 %v3494_v30, %v3497_v49  ;;  %v2020_v62 = vand.u32 4294901760, %v1826_v60 }
 0x20c   : > { %v1131_v6 = vadd.f32 %v1129_v22, %v1117_v56  ;;  %v1132_v21 = vadd.f32 %v1130_v47, %v1118_v14  ;;  %vm1277_vm9 = vcmp.lt.s32.totalorder %v3063_v4, 35  ;;  %vm1304_vm8 = vcmp.lt.s32.totalorder %v3063_v4, 29 }
 0x20d   : > { %1442 = vperm.xlu2 %2778, %v1439_v41   ;;  %1912 = vmatmul.f32.vlgmr.msrb.gmra.mxu2 %v3470_v28  ;;  %v1880_v0 = vsub.f32 %v1878_v59, %v1879_v33  ;;  %v1857_v11 = vand.u32 4294901760, %v1856_v57  ;;  %v2055_v48 = vsub.f32 %v1826_v60, %v2020_v62 }
 0x20e   : > { %1427 = vrot.lane.b32.xlu1 %v3208_v19, %s2927_s23  ;;  %v3478_v19 = vand.u32 4294901760, %v3470_v28  ;;  %1969 = vmatpush.msra.mxu0 %v1879_v33 }
 0x20f   : > { %v3472_v31 = vpop.permute.xlu0 %1175  ;;  %v1881_v46 = vand.u32 4294901760, %v1880_v0  ;;  %v3499_v51 = vpop.permute.xlu2 %1205  ;;  %2021 = vmatpush.msra.mxu2 %v2020_v62  ;;  %v2056_v16 = vand.u32 4294901760, %v2055_v48 }
 0x210   : > { %v1136_v9 = vpop.permute.xlu1 %1135  ;;  %v1848_v39 = vsub.f32 %v3470_v28, %v3478_v19  ;;  %1941 = vmatmul.f32.vlgmr.msrb.gmra.mxu3 %v3478_v19 }
 0x211   : > { %v1138_v36 = vsel %vm1137_vm12, %v3433_v55, %v1136_v9  ;;  %v1139_v1 = vsel %vm1137_vm12, %v1136_v9, %v3433_v55  ;;  %1882 = vmatpush.msrb.mxu1 %v1881_v46  ;;  %v2057_v56 = vsub.f32 %v2055_v48, %v2056_v16  ;;  %2146 = vmatpush.msrb.mxu2 %v2056_v16  ;;  %vm1360_vm12 = vcmp.lt.s32.totalorder %v3063_v4, 118 }
 0x212   : > { %v1143_v37 = vmul.f32 %v1141_v32, %v1138_v36  ;;  %v1144_v25 = vmul.f32 %v1142_v34, %v1139_v1  ;;  %v1849_v45 = vand.u32 4294901760, %v1848_v39  ;;  %1884 = vmatmul.f32.vlgmr.msrb.gmra.mxu1 %v3464_v27  ;;  %v1184_v34 = vld [vmem:[#allocation4 + $0x1e8] sm:$0xff]  ;;  %v1198_v36 = vld [vmem:[#allocation4 + $0x1f8] sm:$0xff] }
 0x213   : > { %1995 = vmatpush.msra.mxu1 %v1843_v26  ;;  %v2058_v15 = vand.u32 4294901760, %v2057_v56  ;;  %v1268_v56 = vld [vmem:[#allocation4 + $0x248] sm:$0xff] }
 0x214   : > { %v1145_v44 = vadd.f32 %v1143_v37, %v1131_v6  ;;  %v1146_v55 = vadd.f32 %v1144_v25, %v1132_v21  ;;  %1850 = vmatmul.f32.vlgmr.msrb.gmra.mxu0 %v1849_v45  ;;  %v1197_v25 = vld [vmem:[#allocation4 + $0x1f0] sm:$0xff] }
 0x215   : > { %1917 = vmatmul.f32.gmra.mxu2 %v3494_v30  ;;  %2114 = vmatpush.msrb.mxu1 %v2020_v62 }
 0x216   : > { %v1160_v43 = vadd.f32 %v1158_v2, %v1146_v55  ;;  %v1159_v8 = vadd.f32 %v1157_v40, %v1145_v44  ;;  %2086 = vmatpush.msrb.mxu0 %v2055_v48  ;;  %2059 = vmatpush.msra.mxu3 %v2058_v15  ;;  %v1211_v40 = vld [vmem:[#allocation4 + $0x200] sm:$0xff]  ;;  %v1226_v44 = vld [vmem:[#allocation4 + $0x218] sm:$0xff] }
 0x217   : > { %v3502_v58 = vpop.permute.xlu0 %1191 }
 0x218   : > { %v1162_v29 = vpop.permute.xlu1 %1161  ;;  %1947 = vmatmul.f32.gmra.mxu3 %v3497_v49  ;;  %v1195_v1 = vsel %vm1193_vm14, %v3502_v58, %v3461_v61  ;;  %v1194_v39 = vsel %vm1193_vm14, %v3461_v61, %v3502_v58  ;;  %vm1415_vm14 = vcmp.lt.s32.totalorder %v3063_v4, 106 }
 0x219   : > { %v1166_v63 = vsel %vm1165_vm7, %v1162_v29, %v3436_v53  ;;  %v1167_v3 = vsel %vm1165_vm7, %v3436_v53, %v1162_v29  ;;  %v3517_v53 = vpop.permute.xlu2 %1231  ;;  %2172 = vmatpush.msrb.mxu3 %v2020_v62  ;;  %v1240_v29 = vld [vmem:[#allocation4 + $0x228] sm:$0xff]  ;;  %vm1374_vm7 = vcmp.lt.s32.totalorder %v3063_v4, 115 }
 0x21a   : > { %v1171_v50 = vmul.f32 %v1169_v38, %v1166_v63  ;;  %v1172_v5 = vmul.f32 %v1170_v52, %v1167_v3  ;;  %1888 = vmatmul.f32.gmra.mxu1 %v3488_v20  ;;  %v1254_v3 = vld [vmem:[#allocation4 + $0x238] sm:$0xff] }
 0x21c   : > { %v3512_v13 = vadd.f32 %v1171_v50, %v1159_v8  ;;  %v1174_v14 = vadd.f32 %v1172_v5, %v1160_v43  ;;  %1858 = vmatmul.f32.gmra.mxu0 %v1857_v11  ;;  %v1199_v8 = vmul.f32 %v1197_v25, %v1194_v39  ;;  %v1239_v5 = vld [vmem:[#allocation4 + $0x220] sm:$0xff]  ;;  %v1281_v25 = vld [vmem:[#allocation4 + $0x250] sm:$0xff] }
 0x21d   : > { %2027 = vmatmul.f32.vlgmr.msra.gmra.mxu2 %v1849_v45  ;;  %v1200_v45 = vmul.f32 %v1198_v36, %v1195_v1  ;;  %v1282_v36 = vld [vmem:[#allocation4 + $0x258] sm:$0xff] }
 0x21f   : > { %v3514_v7 = vpop.permute.xlu0 %1217 }
 0x220   : > { %v1178_v18 = vpop.permute.xlu1 %1177  ;;  %2061 = vmatmul.f32.vlgmr.msra.gmra.mxu3 %v3464_v27 }
 0x221   : > { %v3524_v47 = vpop.permute.xlu2 %1247  ;;  %v1181_v42 = vsel %vm1179_vm13, %v1178_v18, %v3472_v31  ;;  %v1180_v12 = vsel %vm1179_vm13, %v3472_v31, %v1178_v18  ;;  %vm1401_vm13 = vcmp.lt.s32.totalorder %v3063_v4, 109 }
 0x222   : > { %1997 = vmatmul.f32.vlgmr.msra.gmra.mxu1 %v3464_v27  ;;  %v1185_v33 = vmul.f32 %v1183_v35, %v1180_v12 }
 0x224   : > { %1971 = vmatmul.f32.vlgmr.msra.gmra.mxu0 %v3464_v27 }
 0x225   : > { %2035 = vmatmul.f32.gmra.mxu2 %v1857_v11 }
 0x227   : > { %v3521_v17 = vpop.permute.xlu0 %1233 }
 0x228   : > { %v1204_v22 = vpop.permute.xlu1 %1203  ;;  %2065 = vmatmul.f32.gmra.mxu3 %v3488_v20  ;;  %v1237_v62 = vsel %vm1235_vm3, %v3521_v17, %v3517_v53  ;;  %v1236_v11 = vsel %vm1235_vm3, %v3517_v53, %v3521_v17 }
 0x229   : > { %v3533_v24 = vpop.permute.xlu2 %1273  ;;  %v1209_v37 = vsel %vm1207_vm15, %v3499_v51, %v1204_v22  ;;  %v1208_v2 = vsel %vm1207_vm15, %v1204_v22, %v3499_v51  ;;  %v1242_v15 = vmul.f32 %v1240_v29, %v1237_v62  ;;  %v1241_v17 = vmul.f32 %v1239_v5, %v1236_v11  ;;  %v1323_v62 = vld [vmem:[#allocation4 + $0x288] sm:$0xff]  ;;  %v1322_v5 = vld [vmem:[#allocation4 + $0x280] sm:$0xff] }
 0x22a   : > { %2001 = vmatmul.f32.gmra.mxu1 %v3488_v20  ;;  %v1213_v61 = vmul.f32 %v1211_v40, %v1208_v2  ;;  %v1294_v40 = vld [vmem:[#allocation4 + $0x260] sm:$0xff] }
 0x22c   : > { %1975 = vmatmul.f32.gmra.mxu0 %v3488_v20 }
 0x22d   : > { %2148 = vmatmul.f32.vlgmr.msrb.gmra.mxu2 %v3464_v27 }
 0x22f   : > { %v3529_v41 = vpop.permute.xlu0 %1259 }
 0x230   : > { %v1220_v23 = vpop.permute.xlu1 %1219  ;;  %2174 = vmatmul.f32.vlgmr.msrb.gmra.mxu3 %v3464_v27 }
 0x231   : > { %v3541_v26 = vpop.permute.xlu2 %1289  ;;  %v1223_v55 = vsel %vm1221_vm2, %v1220_v23, %v3514_v7  ;;  %v1222_v43 = vsel %vm1221_vm2, %v3514_v7, %v1220_v23  ;;  %v1267_v23 = vld [vmem:[#allocation4 + $0x240] sm:$0xff] }
 0x232   : > { %2118 = vmatmul.f32.vlgmr.msrb.gmra.mxu1 %v3478_v19  ;;  %v1186_v19 = vmul.f32 %v1184_v34, %v1181_v42  ;;  %v1228_v51 = vmul.f32 %v1226_v44, %v1223_v55  ;;  %v1309_v55 = vld [vmem:[#allocation4 + $0x278] sm:$0xff] }
 0x234   : > { %2089 = vmatmul.f32.vlgmr.msrb.gmra.mxu0 %v3470_v28  ;;  %v1188_v0 = vadd.f32 %v1186_v19, %v1174_v14 }
 0x235   : > { %2152 = vmatmul.f32.gmra.mxu2 %v3488_v20 }
 0x236   : > { %v1202_v54 = vadd.f32 %v1200_v45, %v1188_v0 }
 0x237   : > { %v3538_v21 = vpop.permute.xlu0 %1275 }
 0x238   : > { %v1246_v6 = vpop.permute.xlu1 %1245  ;;  %2178 = vmatmul.f32.gmra.mxu3 %v3488_v20  ;;  %v1212_v20 = vld [vmem:[#allocation4 + $0x208] sm:$0xff]  ;;  %v1279_v1 = vsel %vm1277_vm9, %v3538_v21, %v3533_v24  ;;  %v1278_v39 = vsel %vm1277_vm9, %v3533_v24, %v3538_v21  ;;  %v1543_v21 = vpop.f32.mrf.mxu2 }
 0x239   : > { %v3549_v28 = vpop.permute.xlu2 %1314  ;;  %v1214_v46 = vmul.f32 %v1212_v20, %v1209_v37  ;;  %v1251_v50 = vsel %vm1249_vm4, %v3524_v47, %v1246_v6  ;;  %v1250_v14 = vsel %vm1249_vm4, %v1246_v6, %v3524_v47 }
 0x23a   : > { %2124 = vmatmul.f32.gmra.mxu1 %v3497_v49  ;;  %v1225_v49 = vld [vmem:[#allocation4 + $0x210] sm:$0xff]  ;;  %v1256_v22 = vmul.f32 %v1254_v3, %v1251_v50 }
 0x23b   : > { %v1227_v38 = vmul.f32 %v1225_v49, %v1222_v43  ;;  %v1216_v60 = vadd.f32 %v1214_v46, %v1202_v54  ;;  %v1284_v46 = vmul.f32 %v1282_v36, %v1279_v1  ;;  %v1308_v43 = vld [vmem:[#allocation4 + $0x270] sm:$0xff] }
 0x23c   : > { %2094 = vmatmul.f32.gmra.mxu0 %v3494_v30  ;;  %v1187_v30 = vadd.f32 %v1185_v33, %v3512_v13  ;;  %v1253_v13 = vld [vmem:[#allocation4 + $0x230] sm:$0xff]  ;;  %v1481_v33 = vpop.f32.mrf.mxu0 }
 0x23d   : > { %v1230_v48 = vadd.f32 %v1228_v51, %v1216_v60  ;;  %v1255_v34 = vmul.f32 %v1253_v13, %v1250_v14  ;;  %v1572_v60 = vpop.f32.mrf.mxu3  ;;  %v1336_v13 = vld [vmem:[#allocation4 + $0x290] sm:$0xff] }
 0x23e   : > { %v1201_v58 = vadd.f32 %v1199_v8, %v1187_v30  ;;  %v1515_v30 = vpop.f32.mrf.mxu1  ;;  %v1283_v8 = vmul.f32 %v1281_v25, %v1278_v39 }
 0x23f   : > { %v3547_v59 = vpop.permute.xlu0 %1300  ;;  %v1244_v47 = vadd.f32 %v1242_v15, %v1230_v48 }
 0x240   : > { %v3545_v27 = vpop.permute.xlu1 %1261  ;;  %v1215_v63 = vadd.f32 %v1213_v61, %v1201_v58 }
 0x241   : > { %v3566_v31 = vpop.permute.xlu2 %1330  ;;  %v1265_v7 = vsel %vm1263_vm6, %v3545_v27, %v3529_v41  ;;  %v1264_v53 = vsel %vm1263_vm6, %v3529_v41, %v3545_v27  ;;  %v1258_v19 = vadd.f32 %v1256_v22, %v1244_v47  ;;  %v1295_v27 = vld [vmem:[#allocation4 + $0x268] sm:$0xff] }
 0x242   : > { %v1229_v16 = vadd.f32 %v1227_v38, %v1215_v63  ;;  %v1270_v6 = vmul.f32 %v1268_v56, %v1265_v7  ;;  %v1269_v35 = vmul.f32 %v1267_v23, %v1264_v53  ;;  %v1337_v63 = vld [vmem:[#allocation4 + $0x298] sm:$0xff]  ;;  %v1351_v7 = vld [vmem:[#allocation4 + $0x2a8] sm:$0xff]  ;;  %v1350_v53 = vld [vmem:[#allocation4 + $0x2a0] sm:$0xff] }
 0x243   : > { %v2182_v47 = vld [vmem:[%s3789_s8] sm:$0xff] }
 0x244   : > { %v1243_v42 = vadd.f32 %v1241_v17, %v1229_v16  ;;  %v1272_v0 = vadd.f32 %v1270_v6, %v1258_v19  ;;  %v1516_v6 = vadd.f32 %v1515_v30, %v1481_v33  ;;  %v1364_v33 = vld [vmem:[#allocation4 + $0x2b0] sm:$0xff]  ;;  %v1379_v30 = vld [vmem:[#allocation4 + $0x2c8] sm:$0xff] }
 0x246   : > { %v1257_v41 = vadd.f32 %v1255_v34, %v1243_v42  ;;  %v1544_v25 = vadd.f32 %v1543_v21, %v1516_v6 }
 0x247   : > { %v3556_v9 = vpop.permute.xlu0 %1316 }
 0x248   : > { %v3551_v32 = vpop.permute.xlu1 %1287  ;;  %v1271_v44 = vadd.f32 %v1269_v35, %v1257_v41 }
 0x249   : > { %v3603_v18 = vpop.permute.xlu2 %1356  ;;  %v1292_v20 = vsel %vm448_vm0, %v3541_v26, %v3551_v32  ;;  %v1291_v2 = vsel %vm448_vm0, %v3551_v32, %v3541_v26  ;;  %vm1318_vm0 = vcmp.lt.s32.totalorder %v3063_v4, 26  ;;  %v1286_v32 = vadd.f32 %v1284_v46, %v1272_v0 }
 0x24a   : > { %v1297_v49 = vmul.f32 %v1295_v27, %v1292_v20  ;;  %v1296_v61 = vmul.f32 %v1294_v40, %v1291_v2  ;;  %v1285_v51 = vadd.f32 %v1283_v8, %v1271_v44  ;;  %v1319_v11 = vsel %vm1318_vm0, %v3549_v28, %v3556_v9  ;;  %v1378_v2 = vld [vmem:[#allocation4 + $0x2c0] sm:$0xff] }
 0x24b   : > { %v1324_v17 = vmul.f32 %v1322_v5, %v1319_v11  ;;  %v2185_v20 = vsel %vm1451_vm5, %v2182_v47, 0  ;;  %v1405_v11 = vld [vmem:[#allocation4 + $0x2e0] sm:$0xff] }
 0x24c   : > { %v1299_v29 = vadd.f32 %v1297_v49, %v1286_v32  ;;  %v1573_v32 = vadd.f32 %v1572_v60, %v1544_v25 }
 0x24f   : > { %v3580_v52 = vpop.permute.xlu0 %1342 }
 0x250   : > { %v3560_v10 = vpop.permute.xlu1 %1302 }
 0x251   : > { %v1306_v45 = vsel %vm1304_vm8, %v3560_v10, %v3547_v59  ;;  %v1305_v24 = vsel %vm1304_vm8, %v3547_v59, %v3560_v10  ;;  %v1373_v26 = vpop.permute.xlu2 %1372  ;;  %v1320_v59 = vsel %vm1318_vm0, %v3556_v9, %v3549_v28  ;;  %v1298_v10 = vadd.f32 %v1296_v61, %v1285_v51  ;;  %v1519_v9 = vpop.f32.mrf.mxu1 }
 0x252   : > { %v1311_v54 = vmul.f32 %v1309_v55, %v1306_v45  ;;  %v1310_v58 = vmul.f32 %v1308_v43, %v1305_v24  ;;  %v1325_v22 = vmul.f32 %v1323_v62, %v1320_v59  ;;  %v1391_v43 = vld [vmem:[#allocation4 + $0x2d0] sm:$0xff]  ;;  %v1392_v24 = vld [vmem:[#allocation4 + $0x2d8] sm:$0xff]  ;;  %v3680_v61 = vand.u32 4294901760, %v2185_v20 }
 0x254   : > { %v1313_v48 = vadd.f32 %v1311_v54, %v1299_v29  ;;  %v1312_v16 = vadd.f32 %v1310_v58, %v1298_v10 }
 0x256   : > { %v1326_v19 = vadd.f32 %v1324_v17, %v1312_v16  ;;  %v2183_v16 = vld [vmem:[%s3789_s8 + $0x8] sm:$0xf] }
 0x257   : > { %v3619_v37 = vpop.permute.xlu0 %1358 }
 0x258   : > { %v3582_v57 = vpop.permute.xlu1 %1328  ;;  %v1362_v0 = vsel %vm1360_vm12, %v3619_v37, %v3603_v18 }
 0x259   : > { %v1334_v3 = vsel %vm1332_vm10, %v3566_v31, %v3582_v57  ;;  %v1333_v14 = vsel %vm1332_vm10, %v3582_v57, %v3566_v31  ;;  %v1327_v31 = vadd.f32 %v1325_v22, %v1313_v48  ;;  %v1398_v35 = vpop.permute.xlu2 %1397 }
 0x25a   : > { %v1339_v23 = vmul.f32 %v1337_v63, %v1334_v3  ;;  %v1338_v34 = vmul.f32 %v1336_v13, %v1333_v14  ;;  %v3685_v3 = vsub.f32 %v2185_v20, %v3680_v61 }
 0x25c   : > { %v1341_v41 = vadd.f32 %v1339_v23, %v1327_v31  ;;  %v1340_v27 = vadd.f32 %v1338_v34, %v1326_v19 }
 0x25d   : > { %v1489_v50 = vpop.f32.mrf.mxu0  ;;  %v1548_v42 = vpop.f32.mrf.mxu2 }
 0x25e   : > { %v1520_v58 = vadd.f32 %v1519_v9, %v1489_v50 }
 0x25f   : > { %v1385_v56 = vpop.permute.xlu0 %1384  ;;  %v1578_v39 = vpop.f32.mrf.mxu3 }
 0x260   : > { %v1345_v12 = vpop.permute.xlu1 %1344  ;;  %v1549_v63 = vadd.f32 %v1548_v42, %v1520_v58 }
 0x261   : > { %v1347_v15 = vsel %vm1346_vm11, %v3580_v52, %v1345_v12  ;;  %v1348_v28 = vsel %vm1346_vm11, %v1345_v12, %v3580_v52  ;;  %v1365_v52 = vld [vmem:[#allocation4 + $0x2b8] sm:$0xff]  ;;  %v1361_v12 = vsel %vm1360_vm12, %v3603_v18, %v3619_v37  ;;  %v1366_v18 = vmul.f32 %v1364_v33, %v1362_v0  ;;  %v1414_v5 = vpop.permute.xlu2 %1413 }
 0x262   : > { %v1353_v57 = vmul.f32 %v1351_v7, %v1347_v15  ;;  %v1352_v36 = vmul.f32 %v1350_v53, %v1348_v28  ;;  %v1367_v45 = vmul.f32 %v1365_v52, %v1361_v12  ;;  %v1419_v7 = vld [vmem:[#allocation4 + $0x2f0] sm:$0xff]  ;;  %v1420_v15 = vld [vmem:[#allocation4 + $0x2f8] sm:$0xff]  ;;  %v1579_v53 = vadd.f32 %v1578_v39, %v1549_v63 }
 0x263   : > { %v3699_v52 = vand.u32 4294901760, %v3685_v3 }
 0x264   : > { %v1355_v40 = vadd.f32 %v1353_v57, %v1341_v41  ;;  %v1354_v46 = vadd.f32 %v1352_v36, %v1340_v27  ;;  %v2188_v57 = vsel %vm1451_vm5, %v2183_v16, 0  ;;  %v1433_v36 = vld [vmem:[#allocation4 + $0x300] sm:$0xff] }
 0x265   : > { %v1602_v49 = vpop.f32.mrf.mxu0  ;;  %v1658_v60 = vpop.f32.mrf.mxu2  ;;  %v3701_v25 = vand.u32 4294901760, %v2188_v57 }
 0x266   : > { %v1368_v29 = vadd.f32 %v1366_v18, %v1354_v46  ;;  %v1603_v28 = vadd.f32 %v1602_v49, %v1573_v32 }
 0x267   : > { %v1400_v37 = vpop.permute.xlu0 %1399  ;;  %v1692_v34 = vpop.f32.mrf.mxu3 }
 0x268   : > { %v1371_v38 = vpop.permute.xlu1 %1370  ;;  %v1402_v48 = vsel %vm1401_vm13, %v1398_v35, %v1400_v37  ;;  %v1403_v13 = vsel %vm1401_vm13, %v1400_v37, %v1398_v35  ;;  %v1693_v46 = vadd.f32 %v1692_v34, %v1658_v60  ;;  %v2549_v34 = vld [vmem:[%s3790_s9 + $0x8] sm:$0xf] }
 0x269   : > { %v1375_v44 = vsel %vm1374_vm7, %v1371_v38, %v1373_v26  ;;  %v1376_v55 = vsel %vm1374_vm7, %v1373_v26, %v1371_v38  ;;  %v1369_v26 = vadd.f32 %v1367_v45, %v1355_v40  ;;  %v1628_v38 = vpop.f32.mrf.mxu1  ;;  %v1407_v31 = vmul.f32 %v1405_v11, %v1403_v13  ;;  %2557 = vperm.xlu1 %2779, %v2549_v34  }
 0x26a   : > { %v1380_v54 = vmul.f32 %v1378_v2, %v1376_v55  ;;  %v1381_v51 = vmul.f32 %v1379_v30, %v1375_v44  ;;  %v3696_v35 = vadd.f32 %v1628_v38, %v1603_v28  ;;  %v1443_v55 = vpop.permute.xlu2 %1442  ;;  %v2210_v45 = vsub.f32 %v3685_v3, %v3699_v52 }
 0x26c   : > { %v1382_v50 = vadd.f32 %v1380_v54, %v1368_v29  ;;  %v1383_v14 = vadd.f32 %v1381_v51, %v1369_v26  ;;  %v2211_v54 = vand.u32 4294901760, %v2210_v45 }
 0x26d   : > { %v1606_v19 = vpop.f32.mrf.mxu0 }
 0x26e   : > { %v1607_v49 = vadd.f32 %v1606_v19, %v1579_v53 }
 0x26f   : > { %v1426_v12 = vpop.permute.xlu0 %1425  ;;  %v1696_v37 = vpop.f32.mrf.mxu3 }
 0x270   : > { %v1387_v1 = vpop.permute.xlu1 %1386 }
 0x271   : > { %v1388_v21 = vsel %vm651_vm1, %v1385_v56, %v1387_v1  ;;  %v1389_v8 = vsel %vm651_vm1, %v1387_v1, %v1385_v56  ;;  %v1406_v56 = vld [vmem:[#allocation4 + $0x2e8] sm:$0xff]  ;;  %vm1429_vm1 = vcmp.lt.s32.totalorder %v3063_v4, 103  ;;  %v1632_v0 = vpop.f32.mrf.mxu1 }
 0x272   : > { %v1393_v62 = vmul.f32 %v1391_v43, %v1389_v8  ;;  %v1394_v59 = vmul.f32 %v1392_v24, %v1388_v21  ;;  %v1408_v47 = vmul.f32 %v1406_v56, %v1402_v48  ;;  %v1434_v1 = vld [vmem:[#allocation4 + $0x308] sm:$0xff]  ;;  %v1666_v43 = vpop.f32.mrf.mxu2  ;;  %v3710_v8 = vsub.f32 %v2188_v57, %v3701_v25 }
 0x273   : > { %v3712_v18 = vadd.f32 %v1632_v0, %v1607_v49 }
 0x274   : > { %v1395_v9 = vadd.f32 %v1393_v62, %v1382_v50  ;;  %v1396_v17 = vadd.f32 %v1394_v59, %v1383_v14  ;;  %v3715_v26 = vand.u32 4294901760, %v3710_v8  ;;  %v1697_v59 = vadd.f32 %v1696_v37, %v1666_v43 }
 0x275   : > { %v1720_v38 = vpop.f32.mrf.mxu0 }
 0x276   : > { %v1409_v27 = vadd.f32 %v1407_v31, %v1395_v9  ;;  %v1410_v20 = vadd.f32 %v1408_v47, %v1396_v17  ;;  %v2218_v11 = vsub.f32 %v3710_v8, %v3715_v26 }
 0x278   : > { %v1412_v10 = vpop.permute.xlu1 %1411 }
 0x279   : > { %v1416_v22 = vsel %vm1415_vm14, %v1412_v10, %v1414_v5  ;;  %v1417_v23 = vsel %vm1415_vm14, %v1414_v5, %v1412_v10  ;;  %v1721_v10 = vadd.f32 %v1720_v38, %v1693_v46  ;;  %v1749_v63 = vpop.f32.mrf.mxu1 }
 0x27a   : > { %v1421_v6 = vmul.f32 %v1419_v7, %v1417_v23  ;;  %v1422_v42 = vmul.f32 %v1420_v15, %v1416_v22  ;;  %v1779_v48 = vpop.f32.mrf.mxu2  ;;  %v2219_v7 = vand.u32 4294901760, %v2218_v11  ;;  %v1805_v22 = vpop.f32.mrf.mxu3 }
 0x27b   : > { %v1750_v14 = vadd.f32 %v1749_v63, %v1721_v10 }
 0x27c   : > { %v1423_v30 = vadd.f32 %v1421_v6, %v1409_v27  ;;  %v1424_v44 = vadd.f32 %v1422_v42, %v1410_v20 }
 0x27d   : > { %v1780_v15 = vadd.f32 %v1779_v48, %v1750_v14  ;;  %v1725_v23 = vpop.f32.mrf.mxu0 }
 0x27e   : > { %v1726_v28 = vadd.f32 %v1725_v23, %v1697_v59 }
 0x27f   : > { %v3722_v53 = vadd.f32 %v1805_v22, %v1780_v15 }
 0x280   : > { %v1428_v41 = vpop.permute.xlu1 %1427 }
 0x281   : > { %v1430_v39 = vsel %vm1429_vm1, %v1426_v12, %v1428_v41  ;;  %v1431_v33 = vsel %vm1429_vm1, %v1428_v41, %v1426_v12  ;;  %v1755_v9 = vpop.f32.mrf.mxu1 }
 0x282   : > { %v1435_v40 = vmul.f32 %v1433_v36, %v1431_v33  ;;  %v1436_v2 = vmul.f32 %v1434_v1, %v1430_v39  ;;  %v1756_v17 = vadd.f32 %v1755_v9, %v1726_v28  ;;  %v1783_v31 = vpop.f32.mrf.mxu2  ;;  %v1809_v47 = vpop.f32.mrf.mxu3 }
 0x283   : > { %v2553_v9 = vpop.permute.xlu0 %2552 }
 0x284   : > { %v1437_v24 = vadd.f32 %v1435_v40, %v1423_v30  ;;  %v1438_v21 = vadd.f32 %v1436_v2, %v1424_v44  ;;  %v1784_v57 = vadd.f32 %v1783_v31, %v1756_v17 }
 0x286   : > { %v1445_v32 = vadd.f32 %v1443_v55, %v1437_v24  ;;  %v1446_v4 = vadd.f32 %v1443_v55, %v1438_v21  ;;  %v3730_v6 = vadd.f32 %v1809_v47, %v1784_v57 }
 0x288   : > { %v2205_v51 = vand.u32 4294901760, %v1445_v32  ;;  %v2382_v58 = vand.u32 4294901760, %v1446_v4 }
 0x28a   : > { %v2240_v29 = vsub.f32 %v1445_v32, %v2205_v51  ;;  %v2417_v62 = vsub.f32 %v1446_v4, %v2382_v58  ;;  %2206 = vmatpush.msra.mxu0 %v2205_v51  ;;  %2299 = vmatpush.msra.mxu3 %v2205_v51 }
 0x28b   : > { %2212 = vmatmul.f32.vlgmr.msra.gmra.mxu0 %v2211_v54  ;;  %2303 = vmatmul.f32.vlgmr.msra.gmra.mxu3 %v3699_v52 }
 0x28c   : > { %v2241_v60 = vand.u32 4294901760, %v2240_v29  ;;  %v2418_v5 = vand.u32 4294901760, %v2417_v62  ;;  %2271 = vmatpush.msra.mxu2 %v2240_v29 }
 0x28d   : > { %2274 = vmatmul.f32.vlgmr.msra.gmra.mxu2 %v3685_v3 }
 0x28e   : > { %2383 = vmatpush.msrb.mxu2 %v2382_v58  ;;  %v2242_v13 = vsub.f32 %v2240_v29, %v2241_v60  ;;  %v2419_v50 = vsub.f32 %v2417_v62, %v2418_v5  ;;  %2331 = vmatpush.msrb.mxu0 %v2241_v60 }
 0x28f   : > { %v1885_v36 = vpop.f32.mrf.mxu1 }
 0x290   : > { %2508 = vmatpush.msra.mxu2 %v2418_v5  ;;  %2448 = vmatpush.msra.mxu0 %v2417_v62  ;;  %v2243_v16 = vand.u32 4294901760, %v2242_v13  ;;  %v2420_v56 = vand.u32 4294901760, %v2419_v50  ;;  %v1913_v1 = vpop.f32.mrf.mxu2 }
 0x291   : > { %v1851_v42 = vpop.f32.mrf.mxu0 }
 0x292   : > { %2244 = vmatpush.msra.mxu1 %v2243_v16  ;;  %2421 = vmatpush.msrb.mxu3 %v2420_v56  ;;  %v1852_v21 = vadd.f32 %v1851_v42, %v3696_v35 }
 0x293   : > { %2246 = vmatmul.f32.vlgmr.msra.gmra.mxu1 %v3680_v61  ;;  %2220 = vmatmul.f32.gmra.mxu0 %v2219_v7  ;;  %v1942_v19 = vpop.f32.mrf.mxu3 }
 0x294   : > { %2534 = vmatpush.msra.mxu3 %v2382_v58  ;;  %2357 = vmatpush.msrb.mxu1 %v2205_v51  ;;  %v1886_v4 = vadd.f32 %v1885_v36, %v1852_v21 }
 0x295   : > { %2309 = vmatmul.f32.gmra.mxu3 %v3715_v26  ;;  %2279 = vmatmul.f32.gmra.mxu2 %v3710_v8 }
 0x296   : > { %2476 = vmatpush.msra.mxu1 %v2382_v58  ;;  %v1914_v58 = vadd.f32 %v1913_v1, %v1886_v4 }
 0x297   : > { %v1889_v41 = vpop.f32.mrf.mxu1 }
 0x298   : > { %v1918_v27 = vpop.f32.mrf.mxu2  ;;  %v1943_v59 = vadd.f32 %v1942_v19, %v1914_v58 }
 0x299   : > { %v1859_v12 = vpop.f32.mrf.mxu0 }
 0x29a   : > { %v1860_v51 = vadd.f32 %v1859_v12, %v3712_v18 }
 0x29b   : > { %2250 = vmatmul.f32.gmra.mxu1 %v3701_v25  ;;  %2333 = vmatmul.f32.vlgmr.msrb.gmra.mxu0 %v3680_v61 }
 0x29c   : > { %v1890_v38 = vadd.f32 %v1889_v41, %v1860_v51 }
 0x29d   : > { %2423 = vmatmul.f32.vlgmr.msrb.gmra.mxu3 %v3680_v61  ;;  %2389 = vmatmul.f32.vlgmr.msrb.gmra.mxu2 %v2211_v54 }
 0x29e   : > { %v1919_v5 = vadd.f32 %v1918_v27, %v1890_v38 }
 0x29f   : > { %v1998_v39 = vpop.f32.mrf.mxu1 }
 0x2a1   : > { %v1972_v20 = vpop.f32.mrf.mxu0 }
 0x2a2   : > { %v1973_v11 = vadd.f32 %v1972_v20, %v1943_v59 }
 0x2a3   : > { %2359 = vmatmul.f32.vlgmr.msrb.gmra.mxu1 %v3680_v61  ;;  %2337 = vmatmul.f32.gmra.mxu0 %v3701_v25 }
 0x2a4   : > { %v1999_v56 = vadd.f32 %v1998_v39, %v1973_v11 }
 0x2a5   : > { %2427 = vmatmul.f32.gmra.mxu3 %v3701_v25  ;;  %2397 = vmatmul.f32.gmra.mxu2 %v2219_v7 }
 0x2a7   : > { %v2002_v40 = vpop.f32.mrf.mxu1 }
 0x2a9   : > { %v1976_v33 = vpop.f32.mrf.mxu0 }
 0x2ab   : > { %2363 = vmatmul.f32.gmra.mxu1 %v3701_v25  ;;  %2451 = vmatmul.f32.vlgmr.msra.gmra.mxu0 %v3685_v3  ;;  %v1948_v3 = vpop.f32.mrf.mxu3 }
 0x2ac   : > { %v1949_v50 = vadd.f32 %v1948_v3, %v1919_v5 }
 0x2ad   : > { %2536 = vmatmul.f32.vlgmr.msra.gmra.mxu3 %v3680_v61  ;;  %2510 = vmatmul.f32.vlgmr.msra.gmra.mxu2 %v3680_v61 }
 0x2ae   : > { %v1977_v34 = vadd.f32 %v1976_v33, %v1949_v50 }
 0x2af   : > { %v2119_v44 = vpop.f32.mrf.mxu1 }
 0x2b0   : > { %v2003_v19 = vadd.f32 %v2002_v40, %v1977_v34 }
 0x2b1   : > { %v2090_v30 = vpop.f32.mrf.mxu0 }
 0x2b3   : > { %2480 = vmatmul.f32.vlgmr.msra.gmra.mxu1 %v3699_v52  ;;  %2456 = vmatmul.f32.gmra.mxu0 %v3710_v8  ;;  %v2062_v61 = vpop.f32.mrf.mxu3  ;;  %v2028_v52 = vpop.f32.mrf.mxu2 }
 0x2b4   : > { %v2029_v18 = vadd.f32 %v2028_v52, %v3722_v53 }
 0x2b5   : > { %2540 = vmatmul.f32.gmra.mxu3 %v3701_v25  ;;  %2514 = vmatmul.f32.gmra.mxu2 %v3701_v25 }
 0x2b6   : > { %v2063_v17 = vadd.f32 %v2062_v61, %v2029_v18 }
 0x2b7   : > { %v3754_v49 = vpop.f32.mrf.mxu1 }
 0x2b8   : > { %v2091_v1 = vadd.f32 %v2090_v30, %v2063_v17 }
 0x2b9   : > { %v3750_v45 = vpop.f32.mrf.mxu0 }
 0x2ba   : > { %v2120_v52 = vadd.f32 %v2119_v44, %v2091_v1 }
 0x2bb   : > { %2486 = vmatmul.f32.gmra.mxu1 %v3715_v26  ;;  %v2066_v0 = vpop.f32.mrf.mxu3  ;;  %v2036_v2 = vpop.f32.mrf.mxu2 }
 0x2bc   : > { %v2037_v36 = vadd.f32 %v2036_v2, %v3730_v6 }
 0x2be   : > { %v2067_v39 = vadd.f32 %v2066_v0, %v2037_v36 }
 0x2c0   : > { %v2096_v40 = vadd.f32 %v3750_v45, %v2067_v39 }
 0x2c2   : > { %v2126_v0 = vadd.f32 %v3754_v49, %v2096_v40 }
 0x2c3   : > { %v3746_v25 = vpop.f32.mrf.mxu3  ;;  %v3748_v55 = vpop.f32.mrf.mxu2 }
 0x2cb   : > { %v3752_v46 = vpop.f32.mrf.mxu3  ;;  %v3756_v24 = vpop.f32.mrf.mxu2 }
 0x2cc   : > { %v2154_v38 = vadd.f32 %v3756_v24, %v2126_v0 }
 0x2db   : > { %v2558_v41 = vpop.permute.xlu1 %2557 }
 0x308   : > { %v2213_v43 = vpop.f32.mrf.mxu0 }
 0x30e   : > { %v2304_v8 = vpop.f32.mrf.mxu3 }
 0x310   : > { %v2247_v32 = vpop.f32.mrf.mxu1  ;;  %v2275_v37 = vpop.f32.mrf.mxu2 }
 0x311   : > { %v2221_v54 = vpop.f32.mrf.mxu0  ;;  %v2248_v26 = vadd.f32 %v2247_v32, %v2213_v43  ;;  %v2150_v32 = vadd.f32 %v3748_v55, %v2120_v52 }
 0x313   : > { %v2276_v10 = vadd.f32 %v2275_v37, %v2248_v26  ;;  %v2176_v37 = vadd.f32 %v3746_v25, %v2150_v32 }
 0x315   : > { %v2305_v35 = vadd.f32 %v2304_v8, %v2276_v10  ;;  %v2180_v10 = vadd.f32 %v3752_v46, %v2154_v38 }
 0x318   : > { %v2251_v29 = vpop.f32.mrf.mxu1  ;;  %v2310_v62 = vpop.f32.mrf.mxu3 }
 0x319   : > { %v2280_v63 = vpop.f32.mrf.mxu2  ;;  %v2334_v60 = vpop.f32.mrf.mxu0  ;;  %v2252_v48 = vadd.f32 %v2251_v29, %v2221_v54 }
 0x31a   : > { %v2335_v13 = vadd.f32 %v2334_v60, %v2305_v35 }
 0x31b   : > { %v2281_v7 = vadd.f32 %v2280_v63, %v2252_v48 }
 0x31d   : > { %v2311_v31 = vadd.f32 %v2310_v62, %v2281_v7 }
 0x320   : > { %v2360_v14 = vpop.f32.mrf.mxu1  ;;  %v2424_v16 = vpop.f32.mrf.mxu3 }
 0x321   : > { %v2361_v15 = vadd.f32 %v2360_v14, %v2335_v13  ;;  %v2390_v22 = vpop.f32.mrf.mxu2  ;;  %v2338_v23 = vpop.f32.mrf.mxu0 }
 0x322   : > { %v2339_v53 = vadd.f32 %v2338_v23, %v2311_v31  ;;  %v2425_v61 = vadd.f32 %v2424_v16, %v2390_v22 }
 0x323   : > { %v2544_v28 = vadd.f32 %v2361_v15, %v1999_v56 }
 0x325   : > { %v2560_v57 = vadd.f32 %v2553_v9, %v2544_v28 }
 0x327   : > { %2564 = vst [vmem:[%s3765_s30] sm:$0xff] %v2560_v57 }
 0x328   : > { %v2364_v47 = vpop.f32.mrf.mxu1  ;;  %v2428_v42 = vpop.f32.mrf.mxu3 }
 0x329   : > { %v2365_v12 = vadd.f32 %v2364_v47, %v2339_v53  ;;  %v2398_v3 = vpop.f32.mrf.mxu2  ;;  %v2452_v27 = vpop.f32.mrf.mxu0 }
 0x32a   : > { %v2453_v43 = vadd.f32 %v2452_v27, %v2425_v61  ;;  %v2429_v44 = vadd.f32 %v2428_v42, %v2398_v3 }
 0x32b   : > { %v2546_v20 = vadd.f32 %v2365_v12, %v2003_v19 }
 0x32d   : > { %v2562_v33 = vadd.f32 %v2558_v41, %v2546_v20 }
 0x32f   : > { %2566 = vst [vmem:[%s3765_s30 + $0x10] sm:$0xf] %v2562_v33 }
 0x330   : > { %v2481_v21 = vpop.f32.mrf.mxu1  ;;  %v2537_v8 = vpop.f32.mrf.mxu3 }
 0x331   : > { %v2482_v4 = vadd.f32 %v2481_v21, %v2453_v43  ;;  %v2511_v6 = vpop.f32.mrf.mxu2  ;;  %v2457_v30 = vpop.f32.mrf.mxu0 }
 0x332   : > { %v2458_v58 = vadd.f32 %v2457_v30, %v2429_v44 }
 0x333   : > { %v2512_v2 = vadd.f32 %v2511_v6, %v2482_v4 }
 0x335   : > { %v2538_v54 = vadd.f32 %v2537_v8, %v2512_v2 }
 0x337   : > { %v2545_v51 = vadd.f32 %v2538_v54, %v2176_v37 }
 0x338   : > { %v2487_v26 = vpop.f32.mrf.mxu1  ;;  %v2541_v62 = vpop.f32.mrf.mxu3 }
 0x339   : > { %v2561_v55 = vadd.f32 %v2553_v9, %v2545_v51  ;;  %v2488_v29 = vadd.f32 %v2487_v26, %v2458_v58  ;;  %v2515_v45 = vpop.f32.mrf.mxu2 }
 0x33b   : > { %2565 = vst [vmem:[%s3765_s30 + $0x8] sm:$0xff] %v2561_v55  ;;  %v2516_v59 = vadd.f32 %v2515_v45, %v2488_v29 }
 0x33d   : > { %v2542_v63 = vadd.f32 %v2541_v62, %v2516_v59 }
 0x33f   : > { %v2547_v25 = vadd.f32 %v2542_v63, %v2180_v10 }
 0x341   : > { %v2563_v60 = vadd.f32 %v2558_v41, %v2547_v25 }
 0x343   : > { %2567 = vst [vmem:[%s3765_s30 + $0x18] sm:$0xf] %v2563_v60 }
 0x344 PF: > { %s22_s13 = sadd.s32 1, %s2854_s13  }
 0x345   : > { %p19_p7 = scmp.ge.s32.totalorder %s22_s13, 4  }
 0x347   :  { %21 = sbr.rel (!%p19_p7) target bundleno = 2 (0x2), region = 174 }
 0x34c   :  { %2589 = vsyncpa [#allocation3], 1 }
 0x34d   :  { %2591 = vsyncpa [#allocation3 + $0x1], 1 }
 0x34e   :  { %2592 = vsyncpa [#allocation5], 1 }

</bundles_post_ra>
